<compile_context>
chip_gen: v5e
topology: v5e:2x2
jax: 0.10.0
libtpu: 0.0.40
codegen_flags: <defaults>
</compile_context>

<pallas_src>
import functools
import math

import jax
import jax.numpy as jnp
from jax import lax
from jax.experimental import pallas as pl
from jax.experimental.pallas import tpu as pltpu

BETA = 0.25


def _round_up(x, m):
    return ((x + m - 1) // m) * m


def _pick_tile(dim, unit, cap):
    """Pick (tile, padded_dim): tile is a multiple of `unit`, <= cap, divides padded_dim."""
    padded = _round_up(dim, unit)
    if padded <= cap:
        return padded, padded
    t = cap - (cap % unit)
    while padded % t:
        t -= unit
    return t, padded


# ---------------------------------------------------------------------------
# Tiled fused matmul + bias (+ ReLU) Pallas kernel
# ---------------------------------------------------------------------------

def _mm_bias_kernel(a_ref, w_ref, b_ref, o_ref, acc_ref, *, relu):
    k = pl.program_id(2)

    @pl.when(k == 0)
    def _():
        acc_ref[...] = jnp.zeros_like(acc_ref)

    acc_ref[...] += jnp.dot(a_ref[...], w_ref[...],
                            preferred_element_type=jnp.float32)

    @pl.when(k == pl.num_programs(2) - 1)
    def _():
        out = acc_ref[...] + b_ref[...]          # bias / ReLU in f32 (v5e-safe)
        if relu:
            out = jnp.maximum(out, 0.0)
        o_ref[...] = out.astype(o_ref.dtype)


def matmul_bias(a, w, b, relu=False, out_dtype=jnp.bfloat16,
                tm_cap=256, tn_cap=256, tk_cap=512):
    """act(A @ W + b). A:[M,K], W:[K,N] fed to the MXU as bf16, f32 accumulate."""
    M, K = a.shape
    N = w.shape[1]

    tm, Mp = _pick_tile(M, 16, tm_cap)    # bf16 sublane-friendly
    tn, Np = _pick_tile(N, 128, tn_cap)   # lane-dense output (N=3 -> padded 128)
    tk, Kp = _pick_tile(K, 128, tk_cap)

    a_p = jnp.pad(a.astype(jnp.bfloat16), ((0, Mp - M), (0, Kp - K)))
    w_p = jnp.pad(w.astype(jnp.bfloat16), ((0, Kp - K), (0, Np - N)))
    b_p = jnp.pad(b.astype(jnp.float32).reshape(1, N), ((0, 0), (0, Np - N)))

    grid = (Mp // tm, Np // tn, Kp // tk)
    out = pl.pallas_call(
        functools.partial(_mm_bias_kernel, relu=relu),
        out_shape=jax.ShapeDtypeStruct((Mp, Np), out_dtype),
        grid_spec=pltpu.PrefetchScalarGridSpec(
            num_scalar_prefetch=0,
            grid=grid,
            in_specs=[
                pl.BlockSpec((tm, tk), lambda i, j, k: (i, k)),
                pl.BlockSpec((tk, tn), lambda i, j, k: (k, j)),
                pl.BlockSpec((1, tn), lambda i, j, k: (0, j)),
            ],
            out_specs=pl.BlockSpec((tm, tn), lambda i, j, k: (i, j)),
            scratch_shapes=[pltpu.VMEM((tm, tn), jnp.float32)],
        ),
        compiler_params=pltpu.CompilerParams(
            dimension_semantics=("parallel", "parallel", "arbitrary"),
            vmem_limit_bytes=32 * 1024 * 1024,
        ),
        cost_estimate=pl.CostEstimate(
            flops=2 * Mp * Np * Kp,
            transcendentals=0,
            bytes_accessed=2 * (Mp * Kp + Kp * Np) + 4 * Np
            + Mp * Np * jnp.dtype(out_dtype).itemsize,
        ),
    )(a_p, w_p, b_p)
    return out[:M, :N]


# ---------------------------------------------------------------------------
# Vector quantizer kernel (fused pre-quant 1x1 conv + VQ), tiled over M
# ---------------------------------------------------------------------------

def _vq_kernel(z_ref, pqw_ref, pqb_ref, e_ref, e2_ref,
               q_ref, loss_ref, perp_ref,
               cnt_ref, sse_ref, *, beta, m_total, tm, n_codes, d_dim):
    i = pl.program_id(0)

    @pl.when(i == 0)
    def _():
        cnt_ref[...] = jnp.zeros_like(cnt_ref)
        sse_ref[...] = jnp.zeros_like(sse_ref)

    # fused pre-quantization 1x1 conv (bf16 MXU, f32 accumulate + bias)
    z = jnp.dot(z_ref[...], pqw_ref[...],
                preferred_element_type=jnp.float32) + pqb_ref[...]     # [tm, D]

    e = e_ref[...]                                                     # [K, D] f32

    # squared distance up to the per-row constant ||z||^2 (doesn't move argmin):
    #   d' = ||e||^2 - 2 z.e ; contract on D without transposing the codebook
    cross = lax.dot_general(z, e, (((1,), (1,)), ((), ())),
                            preferred_element_type=jnp.float32)        # [tm, K]
    d = e2_ref[...] - 2.0 * cross

    # argmin over codes with first-occurrence tie-break
    dmin = jnp.min(d, axis=1, keepdims=True)
    iota_k = lax.broadcasted_iota(jnp.int32, (tm, n_codes), 1)
    cand = jnp.where(d <= dmin, iota_k, n_codes)
    idx = jnp.min(cand, axis=1, keepdims=True)
    enc = (iota_k == idx).astype(jnp.float32)                          # one-hot

    # gather the selected codebook rows via one-hot matmul (MXU)
    q = jnp.dot(enc, e, preferred_element_type=jnp.float32)            # [tm, D]
    q_ref[...] = q.astype(q_ref.dtype)

    # mask rows that are only M-padding
    row = i * tm + lax.broadcasted_iota(jnp.int32, (tm, 1), 0)
    valid = (row < m_total).astype(jnp.float32)                        # [tm, 1]

    diff = (q - z) * valid
    sse_ref[...] += jnp.sum(diff * diff, axis=0, keepdims=True)        # [1, D]
    cnt_ref[...] += jnp.sum(enc * valid, axis=0, keepdims=True)        # [1, K]

    @pl.when(i == pl.num_programs(0) - 1)
    def _():
        mse = jnp.sum(sse_ref[...]) / (m_total * d_dim)
        # forward value of q_latent_loss + beta * e_latent_loss
        # (.detach() only affects gradients)
        loss_ref[0, 0] = (1.0 + beta) * mse
        avg = cnt_ref[...] / m_total
        perp_ref[0, 0] = jnp.exp(-jnp.sum(avg * jnp.log(avg + 1e-10)))


def vector_quantize(z_flat, pq_w, pq_b, codebook, codebook_sq, beta=0.25):
    M, C = z_flat.shape
    Kc, D = codebook.shape
    tm, Mp = _pick_tile(M, 16, 256)
    z_p = jnp.pad(z_flat.astype(jnp.bfloat16), ((0, Mp - M), (0, 0)))

    kern = functools.partial(_vq_kernel, beta=beta, m_total=M, tm=tm,
                             n_codes=Kc, d_dim=D)
    q, loss, perp = pl.pallas_call(
        kern,
        out_shape=(jax.ShapeDtypeStruct((Mp, D), jnp.bfloat16),
                   jax.ShapeDtypeStruct((1, 1), jnp.float32),
                   jax.ShapeDtypeStruct((1, 1), jnp.float32)),
        grid_spec=pltpu.PrefetchScalarGridSpec(
            num_scalar_prefetch=0,
            grid=(Mp // tm,),
            in_specs=[
                pl.BlockSpec((tm, C), lambda i: (i, 0)),     # z stream
                pl.BlockSpec((C, D), lambda i: (0, 0)),      # pre-quant W (resident)
                pl.BlockSpec((1, D), lambda i: (0, 0)),      # pre-quant b
                pl.BlockSpec((Kc, D), lambda i: (0, 0)),     # codebook (resident)
                pl.BlockSpec((1, Kc), lambda i: (0, 0)),     # ||e||^2 (precomputed)
            ],
            out_specs=(
                pl.BlockSpec((tm, D), lambda i: (i, 0)),
                pl.BlockSpec(memory_space=pltpu.MemorySpace.SMEM),
                pl.BlockSpec(memory_space=pltpu.MemorySpace.SMEM),
            ),
            scratch_shapes=[pltpu.VMEM((1, Kc), jnp.float32),   # code counts
                            pltpu.VMEM((1, D), jnp.float32)],   # sum sq. error
        ),
        compiler_params=pltpu.CompilerParams(
            dimension_semantics=("arbitrary",),
            vmem_limit_bytes=32 * 1024 * 1024,
        ),
        cost_estimate=pl.CostEstimate(
            flops=2 * Mp * D * (C + 2 * Kc),
            transcendentals=Kc + 1,
            bytes_accessed=2 * Mp * C + 4 * Kc * D + 2 * Mp * D,
        ),
    )(z_p, pq_w.astype(jnp.bfloat16),
      pq_b.astype(jnp.float32).reshape(1, D),
      codebook.astype(jnp.float32),
      codebook_sq.astype(jnp.float32).reshape(1, Kc))
    return q[:M], loss[0, 0], perp[0, 0]


# ---------------------------------------------------------------------------
# Conv helpers (im2col / interleave glue in JAX, matmuls in Pallas)
# ---------------------------------------------------------------------------

def _im2col(x, kh, kw, stride, pad):
    # x: [B, H, W, C]; pad = (top, bottom, left, right)
    pt, pb, lft, rgt = pad
    x = jnp.pad(x, ((0, 0), (pt, pb), (lft, rgt), (0, 0)))
    B, H, W, C = x.shape
    oh = (H - kh) // stride + 1
    ow = (W - kw) // stride + 1
    cols = []
    for i in range(kh):
        for j in range(kw):
            cols.append(x[:, i:i + stride * oh:stride,
                          j:j + stride * ow:stride, :])
    cols = jnp.concatenate(cols, axis=-1)            # [B, oh, ow, kh*kw*C]
    return cols.reshape(B * oh * ow, kh * kw * C), (B, oh, ow)


def conv2d(x, wmat, bias, kh, kw, stride=1, pad=0, relu=False,
           out_dtype=jnp.bfloat16):
    # x: NHWC (bf16); wmat: pre-laid-out [kh*kw*Cin, Cout] bf16
    if isinstance(pad, int):
        pad = (pad, pad, pad, pad)
    cols, (B, oh, ow) = _im2col(x, kh, kw, stride, pad)
    cout = wmat.shape[1]
    out = matmul_bias(cols, wmat, bias, relu=relu, out_dtype=out_dtype)
    return out.reshape(B, oh, ow, cout)


def conv_transpose2d_s2(x, wmat, bias4, relu=False, out_dtype=jnp.bfloat16):
    """ConvTranspose2d(kernel=4, stride=2, pad=1) via sub-pixel decomposition.

    All four output phases are fused into one matmul: a single 3x3/pad=1
    im2col [B*H*W, 9*Cin] times a phase-packed weight [9*Cin, 4*Cout], then a
    pixel-shuffle interleave to [B, 2H, 2W, Cout]. One pallas_call per layer.
    """
    B, H, W, _ = x.shape
    cout = wmat.shape[1] // 4
    cols, _ = _im2col(x, 3, 3, 1, (1, 1, 1, 1))
    out = matmul_bias(cols, wmat, bias4, relu=relu, out_dtype=out_dtype)
    out = out.reshape(B, H, W, 2, 2, cout)                 # (b, i, j, r, s, c)
    out = jnp.transpose(out, (0, 1, 3, 2, 4, 5))           # (b, i, r, j, s, c)
    return out.reshape(B, 2 * H, 2 * W, cout)


# ---------------------------------------------------------------------------
# Parameter init (weights pre-laid-out for the matmul kernels)
# ---------------------------------------------------------------------------

def _init_conv(key, cout, cin, kh, kw):
    fan_in = cin * kh * kw
    bound = 1.0 / math.sqrt(fan_in)
    k1, k2 = jax.random.split(key)
    w = jax.random.uniform(k1, (cout, cin, kh, kw), jnp.float32, -bound, bound)
    b = jax.random.uniform(k2, (cout,), jnp.float32, -bound, bound)
    return w, b


def _init_convT(key, cin, cout, kh, kw):
    fan_in = cout * kh * kw
    bound = 1.0 / math.sqrt(fan_in)
    k1, k2 = jax.random.split(key)
    w = jax.random.uniform(k1, (cin, cout, kh, kw), jnp.float32, -bound, bound)
    b = jax.random.uniform(k2, (cout,), jnp.float32, -bound, bound)
    return w, b


def _conv_to_matmul(w):
    # [Cout, Cin, kh, kw] -> [kh*kw*Cin, Cout], matching _im2col tap ordering
    cout, cin, kh, kw = w.shape
    return jnp.transpose(w, (2, 3, 1, 0)).reshape(kh * kw * cin, cout)


# output phase r (or s) -> {3x3 window position: original 4-tap kernel index}
_PHASE_TAPS = {0: {0: 3, 1: 1}, 1: {1: 2, 2: 0}}


def _convT_fused_matrix(w):
    """ConvTranspose2d weight [Cin, Cout, 4, 4] -> phase-packed [9*Cin, 4*Cout]
    matmul matrix for stride=2, padding=1 (phase order (0,0),(0,1),(1,0),(1,1)).
    Taps a phase doesn't use stay zero."""
    cin, cout = w.shape[0], w.shape[1]
    wmat = jnp.zeros((9 * cin, 4 * cout), jnp.float32)
    for r in (0, 1):
        for s in (0, 1):
            p = r * 2 + s
            for wh, th in _PHASE_TAPS[r].items():
                for ww, tw in _PHASE_TAPS[s].items():
                    blk = w[:, :, th, tw]                       # [Cin, Cout]
                    k0 = (wh * 3 + ww) * cin
                    wmat = wmat.at[k0:k0 + cin,
                                   p * cout:(p + 1) * cout].set(blk)
    return wmat.astype(jnp.bfloat16)


def init_vqvae_params(key, latent_dim=64, num_embeddings=512, embedding_dim=64):
    ks = jax.random.split(key, 8)
    h = latent_dim
    p = {}
    # Encoder: Conv(3,h/2,4,2,1)+ReLU -> Conv(h/2,h,4,2,1)+ReLU -> Conv(h,h,3,1,1)
    w, b = _init_conv(ks[0], h // 2, 3, 4, 4)
    p["enc1_w"], p["enc1_b"] = _conv_to_matmul(w).astype(jnp.bfloat16), b
    w, b = _init_conv(ks[1], h, h // 2, 4, 4)
    p["enc2_w"], p["enc2_b"] = _conv_to_matmul(w).astype(jnp.bfloat16), b
    w, b = _init_conv(ks[2], h, h, 3, 3)
    p["enc3_w"], p["enc3_b"] = _conv_to_matmul(w).astype(jnp.bfloat16), b
    # pre-quantization 1x1 conv (fused into the VQ kernel): Wpq [h, D]
    w, b = _init_conv(ks[3], embedding_dim, h, 1, 1)
    p["pq_w"] = jnp.transpose(w.reshape(embedding_dim, h)).astype(jnp.bfloat16)
    p["pq_b"] = b
    # codebook (PyTorch-style uniform(-1/K, 1/K) init) + precomputed ||e||^2
    cb = jax.random.uniform(ks[4], (num_embeddings, embedding_dim), jnp.float32,
                            -1.0 / num_embeddings, 1.0 / num_embeddings)
    p["codebook"] = cb
    p["codebook_sq"] = jnp.sum(cb * cb, axis=1).reshape(1, num_embeddings)
    # Decoder: Conv(D,h,3,1,1)+ReLU -> ConvT(h,h/2,4,2,1)+ReLU -> ConvT(h/2,3,4,2,1)
    w, b = _init_conv(ks[5], h, embedding_dim, 3, 3)
    p["dec1_w"], p["dec1_b"] = _conv_to_matmul(w).astype(jnp.bfloat16), b
    w, b = _init_convT(ks[6], h, h // 2, 4, 4)
    p["dec2_w"], p["dec2_b"] = _convT_fused_matrix(w), jnp.tile(b, 4)
    w, b = _init_convT(ks[7], h // 2, 3, 4, 4)
    p["dec3_w"], p["dec3_b"] = _convT_fused_matrix(w), jnp.tile(b, 4)
    return p


# ---------------------------------------------------------------------------
# Model
# ---------------------------------------------------------------------------

@jax.jit
def vqvae_forward(params, x_nchw):
    # NCHW (PyTorch) -> NHWC bf16 for the TPU kernels
    x = jnp.transpose(x_nchw, (0, 2, 3, 1)).astype(jnp.bfloat16)

    # --- Encoder ---
    h1 = conv2d(x, params["enc1_w"], params["enc1_b"], 4, 4,
                stride=2, pad=1, relu=True)
    h2 = conv2d(h1, params["enc2_w"], params["enc2_b"], 4, 4,
                stride=2, pad=1, relu=True)
    z = conv2d(h2, params["enc3_w"], params["enc3_b"], 3, 3,
               stride=1, pad=1, relu=False)

    # --- pre-quant 1x1 conv + Vector Quantizer (single fused Pallas kernel) ---
    B, H, W, C = z.shape
    D = params["codebook"].shape[1]
    q_flat, loss, perplexity = vector_quantize(
        z.reshape(B * H * W, C), params["pq_w"], params["pq_b"],
        params["codebook"], params["codebook_sq"], beta=BETA)
    quantized = q_flat.reshape(B, H, W, D)

    # --- Decoder ---
    d1 = conv2d(quantized, params["dec1_w"], params["dec1_b"], 3, 3,
                stride=1, pad=1, relu=True)
    d2 = conv_transpose2d_s2(d1, params["dec2_w"], params["dec2_b"], relu=True)
    x_recon = conv_transpose2d_s2(d2, params["dec3_w"], params["dec3_b"],
                                  relu=False, out_dtype=jnp.float32)

    # back to NCHW for the PyTorch-equivalent return value
    return jnp.transpose(x_recon, (0, 3, 1, 2)), loss, perplexity


class VQVAE:
    def __init__(self, latent_dim=64, num_embeddings=512, embedding_dim=64,
                 key=None):
        if key is None:
            key = jax.random.PRNGKey(42)
        self.params = init_vqvae_params(key, latent_dim, num_embeddings,
                                        embedding_dim)

    def forward(self, x_nchw):
        return vqvae_forward(self.params, x_nchw)


if __name__ == "__main__":
    x = jax.random.normal(jax.random.PRNGKey(0), (2, 3, 16, 16), jnp.float32)

    model = VQVAE(latent_dim=64, num_embeddings=512, embedding_dim=64,
                  key=jax.random.PRNGKey(42))
    x_recon, loss, perplexity = model.forward(x)
    x_recon, loss, perplexity = jax.block_until_ready(
        (x_recon, loss, perplexity))

    assert x_recon.shape == x.shape
    assert x_recon.dtype == jnp.float32
    assert loss.shape == () and perplexity.shape == ()
    print("KERNEL_OK")
</pallas_src>

<mosaic_0001>
module attributes {stable_mosaic.version = 11 : i64} {
  func.func @_mm_bias_kernel(%arg0: i32, %arg1: i32, %arg2: i32, %arg3: memref<128x128xbf16, #tpu.memory_space<vmem>>, %arg4: memref<128x128xbf16, #tpu.memory_space<vmem>>, %arg5: memref<1x128xf32, #tpu.memory_space<vmem>>, %arg6: memref<128x128xbf16, #tpu.memory_space<vmem>>, %arg7: memref<128x128xf32, #tpu.memory_space<vmem>>) attributes {dimension_semantics = [#tpu.dimension_semantics<parallel>, #tpu.dimension_semantics<parallel>, #tpu.dimension_semantics<arbitrary>], iteration_bounds = array<i64: 1, 1, 1>, scalar_prefetch = 0 : i64, scratch_operands = 1 : i64, tpu.core_type = #tpu.core_type<tc>, window_params = [{transform_indices = @transform_0, window_bounds = array<i64: 128, 128>}, {transform_indices = @transform_1, window_bounds = array<i64: 128, 128>}, {transform_indices = @transform_2, window_bounds = array<i64: 1, 128>}, {transform_indices = @transform_3, window_bounds = array<i64: 128, 128>}]} {
    %c0_i32 = arith.constant 0 : i32
    %0 = arith.cmpi eq, %arg2, %c0_i32 : i32
    %1 = arith.extui %0 : i1 to i32
    %c0_i32_0 = arith.constant 0 : i32
    %2 = arith.cmpi ne, %1, %c0_i32_0 : i32
    scf.if %2 {
      %cst_10 = arith.constant 0.000000e+00 : f32
      %12 = vector.broadcast %cst_10 : f32 to vector<128x128xf32>
      %c0_11 = arith.constant 0 : index
      %c0_12 = arith.constant 0 : index
      %13 = vector.load %arg7[%c0_11, %c0_12] : memref<128x128xf32, #tpu.memory_space<vmem>>, vector<128x128xf32>
      tpu.vector_store %arg7[%c0_11, %c0_12], %12 {strides = array<i32>} : memref<128x128xf32, #tpu.memory_space<vmem>>, vector<128x128xf32>,
    } else {
    }
    %c0 = arith.constant 0 : index
    %c0_1 = arith.constant 0 : index
    %3 = vector.load %arg7[%c0, %c0_1] : memref<128x128xf32, #tpu.memory_space<vmem>>, vector<128x128xf32>
    %c0_2 = arith.constant 0 : index
    %c0_3 = arith.constant 0 : index
    %4 = vector.load %arg3[%c0_2, %c0_3] : memref<128x128xbf16, #tpu.memory_space<vmem>>, vector<128x128xbf16>
    %c0_4 = arith.constant 0 : index
    %c0_5 = arith.constant 0 : index
    %5 = vector.load %arg4[%c0_4, %c0_5] : memref<128x128xbf16, #tpu.memory_space<vmem>>, vector<128x128xbf16>
    %cst = arith.constant dense<0.000000e+00> : vector<128x128xf32>
    %6 = tpu.matmul %4, %5, %cst {dimension_numbers = #tpu.dot_dimension_numbers<[1], [0], [0], [1], [0, 0, 1, 1], [], []>} : vector<128x128xbf16>, vector<128x128xbf16>, vector<128x128xf32> -> vector<128x128xf32>
    %7 = arith.addf %3, %6 : vector<128x128xf32>
    %c0_6 = arith.constant 0 : index
    %c0_7 = arith.constant 0 : index
    %8 = vector.load %arg7[%c0_6, %c0_7] : memref<128x128xf32, #tpu.memory_space<vmem>>, vector<128x128xf32>
    tpu.vector_store %arg7[%c0_6, %c0_7], %7 {strides = array<i32>} : memref<128x128xf32, #tpu.memory_space<vmem>>, vector<128x128xf32>,
    %c0_i32_8 = arith.constant 0 : i32
    %9 = arith.cmpi eq, %arg2, %c0_i32_8 : i32
    %10 = arith.extui %9 : i1 to i32
    %c0_i32_9 = arith.constant 0 : i32
    %11 = arith.cmpi ne, %10, %c0_i32_9 : i32
    scf.if %11 {
      %c0_10 = arith.constant 0 : index
      %c0_11 = arith.constant 0 : index
      %12 = vector.load %arg7[%c0_10, %c0_11] : memref<128x128xf32, #tpu.memory_space<vmem>>, vector<128x128xf32>
      %c0_12 = arith.constant 0 : index
      %c0_13 = arith.constant 0 : index
      %13 = vector.load %arg5[%c0_12, %c0_13] : memref<1x128xf32, #tpu.memory_space<vmem>>, vector<1x128xf32>
      %14 = vector.broadcast %13 : vector<1x128xf32> to vector<128x128xf32>
      %15 = arith.addf %12, %14 : vector<128x128xf32>
      %cst_14 = arith.constant 0.000000e+00 : f32
      %16 = vector.broadcast %cst_14 : f32 to vector<128x128xf32>
      %17 = arith.maximumf %15, %16 : vector<128x128xf32>
      %18 = arith.truncf %17 : vector<128x128xf32> to vector<128x128xbf16>
      %c0_15 = arith.constant 0 : index
      %c0_16 = arith.constant 0 : index
      %19 = vector.load %arg6[%c0_15, %c0_16] : memref<128x128xbf16, #tpu.memory_space<vmem>>, vector<128x128xbf16>
      tpu.vector_store %arg6[%c0_15, %c0_16], %18 {strides = array<i32>} : memref<128x128xbf16, #tpu.memory_space<vmem>>, vector<128x128xbf16>,
    } else {
    }
    return
  }
  func.func @transform_0(%arg0: i32, %arg1: i32, %arg2: i32) -> (i32, i32) {
    %c0_i32 = arith.constant 0 : i32
    return %arg0, %arg2 : i32, i32
  }
  func.func @transform_1(%arg0: i32, %arg1: i32, %arg2: i32) -> (i32, i32) {
    %c0_i32 = arith.constant 0 : i32
    return %arg2, %arg1 : i32, i32
  }
  func.func @transform_2(%arg0: i32, %arg1: i32, %arg2: i32) -> (i32, i32) {
    %c0_i32 = arith.constant 0 : i32
    %c0_i32_0 = arith.constant 0 : i32
    return %c0_i32, %arg1 : i32, i32
  }
  func.func @transform_3(%arg0: i32, %arg1: i32, %arg2: i32) -> (i32, i32) {
    %c0_i32 = arith.constant 0 : i32
    return %arg0, %arg1 : i32, i32
  }
}

module attributes {stable_mosaic.version = 11 : i64} {
  func.func @_mm_bias_kernel(%arg0: i32, %arg1: i32, %arg2: i32, %arg3: memref<32x512xbf16, #tpu.memory_space<vmem>>, %arg4: memref<512x128xbf16, #tpu.memory_space<vmem>>, %arg5: memref<1x128xf32, #tpu.memory_space<vmem>>, %arg6: memref<32x128xbf16, #tpu.memory_space<vmem>>, %arg7: memref<32x128xf32, #tpu.memory_space<vmem>>) attributes {dimension_semantics = [#tpu.dimension_semantics<parallel>, #tpu.dimension_semantics<parallel>, #tpu.dimension_semantics<arbitrary>], iteration_bounds = array<i64: 1, 1, 1>, scalar_prefetch = 0 : i64, scratch_operands = 1 : i64, tpu.core_type = #tpu.core_type<tc>, window_params = [{transform_indices = @transform_0, window_bounds = array<i64: 32, 512>}, {transform_indices = @transform_1, window_bounds = array<i64: 512, 128>}, {transform_indices = @transform_2, window_bounds = array<i64: 1, 128>}, {transform_indices = @transform_3, window_bounds = array<i64: 32, 128>}]} {
    %c0_i32 = arith.constant 0 : i32
    %0 = arith.cmpi eq, %arg2, %c0_i32 : i32
    %1 = arith.extui %0 : i1 to i32
    %c0_i32_0 = arith.constant 0 : i32
    %2 = arith.cmpi ne, %1, %c0_i32_0 : i32
    scf.if %2 {
      %cst_10 = arith.constant 0.000000e+00 : f32
      %12 = vector.broadcast %cst_10 : f32 to vector<32x128xf32>
      %c0_11 = arith.constant 0 : index
      %c0_12 = arith.constant 0 : index
      %13 = vector.load %arg7[%c0_11, %c0_12] : memref<32x128xf32, #tpu.memory_space<vmem>>, vector<32x128xf32>
      tpu.vector_store %arg7[%c0_11, %c0_12], %12 {strides = array<i32>} : memref<32x128xf32, #tpu.memory_space<vmem>>, vector<32x128xf32>,
    } else {
    }
    %c0 = arith.constant 0 : index
    %c0_1 = arith.constant 0 : index
    %3 = vector.load %arg7[%c0, %c0_1] : memref<32x128xf32, #tpu.memory_space<vmem>>, vector<32x128xf32>
    %c0_2 = arith.constant 0 : index
    %c0_3 = arith.constant 0 : index
    %4 = vector.load %arg3[%c0_2, %c0_3] : memref<32x512xbf16, #tpu.memory_space<vmem>>, vector<32x512xbf16>
    %c0_4 = arith.constant 0 : index
    %c0_5 = arith.constant 0 : index
    %5 = vector.load %arg4[%c0_4, %c0_5] : memref<512x128xbf16, #tpu.memory_space<vmem>>, vector<512x128xbf16>
    %cst = arith.constant dense<0.000000e+00> : vector<32x128xf32>
    %6 = tpu.matmul %4, %5, %cst {dimension_numbers = #tpu.dot_dimension_numbers<[1], [0], [0], [1], [0, 0, 1, 1], [], []>} : vector<32x512xbf16>, vector<512x128xbf16>, vector<32x128xf32> -> vector<32x128xf32>
    %7 = arith.addf %3, %6 : vector<32x128xf32>
    %c0_6 = arith.constant 0 : index
    %c0_7 = arith.constant 0 : index
    %8 = vector.load %arg7[%c0_6, %c0_7] : memref<32x128xf32, #tpu.memory_space<vmem>>, vector<32x128xf32>
    tpu.vector_store %arg7[%c0_6, %c0_7], %7 {strides = array<i32>} : memref<32x128xf32, #tpu.memory_space<vmem>>, vector<32x128xf32>,
    %c0_i32_8 = arith.constant 0 : i32
    %9 = arith.cmpi eq, %arg2, %c0_i32_8 : i32
    %10 = arith.extui %9 : i1 to i32
    %c0_i32_9 = arith.constant 0 : i32
    %11 = arith.cmpi ne, %10, %c0_i32_9 : i32
    scf.if %11 {
      %c0_10 = arith.constant 0 : index
      %c0_11 = arith.constant 0 : index
      %12 = vector.load %arg7[%c0_10, %c0_11] : memref<32x128xf32, #tpu.memory_space<vmem>>, vector<32x128xf32>
      %c0_12 = arith.constant 0 : index
      %c0_13 = arith.constant 0 : index
      %13 = vector.load %arg5[%c0_12, %c0_13] : memref<1x128xf32, #tpu.memory_space<vmem>>, vector<1x128xf32>
      %14 = vector.broadcast %13 : vector<1x128xf32> to vector<32x128xf32>
      %15 = arith.addf %12, %14 : vector<32x128xf32>
      %cst_14 = arith.constant 0.000000e+00 : f32
      %16 = vector.broadcast %cst_14 : f32 to vector<32x128xf32>
      %17 = arith.maximumf %15, %16 : vector<32x128xf32>
      %18 = arith.truncf %17 : vector<32x128xf32> to vector<32x128xbf16>
      %c0_15 = arith.constant 0 : index
      %c0_16 = arith.constant 0 : index
      %19 = vector.load %arg6[%c0_15, %c0_16] : memref<32x128xbf16, #tpu.memory_space<vmem>>, vector<32x128xbf16>
      tpu.vector_store %arg6[%c0_15, %c0_16], %18 {strides = array<i32>} : memref<32x128xbf16, #tpu.memory_space<vmem>>, vector<32x128xbf16>,
    } else {
    }
    return
  }
  func.func @transform_0(%arg0: i32, %arg1: i32, %arg2: i32) -> (i32, i32) {
    %c0_i32 = arith.constant 0 : i32
    return %arg0, %arg2 : i32, i32
  }
  func.func @transform_1(%arg0: i32, %arg1: i32, %arg2: i32) -> (i32, i32) {
    %c0_i32 = arith.constant 0 : i32
    return %arg2, %arg1 : i32, i32
  }
  func.func @transform_2(%arg0: i32, %arg1: i32, %arg2: i32) -> (i32, i32) {
    %c0_i32 = arith.constant 0 : i32
    %c0_i32_0 = arith.constant 0 : i32
    return %c0_i32, %arg1 : i32, i32
  }
  func.func @transform_3(%arg0: i32, %arg1: i32, %arg2: i32) -> (i32, i32) {
    %c0_i32 = arith.constant 0 : i32
    return %arg0, %arg1 : i32, i32
  }
}

module attributes {stable_mosaic.version = 11 : i64} {
  func.func @_mm_bias_kernel(%arg0: i32, %arg1: i32, %arg2: i32, %arg3: memref<32x128xbf16, #tpu.memory_space<vmem>>, %arg4: memref<128x128xbf16, #tpu.memory_space<vmem>>, %arg5: memref<1x128xf32, #tpu.memory_space<vmem>>, %arg6: memref<32x128xbf16, #tpu.memory_space<vmem>>, %arg7: memref<32x128xf32, #tpu.memory_space<vmem>>) attributes {dimension_semantics = [#tpu.dimension_semantics<parallel>, #tpu.dimension_semantics<parallel>, #tpu.dimension_semantics<arbitrary>], iteration_bounds = array<i64: 1, 1, 5>, scalar_prefetch = 0 : i64, scratch_operands = 1 : i64, tpu.core_type = #tpu.core_type<tc>, window_params = [{transform_indices = @transform_0, window_bounds = array<i64: 32, 128>}, {transform_indices = @transform_1, window_bounds = array<i64: 128, 128>}, {transform_indices = @transform_2, window_bounds = array<i64: 1, 128>}, {transform_indices = @transform_3, window_bounds = array<i64: 32, 128>}]} {
    %c0_i32 = arith.constant 0 : i32
    %0 = arith.cmpi eq, %arg2, %c0_i32 : i32
    %1 = arith.extui %0 : i1 to i32
    %c0_i32_0 = arith.constant 0 : i32
    %2 = arith.cmpi ne, %1, %c0_i32_0 : i32
    scf.if %2 {
      %cst_9 = arith.constant 0.000000e+00 : f32
      %12 = vector.broadcast %cst_9 : f32 to vector<32x128xf32>
      %c0_10 = arith.constant 0 : index
      %c0_11 = arith.constant 0 : index
      %13 = vector.load %arg7[%c0_10, %c0_11] : memref<32x128xf32, #tpu.memory_space<vmem>>, vector<32x128xf32>
      tpu.vector_store %arg7[%c0_10, %c0_11], %12 {strides = array<i32>} : memref<32x128xf32, #tpu.memory_space<vmem>>, vector<32x128xf32>,
    } else {
    }
    %c0 = arith.constant 0 : index
    %c0_1 = arith.constant 0 : index
    %3 = vector.load %arg7[%c0, %c0_1] : memref<32x128xf32, #tpu.memory_space<vmem>>, vector<32x128xf32>
    %c0_2 = arith.constant 0 : index
    %c0_3 = arith.constant 0 : index
    %4 = vector.load %arg3[%c0_2, %c0_3] : memref<32x128xbf16, #tpu.memory_space<vmem>>, vector<32x128xbf16>
    %c0_4 = arith.constant 0 : index
    %c0_5 = arith.constant 0 : index
    %5 = vector.load %arg4[%c0_4, %c0_5] : memref<128x128xbf16, #tpu.memory_space<vmem>>, vector<128x128xbf16>
    %cst = arith.constant dense<0.000000e+00> : vector<32x128xf32>
    %6 = tpu.matmul %4, %5, %cst {dimension_numbers = #tpu.dot_dimension_numbers<[1], [0], [0], [1], [0, 0, 1, 1], [], []>} : vector<32x128xbf16>, vector<128x128xbf16>, vector<32x128xf32> -> vector<32x128xf32>
    %7 = arith.addf %3, %6 : vector<32x128xf32>
    %c0_6 = arith.constant 0 : index
    %c0_7 = arith.constant 0 : index
    %8 = vector.load %arg7[%c0_6, %c0_7] : memref<32x128xf32, #tpu.memory_space<vmem>>, vector<32x128xf32>
    tpu.vector_store %arg7[%c0_6, %c0_7], %7 {strides = array<i32>} : memref<32x128xf32, #tpu.memory_space<vmem>>, vector<32x128xf32>,
    %c4_i32 = arith.constant 4 : i32
    %9 = arith.cmpi eq, %arg2, %c4_i32 : i32
    %10 = arith.extui %9 : i1 to i32
    %c0_i32_8 = arith.constant 0 : i32
    %11 = arith.cmpi ne, %10, %c0_i32_8 : i32
    scf.if %11 {
      %c0_9 = arith.constant 0 : index
      %c0_10 = arith.constant 0 : index
      %12 = vector.load %arg7[%c0_9, %c0_10] : memref<32x128xf32, #tpu.memory_space<vmem>>, vector<32x128xf32>
      %c0_11 = arith.constant 0 : index
      %c0_12 = arith.constant 0 : index
      %13 = vector.load %arg5[%c0_11, %c0_12] : memref<1x128xf32, #tpu.memory_space<vmem>>, vector<1x128xf32>
      %14 = vector.broadcast %13 : vector<1x128xf32> to vector<32x128xf32>
      %15 = arith.addf %12, %14 : vector<32x128xf32>
      %16 = arith.truncf %15 : vector<32x128xf32> to vector<32x128xbf16>
      %c0_13 = arith.constant 0 : index
      %c0_14 = arith.constant 0 : index
      %17 = vector.load %arg6[%c0_13, %c0_14] : memref<32x128xbf16, #tpu.memory_space<vmem>>, vector<32x128xbf16>
      tpu.vector_store %arg6[%c0_13, %c0_14], %16 {strides = array<i32>} : memref<32x128xbf16, #tpu.memory_space<vmem>>, vector<32x128xbf16>,
    } else {
    }
    return
  }
  func.func @transform_0(%arg0: i32, %arg1: i32, %arg2: i32) -> (i32, i32) {
    %c0_i32 = arith.constant 0 : i32
    return %arg0, %arg2 : i32, i32
  }
  func.func @transform_1(%arg0: i32, %arg1: i32, %arg2: i32) -> (i32, i32) {
    %c0_i32 = arith.constant 0 : i32
    return %arg2, %arg1 : i32, i32
  }
  func.func @transform_2(%arg0: i32, %arg1: i32, %arg2: i32) -> (i32, i32) {
    %c0_i32 = arith.constant 0 : i32
    %c0_i32_0 = arith.constant 0 : i32
    return %c0_i32, %arg1 : i32, i32
  }
  func.func @transform_3(%arg0: i32, %arg1: i32, %arg2: i32) -> (i32, i32) {
    %c0_i32 = arith.constant 0 : i32
    return %arg0, %arg1 : i32, i32
  }
}

module attributes {stable_mosaic.version = 11 : i64} {
  func.func @_mm_bias_kernel(%arg0: i32, %arg1: i32, %arg2: i32, %arg3: memref<32x128xbf16, #tpu.memory_space<vmem>>, %arg4: memref<128x128xbf16, #tpu.memory_space<vmem>>, %arg5: memref<1x128xf32, #tpu.memory_space<vmem>>, %arg6: memref<32x128xbf16, #tpu.memory_space<vmem>>, %arg7: memref<32x128xf32, #tpu.memory_space<vmem>>) attributes {dimension_semantics = [#tpu.dimension_semantics<parallel>, #tpu.dimension_semantics<parallel>, #tpu.dimension_semantics<arbitrary>], iteration_bounds = array<i64: 1, 1, 5>, scalar_prefetch = 0 : i64, scratch_operands = 1 : i64, tpu.core_type = #tpu.core_type<tc>, window_params = [{transform_indices = @transform_0, window_bounds = array<i64: 32, 128>}, {transform_indices = @transform_1, window_bounds = array<i64: 128, 128>}, {transform_indices = @transform_2, window_bounds = array<i64: 1, 128>}, {transform_indices = @transform_3, window_bounds = array<i64: 32, 128>}]} {
    %c0_i32 = arith.constant 0 : i32
    %0 = arith.cmpi eq, %arg2, %c0_i32 : i32
    %1 = arith.extui %0 : i1 to i32
    %c0_i32_0 = arith.constant 0 : i32
    %2 = arith.cmpi ne, %1, %c0_i32_0 : i32
    scf.if %2 {
      %cst_9 = arith.constant 0.000000e+00 : f32
      %12 = vector.broadcast %cst_9 : f32 to vector<32x128xf32>
      %c0_10 = arith.constant 0 : index
      %c0_11 = arith.constant 0 : index
      %13 = vector.load %arg7[%c0_10, %c0_11] : memref<32x128xf32, #tpu.memory_space<vmem>>, vector<32x128xf32>
      tpu.vector_store %arg7[%c0_10, %c0_11], %12 {strides = array<i32>} : memref<32x128xf32, #tpu.memory_space<vmem>>, vector<32x128xf32>,
    } else {
    }
    %c0 = arith.constant 0 : index
    %c0_1 = arith.constant 0 : index
    %3 = vector.load %arg7[%c0, %c0_1] : memref<32x128xf32, #tpu.memory_space<vmem>>, vector<32x128xf32>
    %c0_2 = arith.constant 0 : index
    %c0_3 = arith.constant 0 : index
    %4 = vector.load %arg3[%c0_2, %c0_3] : memref<32x128xbf16, #tpu.memory_space<vmem>>, vector<32x128xbf16>
    %c0_4 = arith.constant 0 : index
    %c0_5 = arith.constant 0 : index
    %5 = vector.load %arg4[%c0_4, %c0_5] : memref<128x128xbf16, #tpu.memory_space<vmem>>, vector<128x128xbf16>
    %cst = arith.constant dense<0.000000e+00> : vector<32x128xf32>
    %6 = tpu.matmul %4, %5, %cst {dimension_numbers = #tpu.dot_dimension_numbers<[1], [0], [0], [1], [0, 0, 1, 1], [], []>} : vector<32x128xbf16>, vector<128x128xbf16>, vector<32x128xf32> -> vector<32x128xf32>
    %7 = arith.addf %3, %6 : vector<32x128xf32>
    %c0_6 = arith.constant 0 : index
    %c0_7 = arith.constant 0 : index
    %8 = vector.load %arg7[%c0_6, %c0_7] : memref<32x128xf32, #tpu.memory_space<vmem>>, vector<32x128xf32>
    tpu.vector_store %arg7[%c0_6, %c0_7], %7 {strides = array<i32>} : memref<32x128xf32, #tpu.memory_space<vmem>>, vector<32x128xf32>,
    %c4_i32 = arith.constant 4 : i32
    %9 = arith.cmpi eq, %arg2, %c4_i32 : i32
    %10 = arith.extui %9 : i1 to i32
    %c0_i32_8 = arith.constant 0 : i32
    %11 = arith.cmpi ne, %10, %c0_i32_8 : i32
    scf.if %11 {
      %c0_9 = arith.constant 0 : index
      %c0_10 = arith.constant 0 : index
      %12 = vector.load %arg7[%c0_9, %c0_10] : memref<32x128xf32, #tpu.memory_space<vmem>>, vector<32x128xf32>
      %c0_11 = arith.constant 0 : index
      %c0_12 = arith.constant 0 : index
      %13 = vector.load %arg5[%c0_11, %c0_12] : memref<1x128xf32, #tpu.memory_space<vmem>>, vector<1x128xf32>
      %14 = vector.broadcast %13 : vector<1x128xf32> to vector<32x128xf32>
      %15 = arith.addf %12, %14 : vector<32x128xf32>
      %cst_13 = arith.constant 0.000000e+00 : f32
      %16 = vector.broadcast %cst_13 : f32 to vector<32x128xf32>
      %17 = arith.maximumf %15, %16 : vector<32x128xf32>
      %18 = arith.truncf %17 : vector<32x128xf32> to vector<32x128xbf16>
      %c0_14 = arith.constant 0 : index
      %c0_15 = arith.constant 0 : index
      %19 = vector.load %arg6[%c0_14, %c0_15] : memref<32x128xbf16, #tpu.memory_space<vmem>>, vector<32x128xbf16>
      tpu.vector_store %arg6[%c0_14, %c0_15], %18 {strides = array<i32>} : memref<32x128xbf16, #tpu.memory_space<vmem>>, vector<32x128xbf16>,
    } else {
    }
    return
  }
  func.func @transform_0(%arg0: i32, %arg1: i32, %arg2: i32) -> (i32, i32) {
    %c0_i32 = arith.constant 0 : i32
    return %arg0, %arg2 : i32, i32
  }
  func.func @transform_1(%arg0: i32, %arg1: i32, %arg2: i32) -> (i32, i32) {
    %c0_i32 = arith.constant 0 : i32
    return %arg2, %arg1 : i32, i32
  }
  func.func @transform_2(%arg0: i32, %arg1: i32, %arg2: i32) -> (i32, i32) {
    %c0_i32 = arith.constant 0 : i32
    %c0_i32_0 = arith.constant 0 : i32
    return %c0_i32, %arg1 : i32, i32
  }
  func.func @transform_3(%arg0: i32, %arg1: i32, %arg2: i32) -> (i32, i32) {
    %c0_i32 = arith.constant 0 : i32
    return %arg0, %arg1 : i32, i32
  }
}

module attributes {stable_mosaic.version = 11 : i64} {
  func.func @_vq_kernel(%arg0: i32, %arg1: memref<32x64xbf16, #tpu.memory_space<vmem>>, %arg2: memref<64x64xbf16, #tpu.memory_space<vmem>>, %arg3: memref<1x64xf32, #tpu.memory_space<vmem>>, %arg4: memref<512x64xf32, #tpu.memory_space<vmem>>, %arg5: memref<1x512xf32, #tpu.memory_space<vmem>>, %arg6: memref<32x64xbf16, #tpu.memory_space<vmem>>, %arg7: memref<1x1xf32, #tpu.memory_space<smem>>, %arg8: memref<1x1xf32, #tpu.memory_space<smem>>, %arg9: memref<1x512xf32, #tpu.memory_space<vmem>>, %arg10: memref<1x64xf32, #tpu.memory_space<vmem>>) attributes {dimension_semantics = [#tpu.dimension_semantics<arbitrary>], iteration_bounds = array<i64: 1>, scalar_prefetch = 0 : i64, scratch_operands = 2 : i64, tpu.core_type = #tpu.core_type<tc>, window_params = [{transform_indices = @transform_0, window_bounds = array<i64: 32, 64>}, {pipeline_mode = #tpu.pipeline_mode<synchronous>, transform_indices = @transform_1, window_bounds = array<i64: 64, 64>}, {pipeline_mode = #tpu.pipeline_mode<synchronous>, transform_indices = @transform_2, window_bounds = array<i64: 1, 64>}, {pipeline_mode = #tpu.pipeline_mode<synchronous>, transform_indices = @transform_3, window_bounds = array<i64: 512, 64>}, {pipeline_mode = #tpu.pipeline_mode<synchronous>, transform_indices = @transform_4, window_bounds = array<i64: 1, 512>}, {transform_indices = @transform_5, window_bounds = array<i64: 32, 64>}, {transform_indices = @transform_6, window_bounds = array<i64: 1, 1>}, {transform_indices = @transform_7, window_bounds = array<i64: 1, 1>}]} {
    %c0_i32 = arith.constant 0 : i32
    %0 = arith.cmpi eq, %arg0, %c0_i32 : i32
    %1 = arith.extui %0 : i1 to i32
    %c0_i32_0 = arith.constant 0 : i32
    %2 = arith.cmpi ne, %1, %c0_i32_0 : i32
    scf.if %2 {
      %cst_30 = arith.constant 0.000000e+00 : f32
      %59 = vector.broadcast %cst_30 : f32 to vector<1x512xf32>
      %c0_31 = arith.constant 0 : index
      %c0_32 = arith.constant 0 : index
      %60 = vector.load %arg9[%c0_31, %c0_32] : memref<1x512xf32, #tpu.memory_space<vmem>>, vector<1x512xf32>
      tpu.vector_store %arg9[%c0_31, %c0_32], %59 {strides = array<i32>} : memref<1x512xf32, #tpu.memory_space<vmem>>, vector<1x512xf32>,
      %cst_33 = arith.constant 0.000000e+00 : f32
      %61 = vector.broadcast %cst_33 : f32 to vector<1x64xf32>
      %c0_34 = arith.constant 0 : index
      %c0_35 = arith.constant 0 : index
      %62 = vector.load %arg10[%c0_34, %c0_35] : memref<1x64xf32, #tpu.memory_space<vmem>>, vector<1x64xf32>
      tpu.vector_store %arg10[%c0_34, %c0_35], %61 {strides = array<i32>} : memref<1x64xf32, #tpu.memory_space<vmem>>, vector<1x64xf32>,
    } else {
    }
    %c0 = arith.constant 0 : index
    %c0_1 = arith.constant 0 : index
    %3 = vector.load %arg1[%c0, %c0_1] : memref<32x64xbf16, #tpu.memory_space<vmem>>, vector<32x64xbf16>
    %c0_2 = arith.constant 0 : index
    %c0_3 = arith.constant 0 : index
    %4 = vector.load %arg2[%c0_2, %c0_3] : memref<64x64xbf16, #tpu.memory_space<vmem>>, vector<64x64xbf16>
    %cst = arith.constant dense<0.000000e+00> : vector<32x64xf32>
    %5 = tpu.matmul %3, %4, %cst {dimension_numbers = #tpu.dot_dimension_numbers<[1], [0], [0], [1], [0, 0, 1, 1], [], []>} : vector<32x64xbf16>, vector<64x64xbf16>, vector<32x64xf32> -> vector<32x64xf32>
    %c0_4 = arith.constant 0 : index
    %c0_5 = arith.constant 0 : index
    %6 = vector.load %arg3[%c0_4, %c0_5] : memref<1x64xf32, #tpu.memory_space<vmem>>, vector<1x64xf32>
    %7 = vector.broadcast %6 : vector<1x64xf32> to vector<32x64xf32>
    %8 = arith.addf %5, %7 : vector<32x64xf32>
    %c0_6 = arith.constant 0 : index
    %c0_7 = arith.constant 0 : index
    %9 = vector.load %arg4[%c0_6, %c0_7] : memref<512x64xf32, #tpu.memory_space<vmem>>, vector<512x64xf32>
    %cst_8 = arith.constant dense<0.000000e+00> : vector<32x512xf32>
    %10 = tpu.matmul %8, %9, %cst_8 {dimension_numbers = #tpu.dot_dimension_numbers<[1], [1], [0], [0], [0, 0, 1, 0], [], []>} : vector<32x64xf32>, vector<512x64xf32>, vector<32x512xf32> -> vector<32x512xf32>
    %c0_9 = arith.constant 0 : index
    %c0_10 = arith.constant 0 : index
    %11 = vector.load %arg5[%c0_9, %c0_10] : memref<1x512xf32, #tpu.memory_space<vmem>>, vector<1x512xf32>
    %cst_11 = arith.constant 2.000000e+00 : f32
    %12 = vector.broadcast %cst_11 : f32 to vector<32x512xf32>
    %13 = arith.mulf %12, %10 : vector<32x512xf32>
    %14 = vector.broadcast %11 : vector<1x512xf32> to vector<32x512xf32>
    %15 = arith.subf %14, %13 : vector<32x512xf32>
    %cst_12 = arith.constant dense<0x7F800000> : vector<32xf32>
    %16 = vector.multi_reduction <minimumf>, %15, %cst_12 [1] : vector<32x512xf32> to vector<32xf32>
    %17 = vector.shape_cast %16 : vector<32xf32> to vector<32x1xf32>
    %18 = tpu.iota {dimensions = array<i32: 1>} : vector<32x512xi32>
    %19 = vector.broadcast %17 : vector<32x1xf32> to vector<32x512xf32>
    %20 = arith.cmpf ole, %15, %19 : vector<32x512xf32>
    %c512_i32 = arith.constant 512 : i32
    %21 = vector.broadcast %c512_i32 : i32 to vector<32x512xi32>
    %22 = arith.select %20, %18, %21 : vector<32x512xi1>, vector<32x512xi32>
    %cst_13 = arith.constant dense<2147483647> : vector<32xi32>
    %23 = vector.multi_reduction <minsi>, %22, %cst_13 [1] : vector<32x512xi32> to vector<32xi32>
    %24 = vector.shape_cast %23 : vector<32xi32> to vector<32x1xi32>
    %25 = vector.broadcast %24 : vector<32x1xi32> to vector<32x512xi32>
    %26 = arith.cmpi eq, %18, %25 : vector<32x512xi32>
    %27 = arith.extui %26 : vector<32x512xi1> to vector<32x512xi32>
    %28 = arith.sitofp %27 : vector<32x512xi32> to vector<32x512xf32>
    %cst_14 = arith.constant dense<0.000000e+00> : vector<32x64xf32>
    %29 = tpu.matmul %28, %9, %cst_14 {dimension_numbers = #tpu.dot_dimension_numbers<[1], [0], [0], [1], [0, 0, 1, 1], [], []>} : vector<32x512xf32>, vector<512x64xf32>, vector<32x64xf32> -> vector<32x64xf32>
    %30 = arith.truncf %29 : vector<32x64xf32> to vector<32x64xbf16>
    %c0_15 = arith.constant 0 : index
    %c0_16 = arith.constant 0 : index
    %31 = vector.load %arg6[%c0_15, %c0_16] : memref<32x64xbf16, #tpu.memory_space<vmem>>, vector<32x64xbf16>
    tpu.vector_store %arg6[%c0_15, %c0_16], %30 {strides = array<i32>} : memref<32x64xbf16, #tpu.memory_space<vmem>>, vector<32x64xbf16>,
    %c32_i32 = arith.constant 32 : i32
    %32 = arith.muli %arg0, %c32_i32 : i32
    %33 = tpu.iota {dimensions = array<i32: 0>} : vector<32x1xi32>
    %34 = vector.broadcast %32 : i32 to vector<32x1xi32>
    %35 = arith.addi %34, %33 : vector<32x1xi32>
    %c32_i32_17 = arith.constant 32 : i32
    %36 = vector.broadcast %c32_i32_17 : i32 to vector<32x1xi32>
    %37 = arith.cmpi slt, %35, %36 : vector<32x1xi32>
    %38 = arith.extui %37 : vector<32x1xi1> to vector<32x1xi32>
    %39 = arith.sitofp %38 : vector<32x1xi32> to vector<32x1xf32>
    %40 = arith.subf %29, %8 : vector<32x64xf32>
    %41 = vector.broadcast %39 : vector<32x1xf32> to vector<32x64xf32>
    %42 = arith.mulf %40, %41 : vector<32x64xf32>
    %c0_18 = arith.constant 0 : index
    %c0_19 = arith.constant 0 : index
    %43 = vector.load %arg10[%c0_18, %c0_19] : memref<1x64xf32, #tpu.memory_space<vmem>>, vector<1x64xf32>
    %44 = arith.mulf %42, %42 : vector<32x64xf32>
    %cst_20 = arith.constant dense<0.000000e+00> : vector<64xf32>
    %45 = vector.multi_reduction <add>, %44, %cst_20 [0] : vector<32x64xf32> to vector<64xf32>
    %46 = vector.shape_cast %45 : vector<64xf32> to vector<1x64xf32>
    %47 = arith.addf %43, %46 : vector<1x64xf32>
    %c0_21 = arith.constant 0 : index
    %c0_22 = arith.constant 0 : index
    %48 = vector.load %arg10[%c0_21, %c0_22] : memref<1x64xf32, #tpu.memory_space<vmem>>, vector<1x64xf32>
    tpu.vector_store %arg10[%c0_21, %c0_22], %47 {strides = array<i32>} : memref<1x64xf32, #tpu.memory_space<vmem>>, vector<1x64xf32>,
    %c0_23 = arith.constant 0 : index
    %c0_24 = arith.constant 0 : index
    %49 = vector.load %arg9[%c0_23, %c0_24] : memref<1x512xf32, #tpu.memory_space<vmem>>, vector<1x512xf32>
    %50 = vector.broadcast %39 : vector<32x1xf32> to vector<32x512xf32>
    %51 = arith.mulf %28, %50 : vector<32x512xf32>
    %cst_25 = arith.constant dense<0.000000e+00> : vector<512xf32>
    %52 = vector.multi_reduction <add>, %51, %cst_25 [0] : vector<32x512xf32> to vector<512xf32>
    %53 = vector.shape_cast %52 : vector<512xf32> to vector<1x512xf32>
    %54 = arith.addf %49, %53 : vector<1x512xf32>
    %c0_26 = arith.constant 0 : index
    %c0_27 = arith.constant 0 : index
    %55 = vector.load %arg9[%c0_26, %c0_27] : memref<1x512xf32, #tpu.memory_space<vmem>>, vector<1x512xf32>
    tpu.vector_store %arg9[%c0_26, %c0_27], %54 {strides = array<i32>} : memref<1x512xf32, #tpu.memory_space<vmem>>, vector<1x512xf32>,
    %c0_i32_28 = arith.constant 0 : i32
    %56 = arith.cmpi eq, %arg0, %c0_i32_28 : i32
    %57 = arith.extui %56 : i1 to i32
    %c0_i32_29 = arith.constant 0 : i32
    %58 = arith.cmpi ne, %57, %c0_i32_29 : i32
    scf.if %58 {
      %c0_30 = arith.constant 0 : index
      %c0_31 = arith.constant 0 : index
      %59 = vector.load %arg10[%c0_30, %c0_31] : memref<1x64xf32, #tpu.memory_space<vmem>>, vector<1x64xf32>
      %60 = vector.shape_cast %59 : vector<1x64xf32> to vector<1x1x64xf32>
      %cst_32 = arith.constant dense<0.000000e+00> : vector<1xf32>
      %61 = vector.multi_reduction <add>, %60, %cst_32 [1, 2] : vector<1x1x64xf32> to vector<1xf32>
      %62 = vector.shape_cast %61 : vector<1xf32> to vector<1x1x1xf32>
      %63 = vector.extract %62[0, 0, 0] : f32 from vector<1x1x1xf32>
      %cst_33 = arith.constant 2.048000e+03 : f32
      %64 = arith.divf %63, %cst_33 : f32
      %cst_34 = arith.constant 1.250000e+00 : f32
      %65 = arith.mulf %cst_34, %64 : f32
      %c0_35 = arith.constant 0 : index
      %c0_36 = arith.constant 0 : index
      %66 = memref.load %arg7[%c0_35, %c0_36] : memref<1x1xf32, #tpu.memory_space<smem>>
      memref.store %65, %arg7[%c0_35, %c0_36] : memref<1x1xf32, #tpu.memory_space<smem>>
      %c0_37 = arith.constant 0 : index
      %c0_38 = arith.constant 0 : index
      %67 = vector.load %arg9[%c0_37, %c0_38] : memref<1x512xf32, #tpu.memory_space<vmem>>, vector<1x512xf32>
      %cst_39 = arith.constant 3.200000e+01 : f32
      %68 = vector.broadcast %cst_39 : f32 to vector<1x512xf32>
      %69 = arith.divf %67, %68 : vector<1x512xf32>
      %cst_40 = arith.constant 1.000000e-10 : f32
      %70 = vector.broadcast %cst_40 : f32 to vector<1x512xf32>
      %71 = arith.addf %69, %70 : vector<1x512xf32>
      %72 = math.log %71 : vector<1x512xf32>
      %73 = arith.mulf %69, %72 : vector<1x512xf32>
      %74 = vector.shape_cast %73 : vector<1x512xf32> to vector<1x1x512xf32>
      %cst_41 = arith.constant dense<0.000000e+00> : vector<1xf32>
      %75 = vector.multi_reduction <add>, %74, %cst_41 [1, 2] : vector<1x1x512xf32> to vector<1xf32>
      %76 = vector.shape_cast %75 : vector<1xf32> to vector<1x1x1xf32>
      %77 = vector.extract %76[0, 0, 0] : f32 from vector<1x1x1xf32>
      %cst_42 = arith.constant 0.000000e+00 : f32
      %78 = arith.subf %cst_42, %77 : f32
      %79 = math.exp %78 : f32
      %c0_43 = arith.constant 0 : index
      %c0_44 = arith.constant 0 : index
      %80 = memref.load %arg8[%c0_43, %c0_44] : memref<1x1xf32, #tpu.memory_space<smem>>
      memref.store %79, %arg8[%c0_43, %c0_44] : memref<1x1xf32, #tpu.memory_space<smem>>
    } else {
    }
    return
  }
  func.func @transform_0(%arg0: i32) -> (i32, i32) {
    %c0_i32 = arith.constant 0 : i32
    %c0_i32_0 = arith.constant 0 : i32
    return %arg0, %c0_i32 : i32, i32
  }
  func.func @transform_1(%arg0: i32) -> (i32, i32) {
    %c0_i32 = arith.constant 0 : i32
    %c0_i32_0 = arith.constant 0 : i32
    %c0_i32_1 = arith.constant 0 : i32
    return %c0_i32, %c0_i32_0 : i32, i32
  }
  func.func @transform_2(%arg0: i32) -> (i32, i32) {
    %c0_i32 = arith.constant 0 : i32
    %c0_i32_0 = arith.constant 0 : i32
    %c0_i32_1 = arith.constant 0 : i32
    return %c0_i32, %c0_i32_0 : i32, i32
  }
  func.func @transform_3(%arg0: i32) -> (i32, i32) {
    %c0_i32 = arith.constant 0 : i32
    %c0_i32_0 = arith.constant 0 : i32
    %c0_i32_1 = arith.constant 0 : i32
    return %c0_i32, %c0_i32_0 : i32, i32
  }
  func.func @transform_4(%arg0: i32) -> (i32, i32) {
    %c0_i32 = arith.constant 0 : i32
    %c0_i32_0 = arith.constant 0 : i32
    %c0_i32_1 = arith.constant 0 : i32
    return %c0_i32, %c0_i32_0 : i32, i32
  }
  func.func @transform_5(%arg0: i32) -> (i32, i32) {
    %c0_i32 = arith.constant 0 : i32
    %c0_i32_0 = arith.constant 0 : i32
    return %arg0, %c0_i32 : i32, i32
  }
  func.func @transform_6(%arg0: i32) -> (i32, i32) {
    %c0_i32 = arith.constant 0 : i32
    %c0_i32_0 = arith.constant 0 : i32
    %c0_i32_1 = arith.constant 0 : i32
    return %c0_i32, %c0_i32_0 : i32, i32
  }
  func.func @transform_7(%arg0: i32) -> (i32, i32) {
    %c0_i32 = arith.constant 0 : i32
    %c0_i32_0 = arith.constant 0 : i32
    %c0_i32_1 = arith.constant 0 : i32
    return %c0_i32, %c0_i32_0 : i32, i32
  }
}

module attributes {stable_mosaic.version = 11 : i64} {
  func.func @_mm_bias_kernel(%arg0: i32, %arg1: i32, %arg2: i32, %arg3: memref<128x384xbf16, #tpu.memory_space<vmem>>, %arg4: memref<384x128xbf16, #tpu.memory_space<vmem>>, %arg5: memref<1x128xf32, #tpu.memory_space<vmem>>, %arg6: memref<128x128xf32, #tpu.memory_space<vmem>>, %arg7: memref<128x128xf32, #tpu.memory_space<vmem>>) attributes {dimension_semantics = [#tpu.dimension_semantics<parallel>, #tpu.dimension_semantics<parallel>, #tpu.dimension_semantics<arbitrary>], iteration_bounds = array<i64: 1, 1, 1>, scalar_prefetch = 0 : i64, scratch_operands = 1 : i64, tpu.core_type = #tpu.core_type<tc>, window_params = [{transform_indices = @transform_0, window_bounds = array<i64: 128, 384>}, {transform_indices = @transform_1, window_bounds = array<i64: 384, 128>}, {transform_indices = @transform_2, window_bounds = array<i64: 1, 128>}, {transform_indices = @transform_3, window_bounds = array<i64: 128, 128>}]} {
    %c0_i32 = arith.constant 0 : i32
    %0 = arith.cmpi eq, %arg2, %c0_i32 : i32
    %1 = arith.extui %0 : i1 to i32
    %c0_i32_0 = arith.constant 0 : i32
    %2 = arith.cmpi ne, %1, %c0_i32_0 : i32
    scf.if %2 {
      %cst_10 = arith.constant 0.000000e+00 : f32
      %12 = vector.broadcast %cst_10 : f32 to vector<128x128xf32>
      %c0_11 = arith.constant 0 : index
      %c0_12 = arith.constant 0 : index
      %13 = vector.load %arg7[%c0_11, %c0_12] : memref<128x128xf32, #tpu.memory_space<vmem>>, vector<128x128xf32>
      tpu.vector_store %arg7[%c0_11, %c0_12], %12 {strides = array<i32>} : memref<128x128xf32, #tpu.memory_space<vmem>>, vector<128x128xf32>,
    } else {
    }
    %c0 = arith.constant 0 : index
    %c0_1 = arith.constant 0 : index
    %3 = vector.load %arg7[%c0, %c0_1] : memref<128x128xf32, #tpu.memory_space<vmem>>, vector<128x128xf32>
    %c0_2 = arith.constant 0 : index
    %c0_3 = arith.constant 0 : index
    %4 = vector.load %arg3[%c0_2, %c0_3] : memref<128x384xbf16, #tpu.memory_space<vmem>>, vector<128x384xbf16>
    %c0_4 = arith.constant 0 : index
    %c0_5 = arith.constant 0 : index
    %5 = vector.load %arg4[%c0_4, %c0_5] : memref<384x128xbf16, #tpu.memory_space<vmem>>, vector<384x128xbf16>
    %cst = arith.constant dense<0.000000e+00> : vector<128x128xf32>
    %6 = tpu.matmul %4, %5, %cst {dimension_numbers = #tpu.dot_dimension_numbers<[1], [0], [0], [1], [0, 0, 1, 1], [], []>} : vector<128x384xbf16>, vector<384x128xbf16>, vector<128x128xf32> -> vector<128x128xf32>
    %7 = arith.addf %3, %6 : vector<128x128xf32>
    %c0_6 = arith.constant 0 : index
    %c0_7 = arith.constant 0 : index
    %8 = vector.load %arg7[%c0_6, %c0_7] : memref<128x128xf32, #tpu.memory_space<vmem>>, vector<128x128xf32>
    tpu.vector_store %arg7[%c0_6, %c0_7], %7 {strides = array<i32>} : memref<128x128xf32, #tpu.memory_space<vmem>>, vector<128x128xf32>,
    %c0_i32_8 = arith.constant 0 : i32
    %9 = arith.cmpi eq, %arg2, %c0_i32_8 : i32
    %10 = arith.extui %9 : i1 to i32
    %c0_i32_9 = arith.constant 0 : i32
    %11 = arith.cmpi ne, %10, %c0_i32_9 : i32
    scf.if %11 {
      %c0_10 = arith.constant 0 : index
      %c0_11 = arith.constant 0 : index
      %12 = vector.load %arg7[%c0_10, %c0_11] : memref<128x128xf32, #tpu.memory_space<vmem>>, vector<128x128xf32>
      %c0_12 = arith.constant 0 : index
      %c0_13 = arith.constant 0 : index
      %13 = vector.load %arg5[%c0_12, %c0_13] : memref<1x128xf32, #tpu.memory_space<vmem>>, vector<1x128xf32>
      %14 = vector.broadcast %13 : vector<1x128xf32> to vector<128x128xf32>
      %15 = arith.addf %12, %14 : vector<128x128xf32>
      %c0_14 = arith.constant 0 : index
      %c0_15 = arith.constant 0 : index
      %16 = vector.load %arg6[%c0_14, %c0_15] : memref<128x128xf32, #tpu.memory_space<vmem>>, vector<128x128xf32>
      tpu.vector_store %arg6[%c0_14, %c0_15], %15 {strides = array<i32>} : memref<128x128xf32, #tpu.memory_space<vmem>>, vector<128x128xf32>,
    } else {
    }
    return
  }
  func.func @transform_0(%arg0: i32, %arg1: i32, %arg2: i32) -> (i32, i32) {
    %c0_i32 = arith.constant 0 : i32
    return %arg0, %arg2 : i32, i32
  }
  func.func @transform_1(%arg0: i32, %arg1: i32, %arg2: i32) -> (i32, i32) {
    %c0_i32 = arith.constant 0 : i32
    return %arg2, %arg1 : i32, i32
  }
  func.func @transform_2(%arg0: i32, %arg1: i32, %arg2: i32) -> (i32, i32) {
    %c0_i32 = arith.constant 0 : i32
    %c0_i32_0 = arith.constant 0 : i32
    return %c0_i32, %arg1 : i32, i32
  }
  func.func @transform_3(%arg0: i32, %arg1: i32, %arg2: i32) -> (i32, i32) {
    %c0_i32 = arith.constant 0 : i32
    return %arg0, %arg1 : i32, i32
  }
}

</mosaic_0001>

<bundles_post_ra>
// kernel: vqvae_forward.7
= control target key start
LH: loop header
LB: loop body
LE: loop exit
PB: predicated region body
PF: predicated region fallthrough
CT: control target
= control target key end

     0   :  { %s597_s1 = inlined_call_operand.vmem [shape: bf16[128,128], index: 1, kind: input, shape index: {}]   ;;  %s598_s2 = inlined_call_operand.vmem [shape: f32[1,128], index: 2, kind: input, shape index: {}]   ;;  %s599_s0 = inlined_call_operand.vmem [shape: bf16[128,128], index: 0, kind: input, shape index: {}]   ;;  %s600_s3 = inlined_call_operand.vmem [shape: bf16[128,128], index: 3, kind: output, shape index: {}]  }
   0x1   :  { %v429_v0 = vld [vmem:[%s597_s1 + $0x38] sm:$0xff]  ;;  %v428_v1 = vld [vmem:[%s597_s1 + $0x30] sm:$0xff]  ;;  %v427_v2 = vld [vmem:[%s597_s1 + $0x28] sm:$0xff] }
   0x2   :  { %178 = vmatpush.bf16.msra.mxu0 %v429_v0  ;;  %477 = vmatpush.bf16.msra.mxu1 %v429_v0  ;;  %v426_v3 = vld [vmem:[%s597_s1 + $0x20] sm:$0xff]  ;;  %v425_v4 = vld [vmem:[%s597_s1 + $0x18] sm:$0xff]  ;;  %v424_v5 = vld [vmem:[%s597_s1 + $0x10] sm:$0xff] }
   0x3   :  { %478 = vmatpush.bf16.msra.mxu2 %v429_v0  ;;  %479 = vmatpush.bf16.msra.mxu3 %v429_v0  ;;  %v423_v6 = vld [vmem:[%s597_s1 + $0x8] sm:$0xff]  ;;  %v422_v7 = vld [vmem:[%s597_s1] sm:$0xff]  ;;  %v416_v9 = vld [vmem:[%s599_s0 + $0x10] sm:$0xff] }
   0x4   :  { %v414_v8 = vld [vmem:[%s599_s0] sm:$0xff]  ;;  %v420_v11 = vld [vmem:[%s599_s0 + $0x30] sm:$0xff]  ;;  %v415_v12 = vld [vmem:[%s599_s0 + $0x8] sm:$0xff] }
   0x5   :  { %v418_v10 = vld [vmem:[%s599_s0 + $0x20] sm:$0xff]  ;;  %v417_v13 = vld [vmem:[%s599_s0 + $0x18] sm:$0xff]  ;;  %v419_v14 = vld [vmem:[%s599_s0 + $0x28] sm:$0xff] }
   0x6   :  { %179 = vmatpush.bf16.msra.mxu0 %v428_v1  ;;  %480 = vmatpush.bf16.msra.mxu1 %v428_v1  ;;  %v421_v15 = vld [vmem:[%s599_s0 + $0x38] sm:$0xff]  ;;  %v501_v18 = vld [vmem:[%s598_s2] ss:$0 sm:$0xff] }
   0x7   :  { %481 = vmatpush.bf16.msra.mxu2 %v428_v1  ;;  %482 = vmatpush.bf16.msra.mxu3 %v428_v1 }
   0xa   :  { %180 = vmatpush.bf16.msra.mxu0 %v427_v2  ;;  %483 = vmatpush.bf16.msra.mxu1 %v427_v2 }
   0xb   :  { %484 = vmatpush.bf16.msra.mxu2 %v427_v2  ;;  %485 = vmatpush.bf16.msra.mxu3 %v427_v2 }
   0xe   :  { %181 = vmatpush.bf16.msra.mxu0 %v426_v3  ;;  %486 = vmatpush.bf16.msra.mxu1 %v426_v3 }
   0xf   :  { %487 = vmatpush.bf16.msra.mxu2 %v426_v3  ;;  %488 = vmatpush.bf16.msra.mxu3 %v426_v3 }
  0x12   :  { %182 = vmatpush.bf16.msra.mxu0 %v425_v4  ;;  %489 = vmatpush.bf16.msra.mxu1 %v425_v4 }
  0x13   :  { %490 = vmatpush.bf16.msra.mxu2 %v425_v4  ;;  %491 = vmatpush.bf16.msra.mxu3 %v425_v4 }
  0x16   :  { %183 = vmatpush.bf16.msra.mxu0 %v424_v5  ;;  %492 = vmatpush.bf16.msra.mxu1 %v424_v5 }
  0x17   :  { %493 = vmatpush.bf16.msra.mxu2 %v424_v5  ;;  %494 = vmatpush.bf16.msra.mxu3 %v424_v5 }
  0x1a   :  { %184 = vmatpush.bf16.msra.mxu0 %v423_v6  ;;  %495 = vmatpush.bf16.msra.mxu1 %v423_v6 }
  0x1b   :  { %496 = vmatpush.bf16.msra.mxu2 %v423_v6  ;;  %497 = vmatpush.bf16.msra.mxu3 %v423_v6 }
  0x1e   :  { %185 = vmatpush.bf16.msra.mxu0 %v422_v7  ;;  %498 = vmatpush.bf16.msra.mxu1 %v422_v7 }
  0x1f   :  { %499 = vmatpush.bf16.msra.mxu2 %v422_v7  ;;  %500 = vmatpush.bf16.msra.mxu3 %v422_v7 }
  0x21   :  { %186 = vmatmul.bf16.vlgmr.msra.gmra.mxu0 %v414_v8  ;;  %196 = vmatmul.bf16.vlgmr.msra.gmra.mxu1 %v416_v9 }
  0x22   :  { %206 = vmatmul.bf16.vlgmr.msra.gmra.mxu2 %v418_v10  ;;  %216 = vmatmul.bf16.vlgmr.msra.gmra.mxu3 %v420_v11 }
  0x31   :  { %191 = vmatmul.bf16.gmra.mxu0 %v415_v12  ;;  %201 = vmatmul.bf16.gmra.mxu1 %v417_v13 }
  0x32   :  { %211 = vmatmul.bf16.gmra.mxu2 %v419_v14  ;;  %221 = vmatmul.bf16.gmra.mxu3 %v421_v15 }
  0x9e   :  { %v187_v16 = vpop.f32.mrf.mxu0  ;;  %v197_v17 = vpop.f32.mrf.mxu1 }
  0x9f   :  { %v282_v19 = vadd.f32 %v501_v18, %v187_v16  ;;  %v286_v20 = vadd.f32 %v501_v18, %v197_v17 }
  0xa1   :  { %v298_v27 = vmax.f32 %v282_v19, 0.0  ;;  %v302_v28 = vmax.f32 %v286_v20, 0.0 }
  0xa5   :  { %v207_v21 = vpop.f32.mrf.mxu2  ;;  %v217_v22 = vpop.f32.mrf.mxu3 }
  0xa6   :  { %v189_v23 = vpop.f32.mrf.mxu0  ;;  %v199_v24 = vpop.f32.mrf.mxu1  ;;  %v290_v33 = vadd.f32 %v501_v18, %v207_v21  ;;  %v294_v34 = vadd.f32 %v501_v18, %v217_v22 }
  0xa7   :  { %v283_v25 = vadd.f32 %v501_v18, %v189_v23  ;;  %v287_v26 = vadd.f32 %v501_v18, %v199_v24 }
  0xa8   :  { %v306_v41 = vmax.f32 %v290_v33, 0.0  ;;  %v310_v42 = vmax.f32 %v294_v34, 0.0 }
  0xa9   :  { %v299_v29 = vmax.f32 %v283_v25, 0.0  ;;  %v303_v30 = vmax.f32 %v287_v26, 0.0 }
  0xab   :  { %v433_v31 = vpack.c.bf16 %v299_v29, %v298_v27  ;;  %v443_v32 = vpack.c.bf16 %v303_v30, %v302_v28 }
  0xad   :  { %434 = vst [vmem:[%s600_s3] sm:$0xff] %v433_v31   ;;  %v209_v35 = vpop.f32.mrf.mxu2  ;;  %v219_v36 = vpop.f32.mrf.mxu3 }
  0xae   :  { %471 = vst [vmem:[%s600_s3 + $0x10] sm:$0xff] %v443_v32   ;;  %v291_v37 = vadd.f32 %v501_v18, %v209_v35  ;;  %v295_v38 = vadd.f32 %v501_v18, %v219_v36  ;;  %v192_v39 = vpop.f32.mrf.mxu0  ;;  %v202_v40 = vpop.f32.mrf.mxu1 }
  0xaf   :  { %v284_v47 = vadd.f32 %v501_v18, %v192_v39  ;;  %v288_v48 = vadd.f32 %v501_v18, %v202_v40 }
  0xb0   :  { %v307_v43 = vmax.f32 %v291_v37, 0.0  ;;  %v311_v44 = vmax.f32 %v295_v38, 0.0 }
  0xb1   :  { %v300_v55 = vmax.f32 %v284_v47, 0.0  ;;  %v304_v56 = vmax.f32 %v288_v48, 0.0 }
  0xb2   :  { %v453_v45 = vpack.c.bf16 %v307_v43, %v306_v41  ;;  %v463_v46 = vpack.c.bf16 %v311_v44, %v310_v42 }
  0xb4   :  { %473 = vst [vmem:[%s600_s3 + $0x20] sm:$0xff] %v453_v45  }
  0xb5   :  { %475 = vst [vmem:[%s600_s3 + $0x30] sm:$0xff] %v463_v46   ;;  %v212_v49 = vpop.f32.mrf.mxu2  ;;  %v222_v50 = vpop.f32.mrf.mxu3 }
  0xb6   :  { %v194_v51 = vpop.f32.mrf.mxu0  ;;  %v204_v52 = vpop.f32.mrf.mxu1  ;;  %v292_v61 = vadd.f32 %v501_v18, %v212_v49  ;;  %v296_v62 = vadd.f32 %v501_v18, %v222_v50 }
  0xb7   :  { %v285_v53 = vadd.f32 %v501_v18, %v194_v51  ;;  %v289_v54 = vadd.f32 %v501_v18, %v204_v52 }
  0xb8   :  { %v308_v3 = vmax.f32 %v292_v61, 0.0  ;;  %v312_v4 = vmax.f32 %v296_v62, 0.0 }
  0xb9   :  { %v301_v57 = vmax.f32 %v285_v53, 0.0  ;;  %v305_v58 = vmax.f32 %v289_v54, 0.0 }
  0xbb   :  { %v438_v59 = vpack.c.bf16 %v301_v57, %v300_v55  ;;  %v448_v60 = vpack.c.bf16 %v305_v58, %v304_v56 }
  0xbd   :  { %470 = vst [vmem:[%s600_s3 + $0x8] sm:$0xff] %v438_v59   ;;  %v214_v63 = vpop.f32.mrf.mxu2  ;;  %v224_v0 = vpop.f32.mrf.mxu3 }
  0xbe   :  { %472 = vst [vmem:[%s600_s3 + $0x18] sm:$0xff] %v448_v60   ;;  %v293_v1 = vadd.f32 %v501_v18, %v214_v63  ;;  %v297_v2 = vadd.f32 %v501_v18, %v224_v0 }
  0xc0   :  { %v309_v5 = vmax.f32 %v293_v1, 0.0  ;;  %v313_v6 = vmax.f32 %v297_v2, 0.0 }
  0xc2   :  { %v458_v7 = vpack.c.bf16 %v309_v5, %v308_v3  ;;  %v468_v8 = vpack.c.bf16 %v313_v6, %v312_v4 }
  0xc4   :  { %474 = vst [vmem:[%s600_s3 + $0x28] sm:$0xff] %v458_v7  }
  0xc5   :  { %476 = vst [vmem:[%s600_s3 + $0x38] sm:$0xff] %v468_v8  }

// kernel: vqvae_forward.8
= control target key start
LH: loop header
LB: loop body
LE: loop exit
PB: predicated region body
PF: predicated region fallthrough
CT: control target
= control target key end

     0   :  { %s830_s1 = inlined_call_operand.vmem [shape: bf16[512,128], index: 1, kind: input, shape index: {}]   ;;  %s831_s0 = inlined_call_operand.vmem [shape: bf16[32,512], index: 0, kind: input, shape index: {}]   ;;  %s832_s2 = inlined_call_operand.vmem [shape: f32[1,128], index: 2, kind: input, shape index: {}]   ;;  %s833_s3 = inlined_call_operand.vmem [shape: bf16[32,128], index: 3, kind: output, shape index: {}]  }
   0x1   :  { %v620_v0 = vld [vmem:[%s830_s1 + $0x38] sm:$0xff]  ;;  %v619_v4 = vld [vmem:[%s830_s1 + $0x30] sm:$0xff]  ;;  %v618_v8 = vld [vmem:[%s830_s1 + $0x28] sm:$0xff] }
   0x2   :  { %v628_v1 = vld [vmem:[%s830_s1 + $0x78] sm:$0xff]  ;;  %330 = vmatpush.bf16.msra.mxu0 %v620_v0  ;;  %v627_v5 = vld [vmem:[%s830_s1 + $0x70] sm:$0xff]  ;;  %v626_v9 = vld [vmem:[%s830_s1 + $0x68] sm:$0xff] }
   0x3   :  { %v636_v2 = vld [vmem:[%s830_s1 + $0xb8] sm:$0xff]  ;;  %349 = vmatpush.bf16.msra.mxu1 %v628_v1  ;;  %v635_v6 = vld [vmem:[%s830_s1 + $0xb0] sm:$0xff]  ;;  %v634_v10 = vld [vmem:[%s830_s1 + $0xa8] sm:$0xff] }
   0x4   :  { %v644_v3 = vld [vmem:[%s830_s1 + $0xf8] sm:$0xff]  ;;  %368 = vmatpush.bf16.msra.mxu2 %v636_v2  ;;  %v643_v7 = vld [vmem:[%s830_s1 + $0xf0] sm:$0xff]  ;;  %v642_v11 = vld [vmem:[%s830_s1 + $0xe8] sm:$0xff] }
   0x5   :  { %387 = vmatpush.bf16.msra.mxu3 %v644_v3  ;;  %v617_v12 = vld [vmem:[%s830_s1 + $0x20] sm:$0xff]  ;;  %v616_v16 = vld [vmem:[%s830_s1 + $0x18] sm:$0xff]  ;;  %v615_v20 = vld [vmem:[%s830_s1 + $0x10] sm:$0xff] }
   0x6   :  { %331 = vmatpush.bf16.msra.mxu0 %v619_v4  ;;  %v625_v13 = vld [vmem:[%s830_s1 + $0x60] sm:$0xff]  ;;  %v624_v17 = vld [vmem:[%s830_s1 + $0x58] sm:$0xff]  ;;  %v623_v21 = vld [vmem:[%s830_s1 + $0x50] sm:$0xff] }
   0x7   :  { %350 = vmatpush.bf16.msra.mxu1 %v627_v5  ;;  %v633_v14 = vld [vmem:[%s830_s1 + $0xa0] sm:$0xff]  ;;  %v632_v18 = vld [vmem:[%s830_s1 + $0x98] sm:$0xff]  ;;  %v631_v22 = vld [vmem:[%s830_s1 + $0x90] sm:$0xff] }
   0x8   :  { %369 = vmatpush.bf16.msra.mxu2 %v635_v6  ;;  %v641_v15 = vld [vmem:[%s830_s1 + $0xe0] sm:$0xff]  ;;  %v640_v19 = vld [vmem:[%s830_s1 + $0xd8] sm:$0xff]  ;;  %v639_v23 = vld [vmem:[%s830_s1 + $0xd0] sm:$0xff] }
   0x9   :  { %388 = vmatpush.bf16.msra.mxu3 %v643_v7  ;;  %v614_v24 = vld [vmem:[%s830_s1 + $0x8] sm:$0xff]  ;;  %v613_v28 = vld [vmem:[%s830_s1] sm:$0xff]  ;;  %v607_v33 = vld [vmem:[%s831_s0 + $0xc] sm:$0xf0] }
   0xa   :  { %332 = vmatpush.bf16.msra.mxu0 %v618_v8  ;;  %v622_v25 = vld [vmem:[%s830_s1 + $0x48] sm:$0xff]  ;;  %v621_v29 = vld [vmem:[%s830_s1 + $0x40] sm:$0xff]  ;;  %v449_v35 = vld [vmem:[%s831_s0 + $0x10] sm:$0xf0] }
   0xb   :  { %351 = vmatpush.bf16.msra.mxu1 %v626_v9  ;;  %v630_v26 = vld [vmem:[%s830_s1 + $0x88] sm:$0xff]  ;;  %v629_v30 = vld [vmem:[%s830_s1 + $0x80] sm:$0xff]  ;;  %v608_v37 = vld [vmem:[%s831_s0 + $0x14] sm:$0xf0] }
   0xc   :  { %370 = vmatpush.bf16.msra.mxu2 %v634_v10  ;;  %v638_v27 = vld [vmem:[%s830_s1 + $0xc8] sm:$0xff]  ;;  %v637_v31 = vld [vmem:[%s830_s1 + $0xc0] sm:$0xff]  ;;  %v457_v39 = vld [vmem:[%s831_s0 + $0x18] sm:$0xf0] }
   0xd   :  { %389 = vmatpush.bf16.msra.mxu3 %v642_v11  ;;  %v447_v32 = vld [vmem:[%s831_s0] sm:$0xf]  ;;  %v605_v34 = vld [vmem:[%s831_s0 + $0x4] sm:$0xf]  ;;  %v455_v36 = vld [vmem:[%s831_s0 + $0x8] sm:$0xf] }
   0xe   :  { %333 = vmatpush.bf16.msra.mxu0 %v617_v12  ;;  %v606_v38 = vld [vmem:[%s831_s0 + $0xc] sm:$0xf]  ;;  %v448_v40 = vor.u32 %v607_v33, %v447_v32  ;;  %v452_v41 = vor.u32 %v605_v34, %v449_v35  ;;  %v456_v42 = vor.u32 %v608_v37, %v455_v36  ;;  %v463_v44 = vld [vmem:[%s831_s0 + $0x20] sm:$0xf]  ;;  %v611_v45 = vld [vmem:[%s831_s0 + $0x2c] sm:$0xf0] }
   0xf   :  { %352 = vmatpush.bf16.msra.mxu1 %v625_v13  ;;  %v460_v43 = vor.u32 %v606_v38, %v457_v39  ;;  %v609_v46 = vld [vmem:[%s831_s0 + $0x24] sm:$0xf]  ;;  %v465_v47 = vld [vmem:[%s831_s0 + $0x30] sm:$0xf0]  ;;  %v471_v48 = vld [vmem:[%s831_s0 + $0x28] sm:$0xf]  ;;  %v464_v52 = vor.u32 %v611_v45, %v463_v44 }
  0x10   :  { %371 = vmatpush.bf16.msra.mxu2 %v633_v14  ;;  %v612_v49 = vld [vmem:[%s831_s0 + $0x34] sm:$0xf0]  ;;  %v610_v50 = vld [vmem:[%s831_s0 + $0x2c] sm:$0xf]  ;;  %v473_v51 = vld [vmem:[%s831_s0 + $0x38] sm:$0xf0]  ;;  %v468_v53 = vor.u32 %v609_v46, %v465_v47 }
  0x11   :  { %390 = vmatpush.bf16.msra.mxu3 %v641_v15  ;;  %v472_v54 = vor.u32 %v612_v49, %v471_v48  ;;  %v476_v55 = vor.u32 %v610_v50, %v473_v51  ;;  %v656_v1 = vld [vmem:[%s832_s2] ss:$0 sm:$0xff] }
  0x12   :  { %334 = vmatpush.bf16.msra.mxu0 %v616_v16 }
  0x13   :  { %353 = vmatpush.bf16.msra.mxu1 %v624_v17 }
  0x14   :  { %372 = vmatpush.bf16.msra.mxu2 %v632_v18 }
  0x15   :  { %391 = vmatpush.bf16.msra.mxu3 %v640_v19 }
  0x16   :  { %335 = vmatpush.bf16.msra.mxu0 %v615_v20 }
  0x17   :  { %354 = vmatpush.bf16.msra.mxu1 %v623_v21 }
  0x18   :  { %373 = vmatpush.bf16.msra.mxu2 %v631_v22 }
  0x19   :  { %392 = vmatpush.bf16.msra.mxu3 %v639_v23 }
  0x1a   :  { %336 = vmatpush.bf16.msra.mxu0 %v614_v24 }
  0x1b   :  { %355 = vmatpush.bf16.msra.mxu1 %v622_v25 }
  0x1c   :  { %374 = vmatpush.bf16.msra.mxu2 %v630_v26 }
  0x1d   :  { %393 = vmatpush.bf16.msra.mxu3 %v638_v27 }
  0x1e   :  { %337 = vmatpush.bf16.msra.mxu0 %v613_v28 }
  0x1f   :  { %356 = vmatpush.bf16.msra.mxu1 %v621_v29 }
  0x20   :  { %375 = vmatpush.bf16.msra.mxu2 %v629_v30 }
  0x21   :  { %394 = vmatpush.bf16.msra.mxu3 %v637_v31  ;;  %338 = vmatmul.bf16.vlgmr.msra.gmra.mxu0 %v448_v40 }
  0x22   :  { %357 = vmatmul.bf16.vlgmr.msra.gmra.mxu1 %v452_v41 }
  0x23   :  { %376 = vmatmul.bf16.vlgmr.msra.gmra.mxu2 %v456_v42 }
  0x24   :  { %395 = vmatmul.bf16.vlgmr.msra.gmra.mxu3 %v460_v43 }
  0x31   :  { %343 = vmatmul.bf16.gmra.mxu0 %v464_v52 }
  0x32   :  { %362 = vmatmul.bf16.gmra.mxu1 %v468_v53 }
  0x33   :  { %381 = vmatmul.bf16.gmra.mxu2 %v472_v54 }
  0x34   :  { %400 = vmatmul.bf16.gmra.mxu3 %v476_v55 }
  0x9e   :  { %v339_v56 = vpop.f32.mrf.mxu0 }
  0x9f   :  { %v358_v57 = vpop.f32.mrf.mxu1 }
  0xa0   :  { %v359_v58 = vadd.f32 %v358_v57, %v339_v56 }
  0xa6   :  { %v377_v59 = vpop.f32.mrf.mxu2  ;;  %v341_v61 = vpop.f32.mrf.mxu0 }
  0xa7   :  { %v396_v60 = vpop.f32.mrf.mxu3  ;;  %v360_v62 = vpop.f32.mrf.mxu1  ;;  %v378_v63 = vadd.f32 %v377_v59, %v359_v58 }
  0xa8   :  { %v361_v2 = vadd.f32 %v360_v62, %v341_v61 }
  0xa9   :  { %v397_v0 = vadd.f32 %v396_v60, %v378_v63 }
  0xab   :  { %v425_v8 = vadd.f32 %v656_v1, %v397_v0 }
  0xad   :  { %v429_v11 = vmax.f32 %v425_v8, 0.0 }
  0xae   :  { %v379_v3 = vpop.f32.mrf.mxu2  ;;  %v344_v6 = vpop.f32.mrf.mxu0 }
  0xaf   :  { %v398_v4 = vpop.f32.mrf.mxu3  ;;  %v380_v5 = vadd.f32 %v379_v3, %v361_v2  ;;  %v363_v7 = vpop.f32.mrf.mxu1 }
  0xb0   :  { %v364_v13 = vadd.f32 %v363_v7, %v344_v6 }
  0xb1   :  { %v399_v9 = vadd.f32 %v398_v4, %v380_v5 }
  0xb3   :  { %v426_v10 = vadd.f32 %v656_v1, %v399_v9 }
  0xb5   :  { %v430_v12 = vmax.f32 %v426_v10, 0.0 }
  0xb6   :  { %v382_v14 = vpop.f32.mrf.mxu2  ;;  %v346_v18 = vpop.f32.mrf.mxu0 }
  0xb7   :  { %v401_v15 = vpop.f32.mrf.mxu3  ;;  %v648_v16 = vpack.c.bf16 %v430_v12, %v429_v11  ;;  %v383_v17 = vadd.f32 %v382_v14, %v364_v13  ;;  %v365_v19 = vpop.f32.mrf.mxu1 }
  0xb8   :  { %v366_v21 = vadd.f32 %v365_v19, %v346_v18 }
  0xb9   :  { %649 = vst [vmem:[%s833_s3] sm:$0xff] %v648_v16   ;;  %v402_v20 = vadd.f32 %v401_v15, %v383_v17 }
  0xbb   :  { %v427_v25 = vadd.f32 %v656_v1, %v402_v20 }
  0xbd   :  { %v431_v28 = vmax.f32 %v427_v25, 0.0 }
  0xbe   :  { %v384_v22 = vpop.f32.mrf.mxu2 }
  0xbf   :  { %v385_v23 = vadd.f32 %v384_v22, %v366_v21  ;;  %v403_v24 = vpop.f32.mrf.mxu3 }
  0xc1   :  { %v404_v26 = vadd.f32 %v403_v24, %v385_v23 }
  0xc3   :  { %v428_v27 = vadd.f32 %v656_v1, %v404_v26 }
  0xc5   :  { %v432_v29 = vmax.f32 %v428_v27, 0.0 }
  0xc7   :  { %v653_v30 = vpack.c.bf16 %v432_v29, %v431_v28 }
  0xc9   :  { %655 = vst [vmem:[%s833_s3 + $0x8] sm:$0xff] %v653_v30  }

// kernel: vqvae_forward.9
= control target key start
LH: loop header
LB: loop body
LE: loop exit
PB: predicated region body
PF: predicated region fallthrough
CT: control target
= control target key end

     0   :  { %s748_s12 = smov 0   ;;  %s750_s13 = smov 0   ;;  %s841_s0 = inlined_call_operand.vmem [shape: bf16[32,640], index: 0, kind: input, shape index: {}]   ;;  %s842_s1 = inlined_call_operand.vmem [shape: bf16[640,128], index: 1, kind: input, shape index: {}]   ;;  %s843_s2 = inlined_call_operand.vmem [shape: f32[1,128], index: 2, kind: input, shape index: {}]   ;;  %s844_s3 = inlined_call_operand.vmem [shape: bf16[32,128], index: 3, kind: output, shape index: {}]  }
   0x1   :  { %s752_s14 = smov 0   ;;  %s754_s15 = smov 0  }
   0x2   :  { %s756_s16 = smov 0  }
   0x3 LB: > { %s25_s17 = sadd.s32 1, %s721_s15  ;;  %p48_p1 = scmp.ne.s32.totalorder %s713_s13, %s709_s12  ;;  %s725_s16 = sphi %s756_s16, %s13_s16   ;;  %s721_s15 = sphi %s754_s15, %s848_s15   ;;  %s717_s14 = sphi %s752_s14, %s847_s14   ;;  %s713_s13 = sphi %s750_s13, %s846_s13   ;;  %s709_s12 = sphi %s748_s12, %s845_s12  }
   0x4   : > { %p26_p0 = scmp.ge.s32.totalorder %s25_s17, 5  ;;  %p49_p2 = scmp.eq.s32.totalorder %s725_s16, 0 }
   0x5   : > { %s41_s19 = sadd.s32 1, %s713_s13  ;;  %p563_p5 = scmp.ge.s32.totalorder %s725_s16, 5 }
   0x6   : > { %s850_s17 = smov (%p26_p0, %s25_s17), 0  ;;  %p50_p3 = por %p49_p2, %p48_p1 }
   0x7   : > { %s37_s18 = ssub.s32 %s721_s15, %s850_s17  ;;  %162 = sbr.rel (%p563_p5) target bundleno = 20 (0x14), region = 20 }
   0x8   : > { %p39_p4 = scmp.eq.s32.totalorder %s37_s18, 0 }
   0xa   : > { %s783_s20 = scalar_select %p39_p4, %s713_s13, %s41_s19  }
   0xc   : > { %165 = sbr.rel (!%p50_p3) target bundleno = 20 (0x14), region = 24  ;;  %s167_s21 = sand.u32 (%p50_p3), 1, %s713_s13  }
   0xd   : > { %s565_s22 = sshll.u32 (%p50_p3), %s721_s15, 2  ;;  %s564_s23 = sshll.u32 (%p50_p3), %s167_s21, 4 }
   0xe   : > { %s174_s26 = scalar_lea.vmem (%p50_p3), %s841_s0, %s565_s22  ;;  %s169_s27 = scalar_lea.vmem (%p50_p3), [#allocation3], %s564_s23 }
   0xf   : > { %v191_v0 = vld [vmem:[%s174_s26] sm:$0xf] (%p50_p3)  ;;  %v193_v1 = vld [vmem:[%s174_s26 + $0x14] sm:$0xf] (%p50_p3)  ;;  %v195_v2 = vld [vmem:[%s174_s26 + $0x28] sm:$0xf] (%p50_p3) }
  0x10   : > { %192 = vst [vmem:[%s169_s27] sm:$0xf] (%p50_p3), %v191_v0  ;;  %v197_v3 = vld [vmem:[%s174_s26 + $0x3c] sm:$0xf] (%p50_p3) }
  0x11   : > { %194 = vst [vmem:[%s169_s27 + $0x4] sm:$0xf] %v193_v1 }
  0x12   : > { %196 = vst [vmem:[%s169_s27 + $0x8] sm:$0xf] %v195_v2 }
  0x13   : > { %198 = vst [vmem:[%s169_s27 + $0xc] sm:$0xf] %v197_v3 }
  0x14 PF: > { %p566_p6 = scmp.ge.s32.totalorder %s725_s16, 1  ;;  %p241_p7 = scmp.lt.s32.totalorder %s725_s16, 6 }
  0x16   : > { %p242_p8 = pnand %p566_p6, %p241_p7 }
  0x17   : > { %s248_s28 = sand.u32 (!%p242_p8), 1, %s709_s12   ;;  %s568_s29 = sshll.u32 (!%p242_p8), %s717_s14, 4 }
  0x18   : > { %245 = sbr.rel (%p242_p8) target bundleno = 221 (0xdd), region = 69  ;;  %s795_s30 = sshll.u32 (!%p242_p8), %s248_s28, 4 }
  0x19   : > { %p287_p9 = scmp.lt.s32.totalorder (!%p242_p8), %s568_s29, 79  ;;  %s250_s8 = scalar_lea.vmem (!%p242_p8), [#allocation3], %s795_s30 }
  0x1a   : > { %p570_p10 = scmp.ne.s32.totalorder (!%p242_p8), %s717_s14, 0 }
  0x1d   : > { %s852_s29 = smov (!%p287_p9, %s568_s29), 79  ;;  %310 = sbr.rel (%p570_p10) target bundleno = 39 (0x27), region = 77 }
  0x1e   : > { %s569_s4 = sshll.u32 %s852_s29, 2 }
  0x1f   : > { %s800_s7 = scalar_lea.vmem %s842_s1, %s569_s4 }
  0x22   : > { %v727_v4 = vmov 0.0  }
  0x23   : > { %311 = vst [vmem:[#allocation2 + $0x10] sm:$0xff] %v727_v4 }
  0x24   : > { %312 = vst [vmem:[#allocation2] sm:$0xff] %v727_v4 }
  0x25   : > { %313 = vst [vmem:[#allocation2 + $0x18] sm:$0xff] %v727_v4 }
  0x26   : > { %314 = vst [vmem:[#allocation2 + $0x8] sm:$0xff] %v727_v4 }
  0x27 PF: > { %v625_v5 = vld [vmem:[%s800_s7 + $0x38] sm:$0xff]  ;;  %v624_v6 = vld [vmem:[%s800_s7 + $0x30] sm:$0xff]  ;;  %v623_v7 = vld [vmem:[%s800_s7 + $0x28] sm:$0xff]  ;;  %p611_p11 = scmp.ne.s32.totalorder %s717_s14, 4 }
  0x28   : > { %399 = vmatpush.bf16.msra.mxu0 %v625_v5  ;;  %637 = vmatpush.bf16.msra.mxu1 %v625_v5  ;;  %v622_v8 = vld [vmem:[%s800_s7 + $0x20] sm:$0xff]  ;;  %v621_v9 = vld [vmem:[%s800_s7 + $0x18] sm:$0xff]  ;;  %v620_v10 = vld [vmem:[%s800_s7 + $0x10] sm:$0xff] }
  0x29   : > { %v619_v11 = vld [vmem:[%s800_s7 + $0x8] sm:$0xff]  ;;  %v618_v12 = vld [vmem:[%s800_s7] sm:$0xff] }
  0x2a   : > { %v616_v13 = vld [vmem:[%s250_s8] sm:$0xff]  ;;  %v617_v14 = vld [vmem:[%s250_s8 + $0x8] sm:$0xff] }
  0x2b   : > { %v315_v15 = vld [vmem:[#allocation2 + $0x10] sm:$0xff]  ;;  %v316_v21 = vld [vmem:[#allocation2] sm:$0xff] }
  0x2c   : > { %400 = vmatpush.bf16.msra.mxu0 %v624_v6  ;;  %638 = vmatpush.bf16.msra.mxu1 %v624_v6  ;;  %v317_v16 = vld [vmem:[#allocation2 + $0x18] sm:$0xff] }
  0x2d   : > { %v318_v22 = vld [vmem:[#allocation2 + $0x8] sm:$0xff] }
  0x30   : > { %401 = vmatpush.bf16.msra.mxu0 %v623_v7  ;;  %639 = vmatpush.bf16.msra.mxu1 %v623_v7 }
  0x34   : > { %402 = vmatpush.bf16.msra.mxu0 %v622_v8  ;;  %640 = vmatpush.bf16.msra.mxu1 %v622_v8 }
  0x38   : > { %403 = vmatpush.bf16.msra.mxu0 %v621_v9  ;;  %641 = vmatpush.bf16.msra.mxu1 %v621_v9 }
  0x3c   : > { %404 = vmatpush.bf16.msra.mxu0 %v620_v10  ;;  %642 = vmatpush.bf16.msra.mxu1 %v620_v10 }
  0x40   : > { %405 = vmatpush.bf16.msra.mxu0 %v619_v11  ;;  %643 = vmatpush.bf16.msra.mxu1 %v619_v11 }
  0x44   : > { %406 = vmatpush.bf16.msra.mxu0 %v618_v12  ;;  %644 = vmatpush.bf16.msra.mxu1 %v618_v12 }
  0x47   : > { %407 = vmatmul.bf16.vlgmr.msra.gmra.mxu0 %v616_v13  ;;  %412 = vmatmul.bf16.vlgmr.msra.gmra.mxu1 %v617_v14 }
  0xc4   : > { %v408_v17 = vpop.f32.mrf.mxu0  ;;  %v413_v18 = vpop.f32.mrf.mxu1 }
  0xc5   : > { %v418_v19 = vadd.f32 %v408_v17, %v315_v15  ;;  %v420_v20 = vadd.f32 %v413_v18, %v317_v16 }
  0xc7   : > { %422 = vst [vmem:[#allocation2 + $0x10] sm:$0xff] %v418_v19 }
  0xc8   : > { %424 = vst [vmem:[#allocation2 + $0x18] sm:$0xff] %v420_v20 }
  0xcc   : > { %v410_v23 = vpop.f32.mrf.mxu0  ;;  %v415_v24 = vpop.f32.mrf.mxu1  ;;  %429 = sbr.rel (%p611_p11) target bundleno = 221 (0xdd), region = 81 }
  0xcd   : > { %v419_v25 = vadd.f32 %v410_v23, %v316_v21  ;;  %v421_v26 = vadd.f32 %v415_v24, %v318_v22 }
  0xcf   : > { %423 = vst [vmem:[#allocation2] sm:$0xff] %v419_v25 }
  0xd0   : > { %425 = vst [vmem:[#allocation2 + $0x8] sm:$0xff] %v421_v26 }
  0xd1   : > { %v430_v27 = vld [vmem:[#allocation2 + $0x10] sm:$0xff]  ;;  %v686_v29 = vld [vmem:[%s843_s2] ss:$0 sm:$0xff]  ;;  %v432_v30 = vld [vmem:[#allocation2 + $0x18] sm:$0xff] }
  0xd2   : > { %v438_v32 = vadd.f32 %v686_v29, %v430_v27  ;;  %v440_v34 = vadd.f32 %v686_v29, %v432_v30 }
  0xd6   : > { %v431_v28 = vld [vmem:[#allocation2] sm:$0xff] }
  0xd7   : > { %v433_v31 = vld [vmem:[#allocation2 + $0x8] sm:$0xff]  ;;  %v439_v33 = vadd.f32 %v686_v29, %v431_v28 }
  0xd8   : > { %v441_v35 = vadd.f32 %v686_v29, %v433_v31 }
  0xd9   : > { %v629_v36 = vpack.c.bf16 %v439_v33, %v438_v32 }
  0xda   : > { %v634_v37 = vpack.c.bf16 %v441_v35, %v440_v34 }
  0xdb   : > { %630 = vst [vmem:[%s844_s3] sm:$0xff] %v629_v36  }
  0xdc   : > { %636 = vst [vmem:[%s844_s3 + $0x8] sm:$0xff] %v634_v37  }
  0xdd PF: > { %s13_s16 = sadd.s32 1, %s725_s16   ;;  %s845_s12 = smov %s713_s13 }
  0xde   : > { %p10_p12 = scmp.ge.s32.totalorder %s13_s16, 7   ;;  %s846_s13 = smov %s783_s20 }
  0xdf   : > { %s847_s14 = smov %s721_s15  ;;  %s848_s15 = smov %s850_s17 }
  0xe0   :  { %12 = sbr.rel (!%p10_p12) target bundleno = 3 (0x3), region = 122 }

// kernel: vqvae_forward.11
= control target key start
LH: loop header
LB: loop body
LE: loop exit
PB: predicated region body
PF: predicated region fallthrough
CT: control target
= control target key end

     0   :  { %s752_s12 = smov 0   ;;  %s754_s13 = smov 0   ;;  %s845_s0 = inlined_call_operand.vmem [shape: bf16[32,640], index: 0, kind: input, shape index: {}]   ;;  %s846_s1 = inlined_call_operand.vmem [shape: bf16[640,128], index: 1, kind: input, shape index: {}]   ;;  %s847_s2 = inlined_call_operand.vmem [shape: f32[1,128], index: 2, kind: input, shape index: {}]   ;;  %s848_s3 = inlined_call_operand.vmem [shape: bf16[32,128], index: 3, kind: output, shape index: {}]  }
   0x1   :  { %s756_s14 = smov 0   ;;  %s758_s15 = smov 0  }
   0x2   :  { %s760_s16 = smov 0  }
   0x3 LB: > { %s25_s17 = sadd.s32 1, %s725_s15  ;;  %p48_p1 = scmp.ne.s32.totalorder %s717_s13, %s713_s12  ;;  %s729_s16 = sphi %s760_s16, %s13_s16   ;;  %s725_s15 = sphi %s758_s15, %s852_s15   ;;  %s721_s14 = sphi %s756_s14, %s851_s14   ;;  %s717_s13 = sphi %s754_s13, %s850_s13   ;;  %s713_s12 = sphi %s752_s12, %s849_s12  }
   0x4   : > { %p26_p0 = scmp.ge.s32.totalorder %s25_s17, 5  ;;  %p49_p2 = scmp.eq.s32.totalorder %s729_s16, 0 }
   0x5   : > { %s41_s19 = sadd.s32 1, %s717_s13  ;;  %p567_p5 = scmp.ge.s32.totalorder %s729_s16, 5 }
   0x6   : > { %s854_s17 = smov (%p26_p0, %s25_s17), 0  ;;  %p50_p3 = por %p49_p2, %p48_p1 }
   0x7   : > { %s37_s18 = ssub.s32 %s725_s15, %s854_s17  ;;  %162 = sbr.rel (%p567_p5) target bundleno = 20 (0x14), region = 20 }
   0x8   : > { %p39_p4 = scmp.eq.s32.totalorder %s37_s18, 0 }
   0xa   : > { %s787_s20 = scalar_select %p39_p4, %s717_s13, %s41_s19  }
   0xc   : > { %165 = sbr.rel (!%p50_p3) target bundleno = 20 (0x14), region = 24  ;;  %s167_s21 = sand.u32 (%p50_p3), 1, %s717_s13  }
   0xd   : > { %s569_s22 = sshll.u32 (%p50_p3), %s725_s15, 2  ;;  %s568_s23 = sshll.u32 (%p50_p3), %s167_s21, 4 }
   0xe   : > { %s174_s26 = scalar_lea.vmem (%p50_p3), %s845_s0, %s569_s22  ;;  %s169_s27 = scalar_lea.vmem (%p50_p3), [#allocation3], %s568_s23 }
   0xf   : > { %v191_v0 = vld [vmem:[%s174_s26] sm:$0xf] (%p50_p3)  ;;  %v193_v1 = vld [vmem:[%s174_s26 + $0x14] sm:$0xf] (%p50_p3)  ;;  %v195_v2 = vld [vmem:[%s174_s26 + $0x28] sm:$0xf] (%p50_p3) }
  0x10   : > { %192 = vst [vmem:[%s169_s27] sm:$0xf] (%p50_p3), %v191_v0  ;;  %v197_v3 = vld [vmem:[%s174_s26 + $0x3c] sm:$0xf] (%p50_p3) }
  0x11   : > { %194 = vst [vmem:[%s169_s27 + $0x4] sm:$0xf] %v193_v1 }
  0x12   : > { %196 = vst [vmem:[%s169_s27 + $0x8] sm:$0xf] %v195_v2 }
  0x13   : > { %198 = vst [vmem:[%s169_s27 + $0xc] sm:$0xf] %v197_v3 }
  0x14 PF: > { %p570_p6 = scmp.ge.s32.totalorder %s729_s16, 1  ;;  %p241_p7 = scmp.lt.s32.totalorder %s729_s16, 6 }
  0x16   : > { %p242_p8 = pnand %p570_p6, %p241_p7 }
  0x17   : > { %s248_s28 = sand.u32 (!%p242_p8), 1, %s713_s12   ;;  %s572_s29 = sshll.u32 (!%p242_p8), %s721_s14, 4 }
  0x18   : > { %245 = sbr.rel (%p242_p8) target bundleno = 223 (0xdf), region = 69  ;;  %s799_s30 = sshll.u32 (!%p242_p8), %s248_s28, 4 }
  0x19   : > { %p287_p9 = scmp.lt.s32.totalorder (!%p242_p8), %s572_s29, 79  ;;  %s250_s8 = scalar_lea.vmem (!%p242_p8), [#allocation3], %s799_s30 }
  0x1a   : > { %p574_p10 = scmp.ne.s32.totalorder (!%p242_p8), %s721_s14, 0 }
  0x1d   : > { %s856_s29 = smov (!%p287_p9, %s572_s29), 79  ;;  %310 = sbr.rel (%p574_p10) target bundleno = 39 (0x27), region = 77 }
  0x1e   : > { %s573_s4 = sshll.u32 %s856_s29, 2 }
  0x1f   : > { %s804_s7 = scalar_lea.vmem %s846_s1, %s573_s4 }
  0x22   : > { %v731_v4 = vmov 0.0  }
  0x23   : > { %311 = vst [vmem:[#allocation2 + $0x10] sm:$0xff] %v731_v4 }
  0x24   : > { %312 = vst [vmem:[#allocation2] sm:$0xff] %v731_v4 }
  0x25   : > { %313 = vst [vmem:[#allocation2 + $0x18] sm:$0xff] %v731_v4 }
  0x26   : > { %314 = vst [vmem:[#allocation2 + $0x8] sm:$0xff] %v731_v4 }
  0x27 PF: > { %v629_v5 = vld [vmem:[%s804_s7 + $0x38] sm:$0xff]  ;;  %v628_v6 = vld [vmem:[%s804_s7 + $0x30] sm:$0xff]  ;;  %v627_v7 = vld [vmem:[%s804_s7 + $0x28] sm:$0xff]  ;;  %p615_p11 = scmp.ne.s32.totalorder %s721_s14, 4 }
  0x28   : > { %399 = vmatpush.bf16.msra.mxu0 %v629_v5  ;;  %641 = vmatpush.bf16.msra.mxu1 %v629_v5  ;;  %v626_v8 = vld [vmem:[%s804_s7 + $0x20] sm:$0xff]  ;;  %v625_v9 = vld [vmem:[%s804_s7 + $0x18] sm:$0xff]  ;;  %v624_v10 = vld [vmem:[%s804_s7 + $0x10] sm:$0xff] }
  0x29   : > { %v623_v11 = vld [vmem:[%s804_s7 + $0x8] sm:$0xff]  ;;  %v622_v12 = vld [vmem:[%s804_s7] sm:$0xff] }
  0x2a   : > { %v620_v13 = vld [vmem:[%s250_s8] sm:$0xff]  ;;  %v621_v14 = vld [vmem:[%s250_s8 + $0x8] sm:$0xff] }
  0x2b   : > { %v315_v15 = vld [vmem:[#allocation2 + $0x10] sm:$0xff]  ;;  %v316_v21 = vld [vmem:[#allocation2] sm:$0xff] }
  0x2c   : > { %400 = vmatpush.bf16.msra.mxu0 %v628_v6  ;;  %642 = vmatpush.bf16.msra.mxu1 %v628_v6  ;;  %v317_v16 = vld [vmem:[#allocation2 + $0x18] sm:$0xff] }
  0x2d   : > { %v318_v22 = vld [vmem:[#allocation2 + $0x8] sm:$0xff] }
  0x30   : > { %401 = vmatpush.bf16.msra.mxu0 %v627_v7  ;;  %643 = vmatpush.bf16.msra.mxu1 %v627_v7 }
  0x34   : > { %402 = vmatpush.bf16.msra.mxu0 %v626_v8  ;;  %644 = vmatpush.bf16.msra.mxu1 %v626_v8 }
  0x38   : > { %403 = vmatpush.bf16.msra.mxu0 %v625_v9  ;;  %645 = vmatpush.bf16.msra.mxu1 %v625_v9 }
  0x3c   : > { %404 = vmatpush.bf16.msra.mxu0 %v624_v10  ;;  %646 = vmatpush.bf16.msra.mxu1 %v624_v10 }
  0x40   : > { %405 = vmatpush.bf16.msra.mxu0 %v623_v11  ;;  %647 = vmatpush.bf16.msra.mxu1 %v623_v11 }
  0x44   : > { %406 = vmatpush.bf16.msra.mxu0 %v622_v12  ;;  %648 = vmatpush.bf16.msra.mxu1 %v622_v12 }
  0x47   : > { %407 = vmatmul.bf16.vlgmr.msra.gmra.mxu0 %v620_v13  ;;  %412 = vmatmul.bf16.vlgmr.msra.gmra.mxu1 %v621_v14 }
  0xc4   : > { %v408_v17 = vpop.f32.mrf.mxu0  ;;  %v413_v18 = vpop.f32.mrf.mxu1 }
  0xc5   : > { %v418_v19 = vadd.f32 %v408_v17, %v315_v15  ;;  %v420_v20 = vadd.f32 %v413_v18, %v317_v16 }
  0xc7   : > { %422 = vst [vmem:[#allocation2 + $0x10] sm:$0xff] %v418_v19 }
  0xc8   : > { %424 = vst [vmem:[#allocation2 + $0x18] sm:$0xff] %v420_v20 }
  0xcc   : > { %v410_v23 = vpop.f32.mrf.mxu0  ;;  %v415_v24 = vpop.f32.mrf.mxu1  ;;  %429 = sbr.rel (%p615_p11) target bundleno = 223 (0xdf), region = 81 }
  0xcd   : > { %v419_v25 = vadd.f32 %v410_v23, %v316_v21  ;;  %v421_v26 = vadd.f32 %v415_v24, %v318_v22 }
  0xcf   : > { %423 = vst [vmem:[#allocation2] sm:$0xff] %v419_v25 }
  0xd0   : > { %425 = vst [vmem:[#allocation2 + $0x8] sm:$0xff] %v421_v26 }
  0xd1   : > { %v430_v27 = vld [vmem:[#allocation2 + $0x10] sm:$0xff]  ;;  %v690_v29 = vld [vmem:[%s847_s2] ss:$0 sm:$0xff]  ;;  %v432_v30 = vld [vmem:[#allocation2 + $0x18] sm:$0xff] }
  0xd2   : > { %v438_v32 = vadd.f32 %v690_v29, %v430_v27  ;;  %v440_v34 = vadd.f32 %v690_v29, %v432_v30 }
  0xd4   : > { %v442_v36 = vmax.f32 %v438_v32, 0.0  ;;  %v444_v38 = vmax.f32 %v440_v34, 0.0 }
  0xd6   : > { %v431_v28 = vld [vmem:[#allocation2] sm:$0xff] }
  0xd7   : > { %v433_v31 = vld [vmem:[#allocation2 + $0x8] sm:$0xff]  ;;  %v439_v33 = vadd.f32 %v690_v29, %v431_v28 }
  0xd8   : > { %v441_v35 = vadd.f32 %v690_v29, %v433_v31 }
  0xd9   : > { %v443_v37 = vmax.f32 %v439_v33, 0.0 }
  0xda   : > { %v445_v39 = vmax.f32 %v441_v35, 0.0 }
  0xdb   : > { %v633_v40 = vpack.c.bf16 %v443_v37, %v442_v36 }
  0xdc   : > { %v638_v41 = vpack.c.bf16 %v445_v39, %v444_v38 }
  0xdd   : > { %634 = vst [vmem:[%s848_s3] sm:$0xff] %v633_v40  }
  0xde   : > { %640 = vst [vmem:[%s848_s3 + $0x8] sm:$0xff] %v638_v41  }
  0xdf PF: > { %s13_s16 = sadd.s32 1, %s729_s16   ;;  %s849_s12 = smov %s717_s13 }
  0xe0   : > { %p10_p12 = scmp.ge.s32.totalorder %s13_s16, 7   ;;  %s850_s13 = smov %s787_s20 }
  0xe1   : > { %s851_s14 = smov %s725_s15  ;;  %s852_s15 = smov %s854_s17 }
  0xe2   :  { %12 = sbr.rel (!%p10_p12) target bundleno = 3 (0x3), region = 122 }

// kernel: vqvae_forward.10
= control target key start
LH: loop header
LB: loop body
LE: loop exit
PB: predicated region body
PF: predicated region fallthrough
CT: control target
= control target key end

     0   :  { %13 = vsyncpa [#allocation5], 0  ;;  %vm87_vm0 = vcmask 523264   ;;  %s2166_s0 = inlined_call_operand.vmem [shape: bf16[32,64], index: 0, kind: input, shape index: {}]   ;;  %s2167_s1 = inlined_call_operand.vmem [shape: bf16[64,64], index: 1, kind: input, shape index: {}]   ;;  %s2168_s2 = inlined_call_operand.vmem [shape: f32[1,64], index: 2, kind: input, shape index: {}]   ;;  %s2169_s3 = inlined_call_operand.vmem [shape: f32[512,64], index: 3, kind: input, shape index: {}]   ;;  %s2170_s4 = inlined_call_operand.vmem [shape: f32[1,512], index: 4, kind: input, shape index: {}]   ;;  %s2171_s5 = inlined_call_operand.vmem [shape: bf16[32,64], index: 5, kind: output, shape index: {0}]   ;;  %s2172_s6 = inlined_call_operand.hbm [shape: f32[1,1], index: 6, kind: output, shape index: {1}]   ;;  %s2173_s7 = inlined_call_operand.hbm [shape: f32[1,1], index: 7, kind: output, shape index: {2}]  }
   0x1   :  { %v1221_v0 = vld [vmem:[%s2167_s1 + $0x18] sm:$0xff]  ;;  %v1220_v1 = vld [vmem:[%s2167_s1 + $0x10] sm:$0xff]  ;;  %v1219_v8 = vld [vmem:[%s2167_s1 + $0x8] sm:$0xff] }
   0x2   :  { %98 = vmatpush.bf16.msra.mxu0 %v1221_v0  ;;  %v1344_v2 = vld [vmem:[%s2169_s3 + $0x78] sm:$0xff]  ;;  %v1365_v5 = vld [vmem:[%s2169_s3 + $0x70] sm:$0xff]  ;;  %v1389_v9 = vld [vmem:[%s2169_s3 + $0x68] sm:$0xff] }
   0x3   :  { %v1349_v3 = vld [vmem:[%s2169_s3 + $0xf8] sm:$0xff]  ;;  %1104 = vmatpush.xpose.msk.msra.mxu1 %vm87_vm0, %v1344_v2  ;;  %v1370_v6 = vld [vmem:[%s2169_s3 + $0xf0] sm:$0xff]  ;;  %v1394_v10 = vld [vmem:[%s2169_s3 + $0xe8] sm:$0xff] }
   0x4   :  { %v1354_v4 = vld [vmem:[%s2169_s3 + $0x178] sm:$0xff]  ;;  %1124 = vmatpush.xpose.msk.msra.mxu2 %vm87_vm0, %v1349_v3  ;;  %v1375_v7 = vld [vmem:[%s2169_s3 + $0x170] sm:$0xff]  ;;  %v1399_v11 = vld [vmem:[%s2169_s3 + $0x168] sm:$0xff] }
   0x5   :  { %1144 = vmatpush.xpose.msk.msra.mxu3 %vm87_vm0, %v1354_v4  ;;  %v1218_v12 = vld [vmem:[%s2167_s1] sm:$0xff]  ;;  %v1411_v13 = vld [vmem:[%s2169_s3 + $0x1f8] sm:$0xff] }
   0x6   :  { %99 = vmatpush.bf16.msra.mxu0 %v1220_v1  ;;  %v1418_v14 = vld [vmem:[%s2169_s3 + $0x60] sm:$0xff] }
   0x7   :  { %1105 = vmatpush.xpose.msk.msra.mxu1 %vm87_vm0, %v1365_v5  ;;  %v1216_v15 = vld [vmem:[%s2166_s0] sm:$0xff] }
   0x8   :  { %1125 = vmatpush.xpose.msk.msra.mxu2 %vm87_vm0, %v1370_v6  ;;  %v1426_v16 = vld [vmem:[%s2169_s3 + $0xe0] sm:$0xff] }
   0x9   :  { %1145 = vmatpush.xpose.msk.msra.mxu3 %vm87_vm0, %v1375_v7  ;;  %v1431_v17 = vld [vmem:[%s2169_s3 + $0x160] sm:$0xff] }
   0xa   :  { %100 = vmatpush.bf16.msra.mxu0 %v1219_v8 }
   0xb   :  { %1106 = vmatpush.xpose.msk.msra.mxu1 %vm87_vm0, %v1389_v9 }
   0xc   :  { %1126 = vmatpush.xpose.msk.msra.mxu2 %vm87_vm0, %v1394_v10 }
   0xd   :  { %1146 = vmatpush.xpose.msk.msra.mxu3 %vm87_vm0, %v1399_v11 }
   0xe   :  { %101 = vmatpush.bf16.msra.mxu0 %v1218_v12 }
   0xf   :  { %14 = vsyncpa [#allocation7], 0  ;;  %1107 = vmatpush.xpose.msk.msra.mxu1 %vm87_vm0, %v1418_v14  ;;  %v1440_v18 = vld [vmem:[%s2169_s3 + $0x1f0] sm:$0xff]  ;;  %v1449_v19 = vld [vmem:[%s2169_s3 + $0x58] sm:$0xff]  ;;  %s1052_s28 = sshll.u32 %s2172_s6, 4  ;;  %s1293_s10 = smov [#allocation4]   ;;  %s1053_s28 = int_to_ptr.hbm [resolvable:$true] %s1052_s28 }
  0x10   :  { %1127 = vmatpush.xpose.msk.msra.mxu2 %vm87_vm0, %v1426_v16  ;;  %v1455_v20 = vld [vmem:[%s2169_s3 + $0xd8] sm:$0xff]  ;;  %v1469_v22 = vld [vmem:[%s2169_s3 + $0x1e8] sm:$0xff]  ;;  %v1478_v23 = vld [vmem:[%s2169_s3 + $0x50] sm:$0xff]  ;;  %s1061_s13 = sshll.u32 %s2173_s7, 4  ;;  %s1294_s14 = smov [#allocation6]   ;;  %s1062_s13 = int_to_ptr.hbm [resolvable:$true] %s1061_s13 }
  0x11   :  { %1147 = vmatpush.xpose.msk.msra.mxu3 %vm87_vm0, %v1431_v17  ;;  %1102 = vmatmul.msk.bf16.vlgmr.msra.gmra.mxu0 %vm87_vm0, %v1216_v15  ;;  %v1460_v21 = vld [vmem:[%s2169_s3 + $0x158] sm:$0xff]  ;;  %v1483_v24 = vld [vmem:[%s2169_s3 + $0xd0] sm:$0xff]  ;;  %v1497_v26 = vld [vmem:[%s2169_s3 + $0x1e0] sm:$0xff] }
  0x12   :  { %1164 = vmatpush.xpose.msk.msrb.mxu0 %vm87_vm0, %v1411_v13  ;;  %v1488_v25 = vld [vmem:[%s2169_s3 + $0x150] sm:$0xff]  ;;  %v1506_v27 = vld [vmem:[%s2169_s3 + $0x48] sm:$0xff]  ;;  %v1525_v30 = vld [vmem:[%s2169_s3 + $0x1d8] sm:$0xff] }
  0x13   :  { %1108 = vmatpush.xpose.msk.msra.mxu1 %vm87_vm0, %v1449_v19  ;;  %v1511_v28 = vld [vmem:[%s2169_s3 + $0xc8] sm:$0xff]  ;;  %v1534_v31 = vld [vmem:[%s2169_s3 + $0x40] sm:$0xff]  ;;  %v1556_v35 = vld [vmem:[%s2169_s3 + $0x1d0] sm:$0xff] }
  0x14   :  { %1128 = vmatpush.xpose.msk.msra.mxu2 %vm87_vm0, %v1455_v20  ;;  %v1516_v29 = vld [vmem:[%s2169_s3 + $0x148] sm:$0xff]  ;;  %v1542_v33 = vld [vmem:[%s2169_s3 + $0xc0] sm:$0xff]  ;;  %v1565_v36 = vld [vmem:[%s2169_s3 + $0x38] sm:$0xff] }
  0x15   :  { %1148 = vmatpush.xpose.msk.msra.mxu3 %vm87_vm0, %v1460_v21  ;;  %v1217_v32 = vld [vmem:[%s2166_s0 + $0x8] sm:$0xff]  ;;  %v1547_v34 = vld [vmem:[%s2169_s3 + $0x140] sm:$0xff]  ;;  %v1571_v37 = vld [vmem:[%s2169_s3 + $0xb8] sm:$0xff] }
  0x16   :  { %1165 = vmatpush.xpose.msk.msrb.mxu0 %vm87_vm0, %v1440_v18  ;;  %v1576_v38 = vld [vmem:[%s2169_s3 + $0x138] sm:$0xff]  ;;  %v1585_v39 = vld [vmem:[%s2169_s3 + $0x1c8] sm:$0xff]  ;;  %v1594_v40 = vld [vmem:[%s2169_s3 + $0x30] sm:$0xff] }
  0x17   :  { %1109 = vmatpush.xpose.msk.msra.mxu1 %vm87_vm0, %v1478_v23  ;;  %v1599_v41 = vld [vmem:[%s2169_s3 + $0xb0] sm:$0xff]  ;;  %v1613_v43 = vld [vmem:[%s2169_s3 + $0x1c0] sm:$0xff]  ;;  %v1622_v44 = vld [vmem:[%s2169_s3 + $0x28] sm:$0xff] }
  0x18   :  { %1129 = vmatpush.xpose.msk.msra.mxu2 %vm87_vm0, %v1483_v24  ;;  %v1604_v42 = vld [vmem:[%s2169_s3 + $0x130] sm:$0xff]  ;;  %v1627_v45 = vld [vmem:[%s2169_s3 + $0xa8] sm:$0xff]  ;;  %v1641_v47 = vld [vmem:[%s2169_s3 + $0x1b8] sm:$0xff] }
  0x19   :  { %1149 = vmatpush.xpose.msk.msra.mxu3 %vm87_vm0, %v1488_v25  ;;  %v1632_v46 = vld [vmem:[%s2169_s3 + $0x128] sm:$0xff]  ;;  %v1650_v48 = vld [vmem:[%s2169_s3 + $0x20] sm:$0xff]  ;;  %v1669_v51 = vld [vmem:[%s2169_s3 + $0x1b0] sm:$0xff] }
  0x1a   :  { %1166 = vmatpush.xpose.msk.msrb.mxu0 %vm87_vm0, %v1469_v22  ;;  %v1655_v49 = vld [vmem:[%s2169_s3 + $0xa0] sm:$0xff]  ;;  %v1678_v52 = vld [vmem:[%s2169_s3 + $0x18] sm:$0xff]  ;;  %v1697_v55 = vld [vmem:[%s2169_s3 + $0x1a8] sm:$0xff] }
  0x1b   :  { %1110 = vmatpush.xpose.msk.msra.mxu1 %vm87_vm0, %v1506_v27  ;;  %v1660_v50 = vld [vmem:[%s2169_s3 + $0x120] sm:$0xff]  ;;  %v1683_v53 = vld [vmem:[%s2169_s3 + $0x98] sm:$0xff]  ;;  %v1706_v56 = vld [vmem:[%s2169_s3 + $0x10] sm:$0xff] }
  0x1c   :  { %1130 = vmatpush.xpose.msk.msra.mxu2 %vm87_vm0, %v1511_v28  ;;  %v1688_v54 = vld [vmem:[%s2169_s3 + $0x118] sm:$0xff]  ;;  %v1711_v57 = vld [vmem:[%s2169_s3 + $0x90] sm:$0xff]  ;;  %v1725_v59 = vld [vmem:[%s2169_s3 + $0x1a0] sm:$0xff] }
  0x1d   :  { %1150 = vmatpush.xpose.msk.msra.mxu3 %vm87_vm0, %v1516_v29  ;;  %v1716_v58 = vld [vmem:[%s2169_s3 + $0x110] sm:$0xff]  ;;  %v1734_v60 = vld [vmem:[%s2169_s3 + $0x8] sm:$0xff]  ;;  %v1753_v63 = vld [vmem:[%s2169_s3 + $0x198] sm:$0xff] }
  0x1e   :  { %1167 = vmatpush.xpose.msk.msrb.mxu0 %vm87_vm0, %v1497_v26  ;;  %v1739_v61 = vld [vmem:[%s2169_s3 + $0x88] sm:$0xff]  ;;  %v1764_v0 = vld [vmem:[%s2169_s3 + $0x190] sm:$0xff]  ;;  %v1778_v8 = vld [vmem:[%s2169_s3] sm:$0xff] }
  0x1f   :  { %1111 = vmatpush.xpose.msk.msra.mxu1 %vm87_vm0, %v1534_v31  ;;  %v1744_v62 = vld [vmem:[%s2169_s3 + $0x108] sm:$0xff]  ;;  %v1783_v12 = vld [vmem:[%s2169_s3 + $0x80] sm:$0xff] }
  0x20   :  { %1131 = vmatpush.xpose.msk.msra.mxu2 %vm87_vm0, %v1542_v33  ;;  %v1771_v1 = vld [vmem:[%s2169_s3 + $0x188] sm:$0xff]  ;;  %v1788_v15 = vld [vmem:[%s2169_s3 + $0x100] sm:$0xff] }
  0x21   :  { %1151 = vmatpush.xpose.msk.msra.mxu3 %vm87_vm0, %v1547_v34  ;;  %1103 = vmatmul.msk.bf16.gmra.mxu0 %vm87_vm0, %v1217_v32  ;;  %v1797_v32 = vld [vmem:[%s2169_s3 + $0x180] sm:$0xff] }
  0x22   :  { %1168 = vmatpush.xpose.msk.msrb.mxu0 %vm87_vm0, %v1525_v30 }
  0x23   :  { %1112 = vmatpush.xpose.msk.msra.mxu1 %vm87_vm0, %v1565_v36 }
  0x24   :  { %1132 = vmatpush.xpose.msk.msra.mxu2 %vm87_vm0, %v1571_v37 }
  0x25   :  { %1152 = vmatpush.xpose.msk.msra.mxu3 %vm87_vm0, %v1576_v38 }
  0x26   :  { %1169 = vmatpush.xpose.msk.msrb.mxu0 %vm87_vm0, %v1556_v35 }
  0x27   :  { %1113 = vmatpush.xpose.msk.msra.mxu1 %vm87_vm0, %v1594_v40 }
  0x28   :  { %1133 = vmatpush.xpose.msk.msra.mxu2 %vm87_vm0, %v1599_v41 }
  0x29   :  { %1153 = vmatpush.xpose.msk.msra.mxu3 %vm87_vm0, %v1604_v42 }
  0x2a   :  { %1170 = vmatpush.xpose.msk.msrb.mxu0 %vm87_vm0, %v1585_v39 }
  0x2b   :  { %1114 = vmatpush.xpose.msk.msra.mxu1 %vm87_vm0, %v1622_v44 }
  0x2c   :  { %1134 = vmatpush.xpose.msk.msra.mxu2 %vm87_vm0, %v1627_v45 }
  0x2d   :  { %1154 = vmatpush.xpose.msk.msra.mxu3 %vm87_vm0, %v1632_v46 }
  0x2e   :  { %1171 = vmatpush.xpose.msk.msrb.mxu0 %vm87_vm0, %v1613_v43 }
  0x2f   :  { %1115 = vmatpush.xpose.msk.msra.mxu1 %vm87_vm0, %v1650_v48 }
  0x30   :  { %1135 = vmatpush.xpose.msk.msra.mxu2 %vm87_vm0, %v1655_v49 }
  0x31   :  { %1155 = vmatpush.xpose.msk.msra.mxu3 %vm87_vm0, %v1660_v50 }
  0x32   :  { %1172 = vmatpush.xpose.msk.msrb.mxu0 %vm87_vm0, %v1641_v47 }
  0x33   :  { %1116 = vmatpush.xpose.msk.msra.mxu1 %vm87_vm0, %v1678_v52 }
  0x34   :  { %1136 = vmatpush.xpose.msk.msra.mxu2 %vm87_vm0, %v1683_v53 }
  0x35   :  { %1156 = vmatpush.xpose.msk.msra.mxu3 %vm87_vm0, %v1688_v54 }
  0x36   :  { %1173 = vmatpush.xpose.msk.msrb.mxu0 %vm87_vm0, %v1669_v51 }
  0x37   :  { %1117 = vmatpush.xpose.msk.msra.mxu1 %vm87_vm0, %v1706_v56 }
  0x38   :  { %1137 = vmatpush.xpose.msk.msra.mxu2 %vm87_vm0, %v1711_v57 }
  0x39   :  { %1157 = vmatpush.xpose.msk.msra.mxu3 %vm87_vm0, %v1716_v58 }
  0x3a   :  { %1174 = vmatpush.xpose.msk.msrb.mxu0 %vm87_vm0, %v1697_v55 }
  0x3b   :  { %1118 = vmatpush.xpose.msk.msra.mxu1 %vm87_vm0, %v1734_v60 }
  0x3c   :  { %1138 = vmatpush.xpose.msk.msra.mxu2 %vm87_vm0, %v1739_v61 }
  0x3d   :  { %1158 = vmatpush.xpose.msk.msra.mxu3 %vm87_vm0, %v1744_v62 }
  0x3e   :  { %1175 = vmatpush.xpose.msk.msrb.mxu0 %vm87_vm0, %v1725_v59 }
  0x3f   :  { %1119 = vmatpush.xpose.msk.msra.mxu1 %vm87_vm0, %v1778_v8 }
  0x40   :  { %1139 = vmatpush.xpose.msk.msra.mxu2 %vm87_vm0, %v1783_v12 }
  0x41   :  { %1159 = vmatpush.xpose.msk.msra.mxu3 %vm87_vm0, %v1788_v15 }
  0x42   :  { %1176 = vmatpush.xpose.msk.msrb.mxu0 %vm87_vm0, %v1753_v63 }
  0x43   :  { %724 = vmatpush.msrb.mxu1 %v1344_v2  ;;  %v1252_v2 = vld [vmem:[%s2168_s2] ss:$0 sm:$0xff] }
  0x44   :  { %753 = vmatpush.msrb.mxu2 %v1349_v3 }
  0x45   :  { %782 = vmatpush.msrb.mxu3 %v1354_v4  ;;  %725 = vmatpush.msrb.mxu1 %v1365_v5 }
  0x46   :  { %1177 = vmatpush.xpose.msk.msrb.mxu0 %vm87_vm0, %v1764_v0  ;;  %754 = vmatpush.msrb.mxu2 %v1370_v6 }
  0x47   :  { %783 = vmatpush.msrb.mxu3 %v1375_v7  ;;  %726 = vmatpush.msrb.mxu1 %v1389_v9 }
  0x48   :  { %755 = vmatpush.msrb.mxu2 %v1394_v10 }
  0x49   :  { %784 = vmatpush.msrb.mxu3 %v1399_v11  ;;  %727 = vmatpush.msrb.mxu1 %v1418_v14 }
  0x4a   :  { %1178 = vmatpush.xpose.msk.msrb.mxu0 %vm87_vm0, %v1771_v1  ;;  %756 = vmatpush.msrb.mxu2 %v1426_v16  ;;  %v497_v16 = vld [vmem:[%s2170_s4] sm:$0xf] }
  0x4b   :  { %785 = vmatpush.msrb.mxu3 %v1431_v17  ;;  %728 = vmatpush.msrb.mxu1 %v1449_v19  ;;  %v516_v19 = vperm.slane %v497_v16, 1 }
  0x4c   :  { %757 = vmatpush.msrb.mxu2 %v1455_v20 }
  0x4d   :  { %786 = vmatpush.msrb.mxu3 %v1460_v21  ;;  %729 = vmatpush.msrb.mxu1 %v1478_v23  ;;  %v517_v23 = vperm.slane %v497_v16, 2 }
  0x4e   :  { %1179 = vmatpush.xpose.msk.msrb.mxu0 %vm87_vm0, %v1797_v32  ;;  %758 = vmatpush.msrb.mxu2 %v1483_v24 }
  0x4f   :  { %787 = vmatpush.msrb.mxu3 %v1488_v25  ;;  %730 = vmatpush.msrb.mxu1 %v1506_v27 }
  0x50   :  { %759 = vmatpush.msrb.mxu2 %v1511_v28 }
  0x51   :  { %788 = vmatpush.msrb.mxu3 %v1516_v29  ;;  %731 = vmatpush.msrb.mxu1 %v1534_v31  ;;  %v518_v29 = vperm.slane %v497_v16, 3 }
  0x52   :  { %811 = vmatpush.msra.mxu0 %v1411_v13  ;;  %760 = vmatpush.msrb.mxu2 %v1542_v33 }
  0x53   :  { %789 = vmatpush.msrb.mxu3 %v1547_v34  ;;  %732 = vmatpush.msrb.mxu1 %v1565_v36 }
  0x54   :  { %812 = vmatpush.msra.mxu0 %v1440_v18  ;;  %761 = vmatpush.msrb.mxu2 %v1571_v37 }
  0x55   :  { %790 = vmatpush.msrb.mxu3 %v1576_v38  ;;  %733 = vmatpush.msrb.mxu1 %v1594_v40 }
  0x56   :  { %813 = vmatpush.msra.mxu0 %v1469_v22  ;;  %762 = vmatpush.msrb.mxu2 %v1599_v41 }
  0x57   :  { %791 = vmatpush.msrb.mxu3 %v1604_v42  ;;  %734 = vmatpush.msrb.mxu1 %v1622_v44 }
  0x58   :  { %814 = vmatpush.msra.mxu0 %v1497_v26  ;;  %763 = vmatpush.msrb.mxu2 %v1627_v45 }
  0x59   :  { %792 = vmatpush.msrb.mxu3 %v1632_v46  ;;  %735 = vmatpush.msrb.mxu1 %v1650_v48 }
  0x5a   :  { %815 = vmatpush.msra.mxu0 %v1525_v30  ;;  %764 = vmatpush.msrb.mxu2 %v1655_v49 }
  0x5b   :  { %793 = vmatpush.msrb.mxu3 %v1660_v50  ;;  %736 = vmatpush.msrb.mxu1 %v1678_v52 }
  0x5c   :  { %816 = vmatpush.msra.mxu0 %v1556_v35  ;;  %765 = vmatpush.msrb.mxu2 %v1683_v53 }
  0x5d   :  { %794 = vmatpush.msrb.mxu3 %v1688_v54  ;;  %737 = vmatpush.msrb.mxu1 %v1706_v56 }
  0x5e   :  { %817 = vmatpush.msra.mxu0 %v1585_v39  ;;  %766 = vmatpush.msrb.mxu2 %v1711_v57 }
  0x5f   :  { %795 = vmatpush.msrb.mxu3 %v1716_v58  ;;  %738 = vmatpush.msrb.mxu1 %v1734_v60 }
  0x60   :  { %818 = vmatpush.msra.mxu0 %v1613_v43  ;;  %767 = vmatpush.msrb.mxu2 %v1739_v61 }
  0x61   :  { %796 = vmatpush.msrb.mxu3 %v1744_v62  ;;  %739 = vmatpush.msrb.mxu1 %v1778_v8 }
  0x62   :  { %819 = vmatpush.msra.mxu0 %v1641_v47  ;;  %768 = vmatpush.msrb.mxu2 %v1783_v12 }
  0x63   :  { %797 = vmatpush.msrb.mxu3 %v1788_v15 }
  0x64   :  { %820 = vmatpush.msra.mxu0 %v1669_v51 }
  0x66   :  { %821 = vmatpush.msra.mxu0 %v1697_v55 }
  0x68   :  { %822 = vmatpush.msra.mxu0 %v1725_v59 }
  0x6a   :  { %823 = vmatpush.msra.mxu0 %v1753_v63 }
  0x6c   :  { %824 = vmatpush.msra.mxu0 %v1764_v0 }
  0x6e   :  { %825 = vmatpush.msra.mxu0 %v1771_v1 }
  0x70   :  { %826 = vmatpush.msra.mxu0 %v1797_v32 }
  0x8e   :  { %v103_v3 = vpop.f32.mrf.mxu0 }
  0x8f   :  { %v1868_v4 = vadd.f32 %v1252_v2, %v103_v3 }
  0x91   :  { %1120 = vmatmul.msk.f32.vlgmr.msra.gmra.mxu1 %vm87_vm0, %v1868_v4  ;;  %1140 = vmatmul.msk.f32.vlgmr.msra.gmra.mxu2 %vm87_vm0, %v1868_v4 }
  0x92   :  { %1160 = vmatmul.msk.f32.vlgmr.msra.gmra.mxu3 %vm87_vm0, %v1868_v4  ;;  %1180 = vmatmul.msk.f32.vlgmr.msrb.gmra.mxu0 %vm87_vm0, %v1868_v4 }
  0x93   :  { %1222 = vmatpush.msra.mxu1 %v1411_v13 }
  0x95   :  { %1223 = vmatpush.msra.mxu1 %v1440_v18  ;;  %v515_v18 = vperm.slane %v497_v16, 0 }
  0x96   :  { %v105_v5 = vpop.f32.mrf.mxu0 }
  0x97   :  { %v1882_v6 = vadd.f32 %v1252_v2, %v105_v5  ;;  %1224 = vmatpush.msra.mxu1 %v1469_v22 }
  0x99   :  { %1121 = vmatmul.msk.f32.gmra.mxu1 %vm87_vm0, %v1882_v6  ;;  %1141 = vmatmul.msk.f32.gmra.mxu2 %vm87_vm0, %v1882_v6 }
  0x9a   :  { %1161 = vmatmul.msk.f32.gmra.mxu3 %vm87_vm0, %v1882_v6  ;;  %1181 = vmatmul.msk.f32.gmra.mxu0 %vm87_vm0, %v1882_v6 }
  0x9b   :  { %1225 = vmatpush.msra.mxu1 %v1497_v26 }
  0x9d   :  { %1226 = vmatpush.msra.mxu1 %v1525_v30 }
  0x9e   :  { %v108_v7 = vpop.f32.mrf.mxu0 }
  0x9f   :  { %v1895_v9 = vadd.f32 %v1252_v2, %v108_v7  ;;  %1227 = vmatpush.msra.mxu1 %v1556_v35 }
  0xa1   :  { %1122 = vmatmul.msk.f32.gmra.mxu1 %vm87_vm0, %v1895_v9  ;;  %1142 = vmatmul.msk.f32.gmra.mxu2 %vm87_vm0, %v1895_v9 }
  0xa2   :  { %1162 = vmatmul.msk.f32.gmra.mxu3 %vm87_vm0, %v1895_v9  ;;  %1182 = vmatmul.msk.f32.gmra.mxu0 %vm87_vm0, %v1895_v9 }
  0xa3   :  { %1228 = vmatpush.msra.mxu1 %v1585_v39 }
  0xa5   :  { %1229 = vmatpush.msra.mxu1 %v1613_v43 }
  0xa6   :  { %v110_v10 = vpop.f32.mrf.mxu0 }
  0xa7   :  { %v1908_v11 = vadd.f32 %v1252_v2, %v110_v10  ;;  %1230 = vmatpush.msra.mxu1 %v1641_v47 }
  0xa9   :  { %1123 = vmatmul.msk.f32.gmra.mxu1 %vm87_vm0, %v1908_v11  ;;  %1143 = vmatmul.msk.f32.gmra.mxu2 %vm87_vm0, %v1908_v11 }
  0xaa   :  { %1163 = vmatmul.msk.f32.gmra.mxu3 %vm87_vm0, %v1908_v11  ;;  %1183 = vmatmul.msk.f32.gmra.mxu0 %vm87_vm0, %v1908_v11 }
  0xab   :  { %1231 = vmatpush.msra.mxu1 %v1669_v51 }
  0xad   :  { %1232 = vmatpush.msra.mxu1 %v1697_v55 }
  0xaf   :  { %1233 = vmatpush.msra.mxu1 %v1725_v59 }
  0xb1   :  { %1234 = vmatpush.msra.mxu1 %v1753_v63 }
  0xb3   :  { %1235 = vmatpush.msra.mxu1 %v1764_v0 }
  0xb5   :  { %1236 = vmatpush.msra.mxu1 %v1771_v1 }
  0xb7   :  { %1237 = vmatpush.msra.mxu1 %v1797_v32 }
 0x10e   :  { %v398_v13 = vpop.f32.mrf.mxu1 }
 0x10f   :  { %v485_v14 = vpop.f32.mrf.mxu0  ;;  %v498_v17 = vmul.f32 2.0, %v398_v13 }
 0x110   :  { %v501_v27 = vmul.f32 2.0, %v485_v14 }
 0x111   :  { %v1929_v26 = vsub.f32 %v515_v18, %v498_v17 }
 0x112   :  { %v1937_v35 = vsub.f32 %v518_v29, %v501_v27 }
 0x114   :  { %v427_v20 = vpop.f32.mrf.mxu2 }
 0x115   :  { %v499_v21 = vmul.f32 2.0, %v427_v20  ;;  %v456_v22 = vpop.f32.mrf.mxu3 }
 0x116   :  { %v500_v24 = vmul.f32 2.0, %v456_v22  ;;  %v401_v25 = vpop.f32.mrf.mxu1 }
 0x117   :  { %v1931_v28 = vsub.f32 %v516_v19, %v499_v21  ;;  %v488_v30 = vpop.f32.mrf.mxu0  ;;  %v502_v34 = vmul.f32 2.0, %v401_v25  ;;  %v30_v21 = vlaneseq }
 0x118   :  { %v1933_v31 = vsub.f32 %v517_v23, %v500_v24  ;;  %v505_v44 = vmul.f32 2.0, %v488_v30 }
 0x119   :  { %v539_v33 = vmin.f32 %v1929_v26, %v1931_v28  ;;  %v1941_v43 = vsub.f32 %v515_v18, %v502_v34 }
 0x11a   :  { %v1949_v49 = vsub.f32 %v518_v29, %v505_v44 }
 0x11b   :  { %v540_v36 = vmin.f32 %v539_v33, %v1933_v31 }
 0x11c   :  { %v430_v37 = vpop.f32.mrf.mxu2 }
 0x11d   :  { %v503_v38 = vmul.f32 2.0, %v430_v37  ;;  %v459_v39 = vpop.f32.mrf.mxu3  ;;  %v541_v40 = vmin.f32 %v540_v36, %v1937_v35 }
 0x11e   :  { %v504_v41 = vmul.f32 2.0, %v459_v39  ;;  %v404_v42 = vpop.f32.mrf.mxu1 }
 0x11f   :  { %v1943_v45 = vsub.f32 %v516_v19, %v503_v38  ;;  %542 = vmin.xlane.f32.xlu0 %v541_v40  ;;  %v491_v48 = vpop.f32.mrf.mxu0  ;;  %v506_v50 = vmul.f32 2.0, %v404_v42 }
 0x120   :  { %v1947_v47 = vsub.f32 %v517_v23, %v504_v41  ;;  %v509_v58 = vmul.f32 2.0, %v491_v48 }
 0x121   :  { %v544_v46 = vmin.f32 %v1941_v43, %v1943_v45  ;;  %v1953_v57 = vsub.f32 %v515_v18, %v506_v50 }
 0x122   :  { %v1961_v0 = vsub.f32 %v518_v29, %v509_v58 }
 0x123   :  { %v545_v51 = vmin.f32 %v544_v46, %v1947_v47 }
 0x124   :  { %v433_v52 = vpop.f32.mrf.mxu2 }
 0x125   :  { %v507_v53 = vmul.f32 2.0, %v433_v52  ;;  %v462_v54 = vpop.f32.mrf.mxu3  ;;  %v546_v55 = vmin.f32 %v545_v51, %v1949_v49 }
 0x126   :  { %v508_v56 = vmul.f32 2.0, %v462_v54  ;;  %v407_v60 = vpop.f32.mrf.mxu1 }
 0x127   :  { %v1955_v59 = vsub.f32 %v516_v19, %v507_v53  ;;  %547 = vmin.xlane.f32.xlu0 %v546_v55  ;;  %v510_v63 = vmul.f32 2.0, %v407_v60  ;;  %v494_v8 = vpop.f32.mrf.mxu0 }
 0x128   :  { %v1957_v61 = vsub.f32 %v517_v23, %v508_v56  ;;  %v513_v7 = vmul.f32 2.0, %v494_v8 }
 0x129   :  { %v549_v62 = vmin.f32 %v1953_v57, %v1955_v59  ;;  %v1965_v5 = vsub.f32 %v515_v18, %v510_v63  ;;  %v1978_v18 = vand.u32 127, %v30_v21 }
 0x12a   :  { %v1973_v16 = vsub.f32 %v518_v29, %v513_v7 }
 0x12b   :  { %v550_v1 = vmin.f32 %v549_v62, %v1957_v61  ;;  %v1984_v24 = vadd.s32 256, %v1978_v18  ;;  %v1992_v27 = vadd.s32 384, %v1978_v18 }
 0x12c   :  { %v436_v12 = vpop.f32.mrf.mxu2 }
 0x12d   :  { %v511_v15 = vmul.f32 2.0, %v436_v12  ;;  %v465_v32 = vpop.f32.mrf.mxu3  ;;  %v551_v2 = vmin.f32 %v550_v1, %v1961_v0 }
 0x12e   :  { %v512_v3 = vmul.f32 2.0, %v465_v32 }
 0x12f   :  { %v1967_v10 = vsub.f32 %v516_v19, %v511_v15  ;;  %552 = vmin.xlane.f32.xlu1 %v551_v2  ;;  %v1981_v19 = vadd.s32 128, %v1978_v18 }
 0x130   :  { %v1971_v14 = vsub.f32 %v517_v23, %v512_v3 }
 0x131   :  { %v554_v13 = vmin.f32 %v1965_v5, %v1967_v10 }
 0x133   :  { %v555_v17 = vmin.f32 %v554_v13, %v1971_v14 }
 0x135   :  { %v556_v20 = vmin.f32 %v555_v17, %v1973_v16 }
 0x137   :  { %557 = vmin.xlane.f32.xlu1 %v556_v20 }
 0x192   :  { %v543_v22 = vpop.xlane.xlu0 %542 }
 0x193   :  { %vm564_vm1 = vcmp.le.f32.partialorder %v1929_v26, %v543_v22  ;;  %vm565_vm2 = vcmp.le.f32.partialorder %v1931_v28, %v543_v22  ;;  %vm566_vm3 = vcmp.le.f32.partialorder %v1933_v31, %v543_v22  ;;  %vm567_vm4 = vcmp.le.f32.partialorder %v1937_v35, %v543_v22 }
 0x194   :  { %v580_v23 = vsel %vm564_vm1, %v1978_v18, 512  ;;  %v581_v25 = vsel %vm565_vm2, %v1981_v19, 512  ;;  %v582_v29 = vsel %vm566_vm3, %v1984_v24, 512  ;;  %v583_v26 = vsel %vm567_vm4, %v1992_v27, 512 }
 0x195   :  { %vm596_vm5 = vcmp.lt.s32.totalorder %v580_v23, %v581_v25 }
 0x196   :  { %v597_v30 = vsel %vm596_vm5, %v580_v23, %v581_v25 }
 0x197   :  { %vm598_vm6 = vcmp.lt.s32.totalorder %v597_v30, %v582_v29 }
 0x198   :  { %v599_v33 = vsel %vm598_vm6, %v597_v30, %v582_v29 }
 0x199   :  { %vm600_vm7 = vcmp.lt.s32.totalorder %v599_v33, %v583_v26 }
 0x19a   :  { %v548_v28 = vpop.xlane.xlu0 %547  ;;  %v601_v31 = vsel %vm600_vm7, %v599_v33, %v583_v26 }
 0x19b   :  { %vm568_vm8 = vcmp.le.f32.partialorder %v1941_v43, %v548_v28  ;;  %vm569_vm9 = vcmp.le.f32.partialorder %v1943_v45, %v548_v28  ;;  %vm570_vm10 = vcmp.le.f32.partialorder %v1947_v47, %v548_v28  ;;  %v603_v36 = vshra.s32 %v601_v31, 16 }
 0x19c   :  { %v584_v34 = vsel %vm568_vm8, %v1978_v18, 512  ;;  %v585_v35 = vsel %vm569_vm9, %v1981_v19, 512  ;;  %vm571_vm11 = vcmp.le.f32.partialorder %v1949_v49, %v548_v28  ;;  %v586_v37 = vsel %vm570_vm10, %v1984_v24, 512 }
 0x19d   :  { %vm616_vm12 = vcmp.lt.s32.totalorder %v584_v34, %v585_v35  ;;  %v605_v38 = vcvt.s32.f32 %v603_v36  ;;  %v587_v40 = vsel %vm571_vm11, %v1992_v27, 512  ;;  %v602_v1 = vand.u32 65535, %v601_v31 }
 0x19e   :  { %v617_v39 = vsel %vm616_vm12, %v584_v34, %v585_v35  ;;  %v1289_v28 = vmov 1.0  }
 0x19f   :  { %vm618_vm13 = vcmp.lt.s32.totalorder %v617_v39, %v586_v37  ;;  %606 = vmin.xlane.f32.xlu2 %v605_v38  ;;  %v604_v12 = vcvt.s32.f32 %v602_v1 }
 0x1a0   :  { %v619_v41 = vsel %vm618_vm13, %v617_v39, %v586_v37  ;;  %v1290_v37 = vmov 0.0  }
 0x1a1   :  { %vm620_vm14 = vcmp.lt.s32.totalorder %v619_v41, %v587_v40 }
 0x1a2   :  { %v553_v42 = vpop.xlane.xlu1 %552  ;;  %v621_v43 = vsel %vm620_vm14, %v619_v41, %v587_v40 }
 0x1a3   :  { %vm572_vm15 = vcmp.le.f32.partialorder %v1953_v57, %v553_v42  ;;  %vm573_vm1 = vcmp.le.f32.partialorder %v1955_v59, %v553_v42  ;;  %vm574_vm2 = vcmp.le.f32.partialorder %v1957_v61, %v553_v42  ;;  %v623_v46 = vshra.s32 %v621_v43, 16 }
 0x1a4   :  { %v588_v44 = vsel %vm572_vm15, %v1978_v18, 512  ;;  %v589_v45 = vsel %vm573_vm1, %v1981_v19, 512  ;;  %vm575_vm3 = vcmp.le.f32.partialorder %v1961_v0, %v553_v42  ;;  %v590_v47 = vsel %vm574_vm2, %v1984_v24, 512 }
 0x1a5   :  { %vm636_vm4 = vcmp.lt.s32.totalorder %v588_v44, %v589_v45  ;;  %v625_v48 = vcvt.s32.f32 %v623_v46  ;;  %v591_v50 = vsel %vm575_vm3, %v1992_v27, 512  ;;  %v622_v32 = vand.u32 65535, %v621_v43 }
 0x1a6   :  { %v637_v49 = vsel %vm636_vm4, %v588_v44, %v589_v45 }
 0x1a7   :  { %vm638_vm5 = vcmp.lt.s32.totalorder %v637_v49, %v590_v47  ;;  %626 = vmin.xlane.f32.xlu2 %v625_v48  ;;  %v624_v3 = vcvt.s32.f32 %v622_v32 }
 0x1a8   :  { %v639_v51 = vsel %vm638_vm5, %v637_v49, %v590_v47 }
 0x1a9   :  { %vm640_vm6 = vcmp.lt.s32.totalorder %v639_v51, %v591_v50 }
 0x1aa   :  { %v558_v52 = vpop.xlane.xlu1 %557  ;;  %v641_v53 = vsel %vm640_vm6, %v639_v51, %v591_v50 }
 0x1ab   :  { %vm576_vm7 = vcmp.le.f32.partialorder %v1965_v5, %v558_v52  ;;  %vm577_vm8 = vcmp.le.f32.partialorder %v1967_v10, %v558_v52  ;;  %vm578_vm9 = vcmp.le.f32.partialorder %v1971_v14, %v558_v52  ;;  %v643_v56 = vshra.s32 %v641_v53, 16 }
 0x1ac   :  { %v592_v54 = vsel %vm576_vm7, %v1978_v18, 512  ;;  %v593_v55 = vsel %vm577_vm8, %v1981_v19, 512  ;;  %vm579_vm10 = vcmp.le.f32.partialorder %v1973_v16, %v558_v52  ;;  %v594_v57 = vsel %vm578_vm9, %v1984_v24, 512 }
 0x1ad   :  { %vm656_vm11 = vcmp.lt.s32.totalorder %v592_v54, %v593_v55  ;;  %v645_v58 = vcvt.s32.f32 %v643_v56  ;;  %v595_v60 = vsel %vm579_vm10, %v1992_v27, 512  ;;  %v642_v7 = vand.u32 65535, %v641_v53 }
 0x1ae   :  { %v657_v59 = vsel %vm656_vm11, %v592_v54, %v593_v55  ;;  %vm2038_vm7 = vcmp.lt.s32.totalorder %v30_v21, 512 }
 0x1af   :  { %vm658_vm12 = vcmp.lt.s32.totalorder %v657_v59, %v594_v57  ;;  %646 = vmin.xlane.f32.xlu0 %v645_v58  ;;  %v644_v13 = vcvt.s32.f32 %v642_v7  ;;  %34 = vst.msk [vmem:[#allocation2] sm:$0xf] %vm2038_vm7, %v1290_v37  ;;  %v1291_v7 = vmov 32.0  }
 0x1b0   :  { %v659_v61 = vsel %vm658_vm12, %v657_v59, %v594_v57  ;;  %1253 = vrcp.f32 %v1291_v7 }
 0x1b1   :  { %vm660_vm13 = vcmp.lt.s32.totalorder %v659_v61, %v595_v60 }
 0x1b2   :  { %v661_v62 = vsel %vm660_vm13, %v659_v61, %v595_v60 }
 0x1b3   :  { %v663_v63 = vshra.s32 %v661_v62, 16  ;;  %v662_v16 = vand.u32 65535, %v661_v62 }
 0x1b5   :  { %v665_v0 = vcvt.s32.f32 %v663_v63  ;;  %v664_v20 = vcvt.s32.f32 %v662_v16 }
 0x1b7   :  { %666 = vmin.xlane.f32.xlu1 %v665_v0 }
 0x212   :  { %v607_v8 = vpop.xlane.xlu2 %606 }
 0x213   :  { %vm608_vm14 = vcmp.eq.f32.partialorder %v605_v38, %v607_v8  ;;  %v613_v23 = vcvt.f32.s32 %v607_v8 }
 0x214   :  { %v609_v15 = vsel %vm608_vm14, %v604_v12, inf }
 0x215   :  { %610 = vmin.xlane.f32.xlu2 %v609_v15  ;;  %v614_v29 = vshll.u32 %v613_v23, 16 }
 0x21a   :  { %v627_v2 = vpop.xlane.xlu2 %626 }
 0x21b   :  { %vm628_vm15 = vcmp.eq.f32.partialorder %v625_v48, %v627_v2  ;;  %v633_v33 = vcvt.f32.s32 %v627_v2 }
 0x21c   :  { %v629_v5 = vsel %vm628_vm15, %v624_v3, inf }
 0x21d   :  { %630 = vmin.xlane.f32.xlu0 %v629_v5  ;;  %v634_v34 = vshll.u32 %v633_v33, 16 }
 0x222   :  { %v647_v10 = vpop.xlane.xlu0 %646 }
 0x223   :  { %vm648_vm1 = vcmp.eq.f32.partialorder %v645_v58, %v647_v10  ;;  %v653_v39 = vcvt.f32.s32 %v647_v10 }
 0x224   :  { %v649_v14 = vsel %vm648_vm1, %v644_v13, inf }
 0x225   :  { %650 = vmin.xlane.f32.xlu1 %v649_v14  ;;  %v654_v41 = vshll.u32 %v653_v39, 16 }
 0x22a   :  { %v667_v17 = vpop.xlane.xlu1 %666 }
 0x22b   :  { %vm668_vm2 = vcmp.eq.f32.partialorder %v665_v0, %v667_v17  ;;  %v673_v21 = vcvt.f32.s32 %v667_v17 }
 0x22c   :  { %v669_v22 = vsel %vm668_vm2, %v664_v20, inf }
 0x22d   :  { %670 = vmin.xlane.f32.xlu2 %v669_v22  ;;  %v674_v44 = vshll.u32 %v673_v21, 16 }
 0x288   :  { %v611_v25 = vpop.xlane.xlu2 %610 }
 0x289   :  { %v612_v30 = vcvt.f32.s32 %v611_v25 }
 0x28b   :  { %v615_v26 = vadd.s32 %v614_v29, %v612_v30 }
 0x28d   :  { %vm676_vm3 = vcmp.eq.s32.totalorder %v1978_v18, %v615_v26  ;;  %vm677_vm4 = vcmp.eq.s32.totalorder %v1981_v19, %v615_v26  ;;  %vm678_vm5 = vcmp.eq.s32.totalorder %v1984_v24, %v615_v26  ;;  %vm679_vm6 = vcmp.eq.s32.totalorder %v1992_v27, %v615_v26  ;;  %v1254_v26 = vpop.eup %1253 }
 0x28e   :  { %1200 = vmatmul.msk.f32.vlgmr.msrb.gmra.mxu1 %vm676_vm3, %v1289_v28  ;;  %1204 = vmatmul.msk.f32.vlgmr.msrb.gmra.mxu2 %vm677_vm4, %v1289_v28  ;;  %v1184_v45 = vsel %vm676_vm3, 1.0, %v1290_v37  ;;  %v1185_v50 = vsel %vm677_vm4, 1.0, %v1290_v37  ;;  %v1186_v51 = vsel %vm678_vm5, 1.0, %v1290_v37  ;;  %v1187_v52 = vsel %vm679_vm6, 1.0, %v1290_v37 }
 0x28f   :  { %1208 = vmatmul.msk.f32.vlgmr.msrb.gmra.mxu3 %vm678_vm5, %v1289_v28  ;;  %1212 = vmatmul.msk.f32.vlgmr.msra.gmra.mxu0 %vm679_vm6, %v1289_v28  ;;  %vm963_vm5 = vcmask 1042434   ;;  %vm961_vm6 = vcmask 1040384  }
 0x290   :  { %v631_v31 = vpop.xlane.xlu0 %630 }
 0x291   :  { %v632_v35 = vcvt.f32.s32 %v631_v31 }
 0x293   :  { %v635_v38 = vadd.s32 %v634_v34, %v632_v35 }
 0x295   :  { %vm680_vm8 = vcmp.eq.s32.totalorder %v1978_v18, %v635_v38  ;;  %vm681_vm9 = vcmp.eq.s32.totalorder %v1981_v19, %v635_v38  ;;  %vm682_vm10 = vcmp.eq.s32.totalorder %v1984_v24, %v635_v38  ;;  %vm683_vm11 = vcmp.eq.s32.totalorder %v1992_v27, %v635_v38 }
 0x296   :  { %1201 = vmatmul.msk.f32.gmra.mxu1 %vm680_vm8, %v1289_v28  ;;  %1205 = vmatmul.msk.f32.gmra.mxu2 %vm681_vm9, %v1289_v28  ;;  %v1188_v46 = vsel %vm680_vm8, 1.0, %v1290_v37  ;;  %v1189_v47 = vsel %vm681_vm9, 1.0, %v1290_v37  ;;  %v1190_v48 = vsel %vm682_vm10, 1.0, %v1290_v37  ;;  %v1191_v49 = vsel %vm683_vm11, 1.0, %v1290_v37 }
 0x297   :  { %1209 = vmatmul.msk.f32.gmra.mxu3 %vm682_vm10, %v1289_v28  ;;  %1213 = vmatmul.msk.f32.gmra.mxu0 %vm683_vm11, %v1289_v28  ;;  %v918_v59 = vadd.f32 %v1188_v46, %v1184_v45  ;;  %v927_v60 = vadd.f32 %v1189_v47, %v1185_v50  ;;  %v936_v61 = vadd.f32 %v1190_v48, %v1186_v51  ;;  %vm965_vm8 = vcmask 1041408   ;;  %v901_v51 = vld [vmem:[#allocation2] sm:$0xf] }
 0x298   :  { %v651_v40 = vpop.xlane.xlu1 %650  ;;  %v945_v62 = vadd.f32 %v1191_v49, %v1187_v52  ;;  %vm1006_vm9 = vweird.f32 %v1254_v26  ;;  %vm35_vm10 = vcmask 516096  }
 0x299   :  { %v652_v42 = vcvt.f32.s32 %v651_v40  ;;  %36 = vst.msk [vmem:[#allocation3] sm:$0x1] %vm35_vm10, %v1290_v37 }
 0x29b   :  { %v655_v43 = vadd.s32 %v654_v41, %v652_v42  ;;  %v1002_v41 = vmul.f32 32.0, %v1254_v26 }
 0x29d   :  { %vm684_vm12 = vcmp.eq.s32.totalorder %v1978_v18, %v655_v43  ;;  %vm685_vm13 = vcmp.eq.s32.totalorder %v1981_v19, %v655_v43  ;;  %vm686_vm14 = vcmp.eq.s32.totalorder %v1984_v24, %v655_v43  ;;  %vm687_vm15 = vcmp.eq.s32.totalorder %v1992_v27, %v655_v43 }
 0x29e   :  { %1202 = vmatmul.msk.f32.gmra.mxu1 %vm684_vm12, %v1289_v28  ;;  %1206 = vmatmul.msk.f32.gmra.mxu2 %vm685_vm13, %v1289_v28  ;;  %v1192_v53 = vsel %vm684_vm12, 1.0, %v1290_v37  ;;  %v1193_v55 = vsel %vm685_vm13, 1.0, %v1290_v37  ;;  %v1194_v56 = vsel %vm686_vm14, 1.0, %v1290_v37  ;;  %v1195_v57 = vsel %vm687_vm15, 1.0, %v1290_v37 }
 0x29f   :  { %1210 = vmatmul.msk.f32.gmra.mxu3 %vm686_vm14, %v1289_v28  ;;  %1214 = vmatmul.msk.f32.gmra.mxu0 %vm687_vm15, %v1289_v28  ;;  %v919_v0 = vadd.f32 %v1192_v53, %v918_v59  ;;  %v928_v1 = vadd.f32 %v1193_v55, %v927_v60  ;;  %v937_v8 = vadd.f32 %v1194_v56, %v936_v61  ;;  %v1003_v49 = vsub.f32 1.0, %v1002_v41 }
 0x2a0   :  { %v671_v54 = vpop.xlane.xlu2 %670  ;;  %v946_v12 = vadd.f32 %v1195_v57, %v945_v62 }
 0x2a1   :  { %v672_v58 = vcvt.f32.s32 %v671_v54  ;;  %v1004_v53 = vmul.f32 %v1254_v26, %v1003_v49 }
 0x2a3   :  { %v675_v63 = vadd.s32 %v674_v44, %v672_v58  ;;  %v1005_v55 = vadd.f32 %v1254_v26, %v1004_v53 }
 0x2a5   :  { %vm688_vm1 = vcmp.eq.s32.totalorder %v1978_v18, %v675_v63  ;;  %vm689_vm2 = vcmp.eq.s32.totalorder %v1981_v19, %v675_v63  ;;  %vm690_vm3 = vcmp.eq.s32.totalorder %v1984_v24, %v675_v63  ;;  %vm691_vm4 = vcmp.eq.s32.totalorder %v1992_v27, %v675_v63 }
 0x2a6   :  { %v1196_v15 = vsel %vm688_vm1, 1.0, %v1290_v37  ;;  %v1197_v32 = vsel %vm689_vm2, 1.0, %v1290_v37  ;;  %v1198_v2 = vsel %vm690_vm3, 1.0, %v1290_v37  ;;  %v1199_v3 = vsel %vm691_vm4, 1.0, %v1290_v37  ;;  %1203 = vmatmul.msk.f32.gmra.mxu1 %vm688_vm1, %v1289_v28  ;;  %1207 = vmatmul.msk.f32.gmra.mxu2 %vm689_vm2, %v1289_v28 }
 0x2a7   :  { %v920_v5 = vadd.f32 %v1196_v15, %v919_v0  ;;  %v929_v18 = vadd.f32 %v1197_v32, %v928_v1  ;;  %v938_v19 = vadd.f32 %v1198_v2, %v937_v8  ;;  %1211 = vmatmul.msk.f32.gmra.mxu3 %vm690_vm3, %v1289_v28  ;;  %v947_v24 = vadd.f32 %v1199_v3, %v946_v12 }
 0x2a8   :  { %v1007_v56 = vsel %vm1006_vm9, %v1254_v26, %v1005_v55 }
 0x2a9   :  { %v921_v10 = vrot.slane %v920_v5, 4  ;;  %v930_v13 = vrot.slane %v929_v18, 4  ;;  %v939_v14 = vrot.slane %v938_v19, 4  ;;  %v948_v16 = vrot.slane %v947_v24, 4 }
 0x2ab   :  { %v922_v17 = vadd.f32 %v921_v10, %v920_v5  ;;  %v931_v20 = vadd.f32 %v930_v13, %v929_v18  ;;  %v940_v22 = vadd.f32 %v939_v14, %v938_v19  ;;  %v949_v23 = vadd.f32 %v948_v16, %v947_v24 }
 0x2ad   :  { %v923_v25 = vrot.slane %v922_v17, 2  ;;  %v932_v29 = vrot.slane %v931_v20, 2  ;;  %v941_v30 = vrot.slane %v940_v22, 2  ;;  %v950_v33 = vrot.slane %v949_v23, 2 }
 0x2ae   :  { %1215 = vmatmul.msk.f32.vlgmr.msra.gmra.mxu1 %vm691_vm4, %v1289_v28 }
 0x2af   :  { %v924_v31 = vadd.f32 %v923_v25, %v922_v17  ;;  %v933_v34 = vadd.f32 %v932_v29, %v931_v20  ;;  %v942_v35 = vadd.f32 %v941_v30, %v940_v22  ;;  %v951_v38 = vadd.f32 %v950_v33, %v949_v23 }
 0x2b1   :  { %v925_v39 = vrot.slane %v924_v31, 1  ;;  %v934_v21 = vrot.slane %v933_v34, 1  ;;  %v943_v40 = vrot.slane %v942_v35, 1  ;;  %v952_v42 = vrot.slane %v951_v38, 1 }
 0x2b3   :  { %v935_v43 = vadd.f32 %v934_v21, %v933_v34  ;;  %v944_v44 = vadd.f32 %v943_v40, %v942_v35  ;;  %v953_v45 = vadd.f32 %v952_v42, %v951_v38  ;;  %v926_v46 = vadd.f32 %v925_v39, %v924_v31 }
 0x2b5   :  { %v958_v47 = vrot.slane %v935_v43, 7  ;;  %v959_v48 = vrot.slane %v944_v44, 6  ;;  %v960_v50 = vrot.slane %v953_v45, 5 }
 0x2b7   :  { %v962_v27 = vsel %vm961_vm6, %v926_v46, %v958_v47  ;;  %v964_v28 = vsel %vm963_vm5, %v959_v48, %v960_v50 }
 0x2b8   :  { %v966_v52 = vsel %vm965_vm8, %v962_v27, %v964_v28 }
 0x2b9   :  { %v968_v54 = vadd.f32 %v966_v52, %v901_v51 }
 0x2bb   :  { %973 = vst.msk [vmem:[#allocation2] sm:$0xf] %vm2038_vm7, %v968_v54  ;;  %vm844_vm7 = vcmask 519168  }
 0x2c2   :  { %v1000_v57 = vld [vmem:[#allocation2] sm:$0xf] }
 0x2c3   :  { %v1008_v58 = vmul.f32 %v1007_v56, %v1000_v57 }
 0x2c5   :  { %v1009_v59 = vadd.f32 1e-10, %v1008_v58 }
 0x2c7   :  { %1255 = vlog2.f32 %v1009_v59 }
 0x2cd   :  { %v1256_v60 = vpop.eup %1255 }
 0x2ce   :  { %v1011_v61 = vmul.f32 0.6931472, %v1256_v60 }
 0x2d0   :  { %v1012_v62 = vmul.f32 %v1011_v61, %v1008_v58 }
 0x2d2   :  { %v1014_v63 = vperm.slane %v1012_v62, 0  ;;  %v1015_v0 = vperm.slane %v1012_v62, 1  ;;  %v1016_v1 = vperm.slane %v1012_v62, 2  ;;  %v1017_v8 = vperm.slane %v1012_v62, 3 }
 0x2d4   :  { %v1022_v12 = vsel %vm961_vm6, %v1014_v63, 0.0  ;;  %v1023_v15 = vsel %vm961_vm6, %v1015_v0, 0.0  ;;  %v1025_v32 = vsel %vm961_vm6, %v1016_v1, 0.0  ;;  %v1027_v3 = vsel %vm961_vm6, %v1017_v8, 0.0  ;;  %v880_v63 = vld [vmem:[#allocation3] sm:$0x1] }
 0x2d5   :  { %v1024_v36 = vadd.f32 %v1023_v15, %v1022_v12  ;;  %v1292_v12 = vmov 2048.0  }
 0x2d6   :  { %1257 = vrcp.f32 %v1292_v12 }
 0x2d7   :  { %v1026_v2 = vadd.f32 %v1025_v32, %v1024_v36 }
 0x2d9   :  { %v1028_v5 = vadd.f32 %v1027_v3, %v1026_v2 }
 0x2db   :  { %1029 = vadd.xlane.f32.xlu1 %v1028_v5 }
 0x2dc   :  { %v1258_v36 = vpop.eup %1257 }
 0x2dd   :  { %v989_v2 = vmul.f32 2048.0, %v1258_v36 }
 0x2df   :  { %v990_v5 = vsub.f32 1.0, %v989_v2 }
 0x30b   :  { %v741_v18 = vpop.f32.mrf.mxu1 }
 0x30c   :  { %v828_v19 = vpop.f32.mrf.mxu0 }
 0x311   :  { %v770_v24 = vpop.f32.mrf.mxu2 }
 0x312   :  { %v771_v7 = vadd.f32 %v770_v24, %v741_v18  ;;  %v799_v10 = vpop.f32.mrf.mxu3 }
 0x313   :  { %v744_v13 = vpop.f32.mrf.mxu1 }
 0x314   :  { %v800_v14 = vadd.f32 %v799_v10, %v771_v7  ;;  %v831_v25 = vpop.f32.mrf.mxu0  ;;  %v991_v10 = vmul.f32 %v1258_v36, %v990_v5 }
 0x316   :  { %v829_v16 = vadd.f32 %v828_v19, %v800_v14 }
 0x318   :  { %v840_v17 = vpack.c.bf16 %v829_v16, %v829_v16  ;;  %v872_v42 = vsub.f32 %v829_v16, %v1868_v4 }
 0x319   :  { %v773_v20 = vpop.f32.mrf.mxu2 }
 0x31a   :  { %845 = vst.msk [vmem:[%s2171_s5] sm:$0xf] %vm844_vm7, %v840_v17  ;;  %v774_v22 = vadd.f32 %v773_v20, %v744_v13  ;;  %v802_v23 = vpop.f32.mrf.mxu3  ;;  %v881_v48 = vmul.f32 %v872_v42, %v872_v42  ;;  %v992_v17 = vadd.f32 %v1258_v36, %v991_v10 }
 0x31b   :  { %v747_v29 = vpop.f32.mrf.mxu1 }
 0x31c   :  { %v803_v30 = vadd.f32 %v802_v23, %v774_v22  ;;  %v834_v21 = vpop.f32.mrf.mxu0  ;;  %v885_v4 = vsel %vm87_vm0, %v881_v48, 0.0 }
 0x31e   :  { %v832_v26 = vadd.f32 %v831_v25, %v803_v30 }
 0x320   :  { %v841_v33 = vpack.c.bf16 %v832_v26, %v832_v26  ;;  %v873_v40 = vsub.f32 %v832_v26, %v1882_v6 }
 0x321   :  { %v776_v31 = vpop.f32.mrf.mxu2 }
 0x322   :  { %846 = vst.msk [vmem:[%s2171_s5 + $0x4] sm:$0xf] %vm844_vm7, %v841_v33  ;;  %v777_v34 = vadd.f32 %v776_v31, %v747_v29  ;;  %v805_v35 = vpop.f32.mrf.mxu3  ;;  %v882_v45 = vmul.f32 %v873_v40, %v873_v40 }
 0x323   :  { %v750_v38 = vpop.f32.mrf.mxu1 }
 0x324   :  { %v806_v39 = vadd.f32 %v805_v35, %v777_v34  ;;  %v886_v6 = vsel %vm87_vm0, %v882_v45, 0.0 }
 0x325   :  { %v887_v53 = vadd.f32 %v886_v6, %v885_v4 }
 0x326   :  { %v835_v41 = vadd.f32 %v834_v21, %v806_v39 }
 0x328   :  { %v842_v43 = vpack.c.bf16 %v835_v41, %v835_v41  ;;  %v874_v37 = vsub.f32 %v835_v41, %v1895_v9 }
 0x329   :  { %v779_v44 = vpop.f32.mrf.mxu2 }
 0x32a   :  { %847 = vst.msk [vmem:[%s2171_s5 + $0x8] sm:$0xf] %vm844_vm7, %v842_v43  ;;  %v780_v46 = vadd.f32 %v779_v44, %v750_v38  ;;  %v808_v47 = vpop.f32.mrf.mxu3  ;;  %v883_v49 = vmul.f32 %v874_v37, %v874_v37 }
 0x32b   :  { %v837_v51 = vpop.f32.mrf.mxu1 }
 0x32c   :  { %v809_v50 = vadd.f32 %v808_v47, %v780_v46  ;;  %v888_v9 = vsel %vm87_vm0, %v883_v49, 0.0 }
 0x32d   :  { %v889_v55 = vadd.f32 %v888_v9, %v887_v53 }
 0x32e   :  { %v838_v27 = vadd.f32 %v837_v51, %v809_v50 }
 0x330   :  { %v843_v28 = vpack.c.bf16 %v838_v27, %v838_v27  ;;  %v875_v52 = vsub.f32 %v838_v27, %v1908_v11 }
 0x332   :  { %848 = vst.msk [vmem:[%s2171_s5 + $0xc] sm:$0xf] %vm844_vm7, %v843_v28  ;;  %v884_v54 = vmul.f32 %v875_v52, %v875_v52 }
 0x334   :  { %v890_v56 = vsel %vm87_vm0, %v884_v54, 0.0  ;;  %vm993_vm0 = vweird.f32 %v1258_v36 }
 0x335   :  { %v891_v57 = vadd.f32 %v890_v56, %v889_v55  ;;  %v994_v25 = vsel %vm993_vm0, %v1258_v36, %v992_v17 }
 0x337   :  { %v892_v58 = vrot.slane %v891_v57, 4 }
 0x339   :  { %v893_v59 = vadd.f32 %v892_v58, %v891_v57 }
 0x33b   :  { %v894_v60 = vrot.slane %v893_v59, 2 }
 0x33d   :  { %v895_v61 = vadd.f32 %v894_v60, %v893_v59 }
 0x33f   :  { %v896_v62 = vrot.slane %v895_v61, 1 }
 0x341   :  { %v897_v0 = vadd.f32 %v896_v62, %v895_v61 }
 0x343   :  { %v898_v1 = vadd.f32 %v897_v0, %v880_v63 }
 0x345   :  { %900 = vst.msk [vmem:[#allocation3] sm:$0x1] %vm35_vm10, %v898_v1 }
 0x34c   :  { %v977_v11 = vld [vmem:[#allocation3] sm:$0x1] }
 0x34d   :  { %v978_v8 = vsel %vm35_vm10, %v977_v11, 0.0 }
 0x34e   :  { %979 = vadd.xlane.f32.xlu0 %v978_v8  ;;  %v1030_v15 = vpop.xlane.xlu1 %1029 }
 0x34f   :  { %v1031_v32 = vrot.slane %v1030_v15, 4 }
 0x351   :  { %v1032_v3 = vadd.f32 %v1031_v32, %v1030_v15 }
 0x353   :  { %v1033_v19 = vrot.slane %v1032_v3, 2 }
 0x355   :  { %v1034_v13 = vadd.f32 %v1033_v19, %v1032_v3 }
 0x357   :  { %v1035_v22 = vrot.slane %v1034_v13, 1 }
 0x359   :  { %v1036_v29 = vadd.f32 %v1035_v22, %v1034_v13 }
 0x3c1   :  { %v980_v18 = vpop.xlane.xlu0 %979 }
 0x3c2   :  { %v981_v24 = vrot.slane %v980_v18, 4 }
 0x3c4   :  { %v982_v7 = vadd.f32 %v981_v24, %v980_v18 }
 0x3c6   :  { %v983_v14 = vrot.slane %v982_v7, 2 }
 0x3c8   :  { %v984_v16 = vadd.f32 %v983_v14, %v982_v7 }
 0x3ca   :  { %v985_v20 = vrot.slane %v984_v16, 1 }
 0x3cc   :  { %v986_v23 = vadd.f32 %v985_v20, %v984_v16 }
 0x3ce   :  { %1238 = vpush %v986_v23 }
 0x3cf   :  { %1240 = vpush %v994_v25 }
 0x3d0   :  { %1242 = vpush %v1036_v29 }
 0x3ff   :  { %s1239_s5 = spop %1238 }
 0x400   :  { %s1241_s29 = spop %1240 }
 0x401   :  { %s996_s30 = smul.f32 %s1241_s29, %s1239_s5  ;;  %s1243_s1 = spop %1242 }
 0x402   :  { %s1038_s8 = ssub.f32 0.0, %s1243_s1 }
 0x403   :  { %s997_s9 = smul.f32 1.25, %s996_s30 }
 0x404   :  { %v1039_v30 = vstv %s1038_s8 }
 0x405   :  { %999 = sst [smem:[#allocation4]] %s997_s9  ;;  %v1040_v26 = vmul.f32 1.442695, %v1039_v30 }
 0x406   :  { %1055 = dma.smem_to_hbm %s1293_s10, 16, %s1053_s28, [#allocation5]  }
 0x407   :  { %1259 = vpow2.f32 %v1040_v26 }
 0x40d   :  { %v1260_v33 = vpop.eup %1259 }
 0x40e   :  { %1244 = vpush %v1260_v33 }
 0x43f   :  { %s1245_s6 = spop %1244 }
 0x440   :  { %1044 = sst [smem:[#allocation6]] %s1245_s6 }
 0x441   :  { %1064 = dma.smem_to_hbm %s1294_s14, 16, %s1062_s13, [#allocation7]  }
 0x442   :  { %1285 = dma.done.wait [#allocation5], 16  }
 0x443   :  { %1286 = vsyncadd [#allocation5], 4294967280 }
 0x444   :  { %1287 = dma.done.wait [#allocation7], 16  }
 0x445   :  { %1288 = vsyncadd [#allocation7], 4294967280 }
 0x446   :  { %1075 = sfence }
 0x447   :  { %1076 = vsyncpa [#allocation5], 1 }
 0x448   :  { %1077 = vsyncpa [#allocation7], 1 }

// kernel: vqvae_forward.13
= control target key start
LH: loop header
LB: loop body
LE: loop exit
PB: predicated region body
PF: predicated region fallthrough
CT: control target
= control target key end

     0   :  { %s1262_s1 = inlined_call_operand.vmem [shape: bf16[384,128], index: 1, kind: input, shape index: {}]   ;;  %s1263_s0 = inlined_call_operand.vmem [shape: bf16[128,384], index: 0, kind: input, shape index: {}]   ;;  %s1264_s2 = inlined_call_operand.vmem [shape: f32[1,128], index: 2, kind: input, shape index: {}]   ;;  %s1265_s3 = inlined_call_operand.vmem [shape: f32[128,128], index: 3, kind: output, shape index: {}]  }
   0x1   :  { %v863_v0 = vld [vmem:[%s1262_s1 + $0x38] sm:$0xff]  ;;  %v862_v3 = vld [vmem:[%s1262_s1 + $0x30] sm:$0xff]  ;;  %v861_v6 = vld [vmem:[%s1262_s1 + $0x28] sm:$0xff] }
   0x2   :  { %v931_v1 = vld [vmem:[%s1262_s1 + $0x78] sm:$0xff]  ;;  %402 = vmatpush.bf16.msra.mxu0 %v863_v0  ;;  %880 = vmatpush.bf16.msra.mxu3 %v863_v0  ;;  %v946_v4 = vld [vmem:[%s1262_s1 + $0x70] sm:$0xff]  ;;  %v869_v7 = vld [vmem:[%s1262_s1 + $0x68] sm:$0xff] }
   0x3   :  { %v936_v2 = vld [vmem:[%s1262_s1 + $0xb8] sm:$0xff]  ;;  %451 = vmatpush.bf16.msra.mxu1 %v931_v1  ;;  %v951_v5 = vld [vmem:[%s1262_s1 + $0xb0] sm:$0xff]  ;;  %v964_v8 = vld [vmem:[%s1262_s1 + $0xa8] sm:$0xff] }
   0x4   :  { %500 = vmatpush.bf16.msra.mxu2 %v936_v2  ;;  %v860_v9 = vld [vmem:[%s1262_s1 + $0x20] sm:$0xff]  ;;  %v859_v12 = vld [vmem:[%s1262_s1 + $0x18] sm:$0xff]  ;;  %v858_v15 = vld [vmem:[%s1262_s1 + $0x10] sm:$0xff] }
   0x5   :  { %v868_v10 = vld [vmem:[%s1262_s1 + $0x60] sm:$0xff]  ;;  %v867_v13 = vld [vmem:[%s1262_s1 + $0x58] sm:$0xff]  ;;  %v866_v16 = vld [vmem:[%s1262_s1 + $0x50] sm:$0xff] }
   0x6   :  { %403 = vmatpush.bf16.msra.mxu0 %v862_v3  ;;  %881 = vmatpush.bf16.msra.mxu3 %v862_v3  ;;  %v976_v11 = vld [vmem:[%s1262_s1 + $0xa0] sm:$0xff]  ;;  %v988_v14 = vld [vmem:[%s1262_s1 + $0x98] sm:$0xff]  ;;  %v1000_v17 = vld [vmem:[%s1262_s1 + $0x90] sm:$0xff] }
   0x7   :  { %452 = vmatpush.bf16.msra.mxu1 %v946_v4  ;;  %v857_v18 = vld [vmem:[%s1262_s1 + $0x8] sm:$0xff]  ;;  %v856_v21 = vld [vmem:[%s1262_s1] sm:$0xff]  ;;  %v714_v26 = vld [vmem:[%s1263_s0 + $0x90] sm:$0xf] }
   0x8   :  { %501 = vmatpush.bf16.msra.mxu2 %v951_v5  ;;  %v865_v19 = vld [vmem:[%s1262_s1 + $0x48] sm:$0xff]  ;;  %v864_v22 = vld [vmem:[%s1262_s1 + $0x40] sm:$0xff]  ;;  %v851_v27 = vld [vmem:[%s1263_s0 + $0x98] sm:$0xf0] }
   0x9   :  { %v1012_v20 = vld [vmem:[%s1262_s1 + $0x88] sm:$0xff]  ;;  %v1023_v23 = vld [vmem:[%s1262_s1 + $0x80] sm:$0xff]  ;;  %v644_v29 = vld [vmem:[%s1263_s0 + $0xc] sm:$0xf0]  ;;  %v715_v33 = vor.u32 %v851_v27, %v714_v26 }
   0xa   :  { %404 = vmatpush.bf16.msra.mxu0 %v861_v6  ;;  %882 = vmatpush.bf16.msra.mxu3 %v861_v6  ;;  %v642_v24 = vld [vmem:[%s1263_s0] sm:$0xf]  ;;  %v833_v25 = vld [vmem:[%s1263_s0 + $0x8] sm:$0xf0]  ;;  %v832_v28 = vld [vmem:[%s1263_s0 + $0x4] sm:$0xf] }
   0xb   :  { %453 = vmatpush.bf16.msra.mxu1 %v869_v7  ;;  %v650_v30 = vld [vmem:[%s1263_s0 + $0x8] sm:$0xf]  ;;  %v834_v31 = vld [vmem:[%s1263_s0 + $0x10] sm:$0xf0]  ;;  %v643_v32 = vor.u32 %v833_v25, %v642_v24  ;;  %v647_v34 = vor.u32 %v832_v28, %v644_v29  ;;  %v654_v36 = vld [vmem:[%s1263_s0 + $0x18] sm:$0xf] }
   0xc   :  { %502 = vmatpush.bf16.msra.mxu2 %v964_v8  ;;  %v651_v35 = vor.u32 %v834_v31, %v650_v30  ;;  %v836_v37 = vld [vmem:[%s1263_s0 + $0x20] sm:$0xf0]  ;;  %v726_v38 = vld [vmem:[%s1263_s0 + $0xa8] sm:$0xf]  ;;  %v854_v39 = vld [vmem:[%s1263_s0 + $0xb0] sm:$0xf0] }
   0xd   :  { %v835_v40 = vld [vmem:[%s1263_s0 + $0x1c] sm:$0xf]  ;;  %v656_v41 = vld [vmem:[%s1263_s0 + $0x24] sm:$0xf0]  ;;  %v662_v42 = vld [vmem:[%s1263_s0 + $0x20] sm:$0xf]  ;;  %v655_v44 = vor.u32 %v836_v37, %v654_v36  ;;  %v727_v45 = vor.u32 %v854_v39, %v726_v38 }
   0xe   :  { %405 = vmatpush.bf16.msra.mxu0 %v860_v9  ;;  %883 = vmatpush.bf16.msra.mxu3 %v860_v9  ;;  %v837_v43 = vld [vmem:[%s1263_s0 + $0x28] sm:$0xf0]  ;;  %v659_v46 = vor.u32 %v835_v40, %v656_v41  ;;  %v666_v48 = vld [vmem:[%s1263_s0 + $0x30] sm:$0xf]  ;;  %v839_v49 = vld [vmem:[%s1263_s0 + $0x38] sm:$0xf0] }
   0xf   :  { %454 = vmatpush.bf16.msra.mxu1 %v868_v10  ;;  %v663_v47 = vor.u32 %v837_v43, %v662_v42  ;;  %v838_v50 = vld [vmem:[%s1263_s0 + $0x34] sm:$0xf]  ;;  %v716_v52 = vld [vmem:[%s1263_s0 + $0x9c] sm:$0xf0]  ;;  %v674_v54 = vld [vmem:[%s1263_s0 + $0x38] sm:$0xf]  ;;  %v667_v56 = vor.u32 %v839_v49, %v666_v48 }
  0x10   :  { %503 = vmatpush.bf16.msra.mxu2 %v976_v11  ;;  %v850_v51 = vld [vmem:[%s1263_s0 + $0x94] sm:$0xf]  ;;  %v668_v53 = vld [vmem:[%s1263_s0 + $0x3c] sm:$0xf0]  ;;  %v840_v55 = vld [vmem:[%s1263_s0 + $0x40] sm:$0xf0] }
  0x11   :  { %v719_v57 = vor.u32 %v850_v51, %v716_v52  ;;  %v671_v58 = vor.u32 %v838_v50, %v668_v53  ;;  %v675_v59 = vor.u32 %v840_v55, %v674_v54  ;;  %v678_v60 = vld [vmem:[%s1263_s0 + $0x48] sm:$0xf]  ;;  %v842_v61 = vld [vmem:[%s1263_s0 + $0x50] sm:$0xf0]  ;;  %v841_v62 = vld [vmem:[%s1263_s0 + $0x4c] sm:$0xf] }
  0x12   :  { %406 = vmatpush.bf16.msra.mxu0 %v859_v12  ;;  %884 = vmatpush.bf16.msra.mxu3 %v859_v12  ;;  %v853_v63 = vld [vmem:[%s1263_s0 + $0xac] sm:$0xf]  ;;  %v728_v0 = vld [vmem:[%s1263_s0 + $0xb4] sm:$0xf0]  ;;  %v843_v3 = vld [vmem:[%s1263_s0 + $0x58] sm:$0xf0] }
  0x13   :  { %455 = vmatpush.bf16.msra.mxu1 %v867_v13  ;;  %v845_v9 = vld [vmem:[%s1263_s0 + $0x68] sm:$0xf0]  ;;  %v852_v12 = vld [vmem:[%s1263_s0 + $0xa0] sm:$0xf0]  ;;  %v855_v24 = vld [vmem:[%s1263_s0 + $0xb8] sm:$0xf0] }
  0x14   :  { %504 = vmatpush.bf16.msra.mxu2 %v988_v14  ;;  %v704_v25 = vld [vmem:[%s1263_s0 + $0x84] sm:$0xf0]  ;;  %v710_v26 = vld [vmem:[%s1263_s0 + $0x80] sm:$0xf]  ;;  %v849_v27 = vld [vmem:[%s1263_s0 + $0x88] sm:$0xf0] }
  0x15   :  { %v711_v31 = vor.u32 %v849_v27, %v710_v26  ;;  %v1186_v36 = vld [vmem:[%s1264_s2] ss:$0 sm:$0xff] }
  0x16   :  { %407 = vmatpush.bf16.msra.mxu0 %v858_v15  ;;  %885 = vmatpush.bf16.msra.mxu3 %v858_v15  ;;  %v846_v15 = vld [vmem:[%s1263_s0 + $0x70] sm:$0xf0] }
  0x17   :  { %456 = vmatpush.bf16.msra.mxu1 %v866_v16 }
  0x18   :  { %505 = vmatpush.bf16.msra.mxu2 %v1000_v17 }
  0x1a   :  { %408 = vmatpush.bf16.msra.mxu0 %v857_v18  ;;  %886 = vmatpush.bf16.msra.mxu3 %v857_v18 }
  0x1b   :  { %457 = vmatpush.bf16.msra.mxu1 %v865_v19 }
  0x1c   :  { %506 = vmatpush.bf16.msra.mxu2 %v1012_v20 }
  0x1e   :  { %409 = vmatpush.bf16.msra.mxu0 %v856_v21  ;;  %887 = vmatpush.bf16.msra.mxu3 %v856_v21  ;;  %v848_v21 = vld [vmem:[%s1263_s0 + $0x80] sm:$0xf0] }
  0x1f   :  { %458 = vmatpush.bf16.msra.mxu1 %v864_v22 }
  0x20   :  { %507 = vmatpush.bf16.msra.mxu2 %v1023_v23 }
  0x21   :  { %410 = vmatmul.bf16.vlgmr.msra.gmra.mxu0 %v643_v32  ;;  %440 = vmatmul.bf16.vlgmr.msra.gmra.mxu3 %v715_v33 }
  0x22   :  { %888 = vmatpush.bf16.msrb.mxu3 %v931_v1  ;;  %459 = vmatmul.bf16.vlgmr.msra.gmra.mxu1 %v647_v34  ;;  %v680_v1 = vld [vmem:[%s1263_s0 + $0x54] sm:$0xf0] }
  0x23   :  { %508 = vmatmul.bf16.vlgmr.msra.gmra.mxu2 %v651_v35  ;;  %v683_v6 = vor.u32 %v841_v62, %v680_v1 }
  0x26   :  { %889 = vmatpush.bf16.msrb.mxu3 %v946_v4  ;;  %v679_v4 = vor.u32 %v842_v61, %v678_v60 }
  0x2a   :  { %890 = vmatpush.bf16.msrb.mxu3 %v869_v7 }
  0x2e   :  { %891 = vmatpush.bf16.msrb.mxu3 %v868_v10  ;;  %v844_v10 = vld [vmem:[%s1263_s0 + $0x64] sm:$0xf] }
  0x31   :  { %415 = vmatmul.bf16.gmra.mxu0 %v655_v44  ;;  %445 = vmatmul.bf16.gmra.mxu3 %v727_v45 }
  0x32   :  { %892 = vmatpush.bf16.msrb.mxu3 %v867_v13  ;;  %464 = vmatmul.bf16.gmra.mxu1 %v659_v46  ;;  %v692_v13 = vld [vmem:[%s1263_s0 + $0x6c] sm:$0xf0] }
  0x33   :  { %513 = vmatmul.bf16.gmra.mxu2 %v663_v47  ;;  %v695_v18 = vor.u32 %v844_v10, %v692_v13 }
  0x36   :  { %893 = vmatpush.bf16.msrb.mxu3 %v866_v16 }
  0x3a   :  { %894 = vmatpush.bf16.msrb.mxu3 %v865_v19 }
  0x3e   :  { %895 = vmatpush.bf16.msrb.mxu3 %v864_v22  ;;  %v847_v22 = vld [vmem:[%s1263_s0 + $0x7c] sm:$0xf] }
  0x3f   :  { %v707_v30 = vor.u32 %v847_v22, %v704_v25 }
  0x41   :  { %420 = vmatmul.bf16.gmra.mxu0 %v667_v56  ;;  %489 = vmatmul.bf16.vlgmr.msrb.gmra.mxu3 %v719_v57 }
  0x42   :  { %896 = vmatpush.bf16.msra.mxu3 %v936_v2  ;;  %469 = vmatmul.bf16.gmra.mxu1 %v671_v58  ;;  %v686_v2 = vld [vmem:[%s1263_s0 + $0x50] sm:$0xf] }
  0x43   :  { %518 = vmatmul.bf16.gmra.mxu2 %v675_v59  ;;  %v687_v7 = vor.u32 %v843_v3, %v686_v2 }
  0x46   :  { %897 = vmatpush.bf16.msra.mxu3 %v951_v5  ;;  %v731_v5 = vor.u32 %v853_v63, %v728_v0 }
  0x4a   :  { %898 = vmatpush.bf16.msra.mxu3 %v964_v8  ;;  %v690_v8 = vld [vmem:[%s1263_s0 + $0x60] sm:$0xf] }
  0x4b   :  { %v691_v16 = vor.u32 %v845_v9, %v690_v8 }
  0x4e   :  { %899 = vmatpush.bf16.msra.mxu3 %v976_v11  ;;  %v722_v11 = vld [vmem:[%s1263_s0 + $0x98] sm:$0xf] }
  0x51   :  { %425 = vmatmul.bf16.gmra.mxu0 %v679_v4  ;;  %494 = vmatmul.bf16.gmra.mxu3 %v731_v5 }
  0x52   :  { %900 = vmatpush.bf16.msra.mxu3 %v988_v14  ;;  %474 = vmatmul.bf16.gmra.mxu1 %v683_v6  ;;  %v698_v14 = vld [vmem:[%s1263_s0 + $0x68] sm:$0xf] }
  0x53   :  { %523 = vmatmul.bf16.gmra.mxu2 %v687_v7  ;;  %v699_v19 = vor.u32 %v846_v15, %v698_v14 }
  0x56   :  { %901 = vmatpush.bf16.msra.mxu3 %v1000_v17  ;;  %v723_v17 = vor.u32 %v852_v12, %v722_v11 }
  0x5a   :  { %902 = vmatpush.bf16.msra.mxu3 %v1012_v20  ;;  %v702_v20 = vld [vmem:[%s1263_s0 + $0x78] sm:$0xf] }
  0x5b   :  { %v703_v28 = vor.u32 %v848_v21, %v702_v20 }
  0x5e   :  { %903 = vmatpush.bf16.msra.mxu3 %v1023_v23  ;;  %v734_v23 = vld [vmem:[%s1263_s0 + $0xb0] sm:$0xf] }
  0x5f   :  { %v735_v29 = vor.u32 %v855_v24, %v734_v23 }
  0x61   :  { %430 = vmatmul.bf16.gmra.mxu0 %v691_v16  ;;  %538 = vmatmul.bf16.vlgmr.msra.gmra.mxu3 %v723_v17 }
  0x62   :  { %479 = vmatmul.bf16.gmra.mxu1 %v695_v18 }
  0x63   :  { %528 = vmatmul.bf16.gmra.mxu2 %v699_v19 }
  0x71   :  { %435 = vmatmul.bf16.gmra.mxu0 %v703_v28  ;;  %543 = vmatmul.bf16.gmra.mxu3 %v735_v29 }
  0x72   :  { %484 = vmatmul.bf16.gmra.mxu1 %v707_v30 }
  0x73   :  { %533 = vmatmul.bf16.gmra.mxu2 %v711_v31 }
  0x9e   :  { %v411_v32 = vpop.f32.mrf.mxu0 }
  0x9f   :  { %v460_v33 = vpop.f32.mrf.mxu1 }
  0xa0   :  { %v461_v34 = vadd.f32 %v460_v33, %v411_v32 }
  0xa4   :  { %v1181_v35 = vpop.f32.mrf.mxu3 }
  0xa6   :  { %v509_v37 = vpop.f32.mrf.mxu2  ;;  %v413_v39 = vpop.f32.mrf.mxu0 }
  0xa7   :  { %v510_v38 = vadd.f32 %v509_v37, %v461_v34  ;;  %v462_v40 = vpop.f32.mrf.mxu1 }
  0xa8   :  { %v463_v42 = vadd.f32 %v462_v40, %v413_v39 }
  0xa9   :  { %v604_v41 = vadd.f32 %v1186_v36, %v510_v38 }
  0xab   :  { %620 = vst [vmem:[%s1265_s3] sm:$0xff] %v604_v41 }
  0xac   :  { %v1192_v43 = vpop.f32.mrf.mxu3 }
  0xae   :  { %v511_v44 = vpop.f32.mrf.mxu2  ;;  %v416_v46 = vpop.f32.mrf.mxu0 }
  0xaf   :  { %v512_v45 = vadd.f32 %v511_v44, %v463_v42  ;;  %v465_v47 = vpop.f32.mrf.mxu1 }
  0xb0   :  { %v466_v49 = vadd.f32 %v465_v47, %v416_v46 }
  0xb1   :  { %v605_v48 = vadd.f32 %v1186_v36, %v512_v45 }
  0xb3   :  { %621 = vst [vmem:[%s1265_s3 + $0x8] sm:$0xff] %v605_v48 }
  0xb4   :  { %v1198_v50 = vpop.f32.mrf.mxu3 }
  0xb6   :  { %v514_v51 = vpop.f32.mrf.mxu2  ;;  %v418_v53 = vpop.f32.mrf.mxu0 }
  0xb7   :  { %v515_v52 = vadd.f32 %v514_v51, %v466_v49  ;;  %v467_v54 = vpop.f32.mrf.mxu1 }
  0xb8   :  { %v468_v56 = vadd.f32 %v467_v54, %v418_v53 }
  0xb9   :  { %v606_v55 = vadd.f32 %v1186_v36, %v515_v52 }
  0xbb   :  { %622 = vst [vmem:[%s1265_s3 + $0x10] sm:$0xff] %v606_v55 }
  0xbc   :  { %v1204_v57 = vpop.f32.mrf.mxu3 }
  0xbe   :  { %v516_v58 = vpop.f32.mrf.mxu2  ;;  %v421_v60 = vpop.f32.mrf.mxu0 }
  0xbf   :  { %v517_v59 = vadd.f32 %v516_v58, %v468_v56  ;;  %v470_v61 = vpop.f32.mrf.mxu1 }
  0xc0   :  { %v471_v63 = vadd.f32 %v470_v61, %v421_v60 }
  0xc1   :  { %v607_v62 = vadd.f32 %v1186_v36, %v517_v59 }
  0xc3   :  { %623 = vst [vmem:[%s1265_s3 + $0x18] sm:$0xff] %v607_v62 }
  0xc4   :  { %v490_v0 = vpop.f32.mrf.mxu3 }
  0xc5   :  { %v491_v28 = vadd.f32 %v490_v0, %v1181_v35 }
  0xc6   :  { %v519_v1 = vpop.f32.mrf.mxu2  ;;  %v423_v3 = vpop.f32.mrf.mxu0 }
  0xc7   :  { %v520_v2 = vadd.f32 %v519_v1, %v471_v63  ;;  %v472_v4 = vpop.f32.mrf.mxu1 }
  0xc8   :  { %v473_v6 = vadd.f32 %v472_v4, %v423_v3 }
  0xc9   :  { %v608_v5 = vadd.f32 %v1186_v36, %v520_v2 }
  0xcb   :  { %624 = vst [vmem:[%s1265_s3 + $0x20] sm:$0xff] %v608_v5 }
  0xcc   :  { %v492_v7 = vpop.f32.mrf.mxu3 }
  0xcd   :  { %v493_v35 = vadd.f32 %v492_v7, %v1192_v43 }
  0xce   :  { %v521_v8 = vpop.f32.mrf.mxu2  ;;  %v426_v10 = vpop.f32.mrf.mxu0 }
  0xcf   :  { %v522_v9 = vadd.f32 %v521_v8, %v473_v6  ;;  %v475_v11 = vpop.f32.mrf.mxu1 }
  0xd0   :  { %v476_v13 = vadd.f32 %v475_v11, %v426_v10 }
  0xd1   :  { %v609_v12 = vadd.f32 %v1186_v36, %v522_v9 }
  0xd3   :  { %625 = vst [vmem:[%s1265_s3 + $0x28] sm:$0xff] %v609_v12 }
  0xd4   :  { %v495_v14 = vpop.f32.mrf.mxu3 }
  0xd5   :  { %v496_v49 = vadd.f32 %v495_v14, %v1198_v50 }
  0xd6   :  { %v524_v15 = vpop.f32.mrf.mxu2  ;;  %v428_v17 = vpop.f32.mrf.mxu0 }
  0xd7   :  { %v525_v16 = vadd.f32 %v524_v15, %v476_v13  ;;  %v477_v18 = vpop.f32.mrf.mxu1 }
  0xd8   :  { %v478_v20 = vadd.f32 %v477_v18, %v428_v17 }
  0xd9   :  { %v610_v19 = vadd.f32 %v1186_v36, %v525_v16 }
  0xdb   :  { %626 = vst [vmem:[%s1265_s3 + $0x30] sm:$0xff] %v610_v19 }
  0xdc   :  { %v497_v21 = vpop.f32.mrf.mxu3 }
  0xdd   :  { %v498_v50 = vadd.f32 %v497_v21, %v1204_v57 }
  0xde   :  { %v526_v22 = vpop.f32.mrf.mxu2  ;;  %v431_v24 = vpop.f32.mrf.mxu0 }
  0xdf   :  { %v527_v23 = vadd.f32 %v526_v22, %v478_v20  ;;  %v480_v25 = vpop.f32.mrf.mxu1 }
  0xe0   :  { %v481_v27 = vadd.f32 %v480_v25, %v431_v24 }
  0xe1   :  { %v611_v26 = vadd.f32 %v1186_v36, %v527_v23 }
  0xe3   :  { %627 = vst [vmem:[%s1265_s3 + $0x38] sm:$0xff] %v611_v26 }
  0xe4   :  { %v539_v29 = vpop.f32.mrf.mxu3 }
  0xe5   :  { %v540_v31 = vadd.f32 %v539_v29, %v491_v28 }
  0xe6   :  { %v529_v30 = vpop.f32.mrf.mxu2  ;;  %v433_v33 = vpop.f32.mrf.mxu0 }
  0xe7   :  { %v530_v32 = vadd.f32 %v529_v30, %v481_v27  ;;  %v616_v34 = vadd.f32 %v1186_v36, %v540_v31  ;;  %v482_v37 = vpop.f32.mrf.mxu1 }
  0xe8   :  { %v483_v39 = vadd.f32 %v482_v37, %v433_v33 }
  0xe9   :  { %v612_v38 = vadd.f32 %v1186_v36, %v530_v32  ;;  %632 = vst [vmem:[%s1265_s3 + $0x60] sm:$0xff] %v616_v34 }
  0xeb   :  { %628 = vst [vmem:[%s1265_s3 + $0x40] sm:$0xff] %v612_v38 }
  0xec   :  { %v541_v40 = vpop.f32.mrf.mxu3 }
  0xed   :  { %v542_v42 = vadd.f32 %v541_v40, %v493_v35 }
  0xee   :  { %v531_v41 = vpop.f32.mrf.mxu2  ;;  %v436_v46 = vpop.f32.mrf.mxu0 }
  0xef   :  { %v532_v44 = vadd.f32 %v531_v41, %v483_v39  ;;  %v617_v45 = vadd.f32 %v1186_v36, %v542_v42  ;;  %v485_v47 = vpop.f32.mrf.mxu1 }
  0xf0   :  { %v486_v43 = vadd.f32 %v485_v47, %v436_v46 }
  0xf1   :  { %v613_v48 = vadd.f32 %v1186_v36, %v532_v44  ;;  %633 = vst [vmem:[%s1265_s3 + $0x68] sm:$0xff] %v617_v45 }
  0xf3   :  { %629 = vst [vmem:[%s1265_s3 + $0x48] sm:$0xff] %v613_v48 }
  0xf4   :  { %v544_v51 = vpop.f32.mrf.mxu3 }
  0xf5   :  { %v545_v53 = vadd.f32 %v544_v51, %v496_v49 }
  0xf6   :  { %v534_v52 = vpop.f32.mrf.mxu2  ;;  %v438_v58 = vpop.f32.mrf.mxu0 }
  0xf7   :  { %v535_v54 = vadd.f32 %v534_v52, %v486_v43  ;;  %v618_v55 = vadd.f32 %v1186_v36, %v545_v53  ;;  %v487_v59 = vpop.f32.mrf.mxu1 }
  0xf8   :  { %v488_v60 = vadd.f32 %v487_v59, %v438_v58 }
  0xf9   :  { %v614_v56 = vadd.f32 %v1186_v36, %v535_v54  ;;  %634 = vst [vmem:[%s1265_s3 + $0x70] sm:$0xff] %v618_v55 }
  0xfb   :  { %630 = vst [vmem:[%s1265_s3 + $0x50] sm:$0xff] %v614_v56 }
  0xfc   :  { %v546_v61 = vpop.f32.mrf.mxu3 }
  0xfd   :  { %v547_v63 = vadd.f32 %v546_v61, %v498_v50 }
  0xfe   :  { %v536_v62 = vpop.f32.mrf.mxu2 }
  0xff   :  { %v537_v0 = vadd.f32 %v536_v62, %v488_v60  ;;  %v619_v1 = vadd.f32 %v1186_v36, %v547_v63 }
 0x101   :  { %v615_v2 = vadd.f32 %v1186_v36, %v537_v0  ;;  %635 = vst [vmem:[%s1265_s3 + $0x78] sm:$0xff] %v619_v1 }
 0x103   :  { %631 = vst [vmem:[%s1265_s3 + $0x58] sm:$0xff] %v615_v2 }

</bundles_post_ra>
